<compile_context>
chip_gen: v7x
topology: tpu7x:2x2x1
jax: 0.10.0
libtpu: 0.0.40
codegen_flags: <defaults>
</compile_context>

<pallas_src>
import functools

import jax
import jax.numpy as jnp
from jax import lax
from jax.experimental import pallas as pl
from jax.experimental.pallas import tpu as pltpu


# ------------------------- fused forward kernel ---------------------------

def _fused_mha_kernel(x_ref, wqkv_ref, bqkv_ref, a_ref, m_ref, s_ref,
                      wproj_ref, bproj_ref, o_ref, qkv_s, o_s,
                      *, num_heads, head_dim):
    """One batch element per program: qkv proj -> per-head attn(+rel-pos) -> out proj."""
    D = num_heads * head_dim
    x = x_ref[0]                                         # (N, D)

    # qkv projection (MXU).  The K third of wqkv/bqkv is pre-scaled on the host, so the packed k
    # comes out already multiplied by head_dim**-0.5 while q stays un-scaled for the rel-pos path.
    qkv_s[...] = (jnp.dot(x, wqkv_ref[...], preferred_element_type=jnp.float32)
                  + bqkv_ref[...])                       # (N, 3D) VMEM scratch

    a_tbl = a_ref[...]        # (hd, K2)   rel-pos tables, channel-major
    m_tbl = m_ref[...]        # (N, K2)    query-side row mask (h'==h(q) / w'==w(q))
    s_tbl = s_ref[...]        # (K2, N)    key-side scatter    (kh==j//W / kw==j%W)

    for h in range(num_heads):                           # unrolled: all heads in one program
        lo = h * head_dim
        q_h = qkv_s[:, lo:lo + head_dim]                 # (N, hd)  un-scaled q
        k_h = qkv_s[:, D + lo:D + lo + head_dim]         # (N, hd)  pre-scaled k
        v_h = qkv_s[:, 2 * D + lo:2 * D + lo + head_dim] # (N, hd)

        # logits = q @ (scale*k)^T   (MXU; Mosaic handles the transposed contraction)
        logits = lax.dot_general(q_h, k_h, (((1,), (1,)), ((), ())),
                                 preferred_element_type=jnp.float32)        # (N, N)

        # decomposed rel-pos bias, entirely on the MXU (uses un-scaled q, as in the module)
        p_tbl = lax.dot_general(q_h, a_tbl, (((1,), (0,)), ((), ())),
                                preferred_element_type=jnp.float32)         # (N, K2)
        bias = lax.dot_general(p_tbl * m_tbl, s_tbl, (((1,), (0,)), ((), ())),
                               preferred_element_type=jnp.float32)          # (N, N)
        logits = logits + bias

        # softmax over keys; (N,1) reciprocal on the EUP, folded in AFTER the PV matmul
        mx = jnp.max(logits, axis=-1, keepdims=True)
        p = jnp.exp(logits - mx)
        inv = pl.reciprocal(jnp.sum(p, axis=-1, keepdims=True), approx=True)
        o_h = lax.dot_general(p, v_h, (((1,), (0,)), ((), ())),
                              preferred_element_type=jnp.float32) * inv     # (N, hd)

        # store immediately: live head outputs capped at 1, no final concatenate/shuffle
        o_s[:, lo:lo + head_dim] = o_h

    # output projection off the head-merged VMEM slab; one lane-dense (N, D) store to HBM
    out = (jnp.dot(o_s[...], wproj_ref[...], preferred_element_type=jnp.float32)
           + bproj_ref[...])
    o_ref[0] = out.astype(o_ref.dtype)


def rel_pos_mha_fused(x3d, prep, *, num_heads, head_dim):
    B, N, D = x3d.shape
    threeD = 3 * D
    K2 = prep["a_cat"].shape[1]
    kern = functools.partial(_fused_mha_kernel, num_heads=num_heads, head_dim=head_dim)
    return pl.pallas_call(
        kern,
        out_shape=jax.ShapeDtypeStruct((B, N, D), x3d.dtype),
        grid=(B,),
        in_specs=[
            pl.BlockSpec((1, N, D), lambda b: (b, 0, 0)),          # per-batch input
            pl.BlockSpec((D, threeD), lambda b: (0, 0)),           # qkv weights (resident)
            pl.BlockSpec((1, threeD), lambda b: (0, 0)),           # qkv bias
            pl.BlockSpec((head_dim, K2), lambda b: (0, 0)),        # rel-pos tables: fetched once,
            pl.BlockSpec((N, K2), lambda b: (0, 0)),               # stay resident across the grid
            pl.BlockSpec((K2, N), lambda b: (0, 0)),
            pl.BlockSpec((D, D), lambda b: (0, 0)),                # proj weights (resident)
            pl.BlockSpec((1, D), lambda b: (0, 0)),                # proj bias
        ],
        out_specs=pl.BlockSpec((1, N, D), lambda b: (b, 0, 0)),
        scratch_shapes=[
            pltpu.VMEM((N, threeD), jnp.float32),                  # packed qkv
            pltpu.VMEM((N, D), jnp.float32),                       # head-merged attention output
        ],
        compiler_params=pltpu.CompilerParams(dimension_semantics=("parallel",)),
    )(x3d, prep["w_qkv_t"], prep["b_qkv_row"], prep["a_cat"], prep["m_cat"],
      prep["s_cat"], prep["w_proj_t"], prep["b_proj_row"])


# ------------------ one-time host-side parameter preparation --------------

def prepare_params(params, H, W, num_heads):
    """Pure function of the parameters and (H, W); call once, outside the per-step path."""
    D = params["w_qkv"].shape[1]
    hd = D // num_heads
    scale = hd ** -0.5
    N = H * W
    dt = params["w_qkv"].dtype

    # transpose once; fold the attention scale into the K third so the kernel never scales q
    w_qkv_t = jnp.asarray(params["w_qkv"]).T                               # (D, 3D) = [q | k | v]
    k_scale = jnp.concatenate([jnp.ones((D,), dt),
                               jnp.full((D,), scale, dt),
                               jnp.ones((D,), dt)])                        # (3D,)
    w_qkv_t = w_qkv_t * k_scale[None, :]
    b_qkv_row = (jnp.asarray(params["b_qkv"]) * k_scale)[None, :]          # (1, 3D)

    w_proj_t = jnp.asarray(params["w_proj"]).T                             # (D, D)
    b_proj_row = jnp.asarray(params["b_proj"])[None, :]                    # (1, D)

    # decomposed rel-pos constant tables:
    #   P    = q_h @ A        A[c, h'*H+kh] = Rh[h',kh,c] | A[c, HH + w'*W+kw] = Rw[w',kw,c]
    #   bias = (P * M) @ S    M keeps rows with h'==h(q)/w'==w(q); S scatters kh/kw -> key j
    idx_h = jnp.arange(H)[:, None] - jnp.arange(H)[None, :] + (H - 1)
    idx_w = jnp.arange(W)[:, None] - jnp.arange(W)[None, :] + (W - 1)
    Rh = params["rel_pos_h"][idx_h]                                        # (H, H, hd)
    Rw = params["rel_pos_w"][idx_w]                                        # (W, W, hd)
    a_cat = jnp.concatenate([Rh.transpose(2, 0, 1).reshape(hd, H * H),
                             Rw.transpose(2, 0, 1).reshape(hd, W * W)], axis=1)   # (hd, K2)

    coord_h = jnp.arange(N) // W
    coord_w = jnp.arange(N) % W
    m_h = (jnp.arange(H * H)[None, :] // H == coord_h[:, None]).astype(dt)        # (N, H*H)
    m_w = (jnp.arange(W * W)[None, :] // W == coord_w[:, None]).astype(dt)        # (N, W*W)
    m_cat = jnp.concatenate([m_h, m_w], axis=1)                                   # (N, K2)
    s_h = (jnp.arange(H * H)[:, None] % H == coord_h[None, :]).astype(dt)         # (H*H, N)
    s_w = (jnp.arange(W * W)[:, None] % W == coord_w[None, :]).astype(dt)         # (W*W, N)
    s_cat = jnp.concatenate([s_h, s_w], axis=0)                                   # (K2, N)

    return {"w_qkv_t": w_qkv_t, "b_qkv_row": b_qkv_row,
            "w_proj_t": w_proj_t, "b_proj_row": b_proj_row,
            "a_cat": a_cat, "m_cat": m_cat, "s_cat": s_cat}


def rel_pos_mha_forward(x, prep, num_heads):
    """Matches __RelativePositionalMultiheadAttentionPT.forward with use_rel_pos=True."""
    B, H, W, D = x.shape
    hd = D // num_heads
    N = H * W
    o = rel_pos_mha_fused(x.reshape(B, N, D), prep, num_heads=num_heads, head_dim=hd)
    return o.reshape(B, H, W, D)


# ----------------------------- pure-JAX reference -------------------------

def reference_forward(x, params, num_heads):
    B, H, W, D = x.shape
    nH = num_heads
    hd = D // nH
    scale = hd ** -0.5
    N = H * W

    qkv = x @ params["w_qkv"].T + params["b_qkv"]
    qkv = qkv.reshape(B, N, 3, nH, hd).transpose(2, 0, 3, 1, 4).reshape(3, B * nH, N, hd)
    q, k, v = qkv[0], qkv[1], qkv[2]

    attn = (q * scale) @ jnp.swapaxes(k, -2, -1)

    idx_h = jnp.arange(H)[:, None] - jnp.arange(H)[None, :] + (H - 1)
    idx_w = jnp.arange(W)[:, None] - jnp.arange(W)[None, :] + (W - 1)
    Rh = params["rel_pos_h"][idx_h]
    Rw = params["rel_pos_w"][idx_w]
    r_q = q.reshape(B * nH, H, W, hd)
    rel_h = jnp.einsum("bhwc,hkc->bhwk", r_q, Rh)
    rel_w = jnp.einsum("bhwc,wkc->bhwk", r_q, Rw)
    attn = (attn.reshape(B * nH, H, W, H, W)
            + rel_h[:, :, :, :, None]
            + rel_w[:, :, :, None, :]).reshape(B * nH, N, N)

    attn = jax.nn.softmax(attn, axis=-1)
    o = (attn @ v).reshape(B, nH, H, W, hd).transpose(0, 2, 3, 1, 4).reshape(B, H, W, D)
    return o @ params["w_proj"].T + params["b_proj"]


# --------------------------------- main ------------------------------------

if __name__ == "__main__":
    B, H, W = 2, 8, 8
    project_dim = 128
    num_heads = 8
    head_dim = project_dim // num_heads

    key = jax.random.PRNGKey(0)
    kx, kwq, kbq, kwp, kbp, krh, krw = jax.random.split(key, 7)

    x = jax.random.normal(kx, (B, H, W, project_dim), dtype=jnp.float32)

    # Deterministic parameter init (shapes follow the module's __init__; rel_pos params are given
    # small random values instead of zeros so the rel-pos path is actually exercised).
    params = {
        "w_qkv": 0.02 * jax.random.normal(kwq, (3 * project_dim, project_dim), dtype=jnp.float32),
        "b_qkv": 0.02 * jax.random.normal(kbq, (3 * project_dim,), dtype=jnp.float32),
        "w_proj": 0.02 * jax.random.normal(kwp, (project_dim, project_dim), dtype=jnp.float32),
        "b_proj": 0.02 * jax.random.normal(kbp, (project_dim,), dtype=jnp.float32),
        "rel_pos_h": 0.1 * jax.random.normal(krh, (2 * H - 1, head_dim), dtype=jnp.float32),
        "rel_pos_w": 0.1 * jax.random.normal(krw, (2 * W - 1, head_dim), dtype=jnp.float32),
    }

    prep = prepare_params(params, H, W, num_heads)       # one-time, outside the per-call path

    out = rel_pos_mha_forward(x, prep, num_heads)
    out = jax.block_until_ready(out)

    ref = jax.block_until_ready(reference_forward(x, params, num_heads))
    assert out.shape == (B, H, W, project_dim)
    assert jnp.allclose(out, ref, atol=2e-3, rtol=2e-3)

    print("KERNEL_OK")
</pallas_src>

<mosaic_0001>
module attributes {stable_mosaic.version = 11 : i64} {
  func.func @_fused_mha_kernel(%arg0: i32, %arg1: memref<1x64x128xf32, #tpu.memory_space<vmem>>, %arg2: memref<128x384xf32, #tpu.memory_space<vmem>>, %arg3: memref<1x384xf32, #tpu.memory_space<vmem>>, %arg4: memref<16x128xf32, #tpu.memory_space<vmem>>, %arg5: memref<64x128xf32, #tpu.memory_space<vmem>>, %arg6: memref<128x64xf32, #tpu.memory_space<vmem>>, %arg7: memref<128x128xf32, #tpu.memory_space<vmem>>, %arg8: memref<1x128xf32, #tpu.memory_space<vmem>>, %arg9: memref<1x64x128xf32, #tpu.memory_space<vmem>>, %arg10: memref<64x384xf32, #tpu.memory_space<vmem>>, %arg11: memref<64x128xf32, #tpu.memory_space<vmem>>) attributes {dimension_semantics = [#tpu.dimension_semantics<parallel>], iteration_bounds = array<i64: 2>, scalar_prefetch = 0 : i64, scratch_operands = 2 : i64, tpu.core_type = #tpu.core_type<tc>, window_params = [{transform_indices = @transform_0, window_bounds = array<i64: 1, 64, 128>}, {pipeline_mode = #tpu.pipeline_mode<synchronous>, transform_indices = @transform_1, window_bounds = array<i64: 128, 384>}, {pipeline_mode = #tpu.pipeline_mode<synchronous>, transform_indices = @transform_2, window_bounds = array<i64: 1, 384>}, {pipeline_mode = #tpu.pipeline_mode<synchronous>, transform_indices = @transform_3, window_bounds = array<i64: 16, 128>}, {pipeline_mode = #tpu.pipeline_mode<synchronous>, transform_indices = @transform_4, window_bounds = array<i64: 64, 128>}, {pipeline_mode = #tpu.pipeline_mode<synchronous>, transform_indices = @transform_5, window_bounds = array<i64: 128, 64>}, {pipeline_mode = #tpu.pipeline_mode<synchronous>, transform_indices = @transform_6, window_bounds = array<i64: 128, 128>}, {pipeline_mode = #tpu.pipeline_mode<synchronous>, transform_indices = @transform_7, window_bounds = array<i64: 1, 128>}, {transform_indices = @transform_8, window_bounds = array<i64: 1, 64, 128>}]} {
    %c0 = arith.constant 0 : index
    %c0_0 = arith.constant 0 : index
    %c0_1 = arith.constant 0 : index
    %0 = vector.load %arg1[%c0, %c0_0, %c0_1] : memref<1x64x128xf32, #tpu.memory_space<vmem>>, vector<1x64x128xf32>
    %1 = vector.shape_cast %0 : vector<1x64x128xf32> to vector<64x128xf32>
    %c0_2 = arith.constant 0 : index
    %c0_3 = arith.constant 0 : index
    %2 = vector.load %arg2[%c0_2, %c0_3] : memref<128x384xf32, #tpu.memory_space<vmem>>, vector<128x384xf32>
    %cst = arith.constant dense<0.000000e+00> : vector<64x384xf32>
    %3 = tpu.matmul %1, %2, %cst {dimension_numbers = #tpu.dot_dimension_numbers<[1], [0], [0], [1], [0, 0, 1, 1], [], []>} : vector<64x128xf32>, vector<128x384xf32>, vector<64x384xf32> -> vector<64x384xf32>
    %c0_4 = arith.constant 0 : index
    %c0_5 = arith.constant 0 : index
    %4 = vector.load %arg3[%c0_4, %c0_5] : memref<1x384xf32, #tpu.memory_space<vmem>>, vector<1x384xf32>
    %5 = vector.broadcast %4 : vector<1x384xf32> to vector<64x384xf32>
    %6 = arith.addf %3, %5 : vector<64x384xf32>
    %c0_6 = arith.constant 0 : index
    %c0_7 = arith.constant 0 : index
    %7 = vector.load %arg10[%c0_6, %c0_7] : memref<64x384xf32, #tpu.memory_space<vmem>>, vector<64x384xf32>
    tpu.vector_store %arg10[%c0_6, %c0_7], %6 {strides = array<i32>} : memref<64x384xf32, #tpu.memory_space<vmem>>, vector<64x384xf32>,
    %c0_8 = arith.constant 0 : index
    %c0_9 = arith.constant 0 : index
    %8 = vector.load %arg4[%c0_8, %c0_9] : memref<16x128xf32, #tpu.memory_space<vmem>>, vector<16x128xf32>
    %c0_10 = arith.constant 0 : index
    %c0_11 = arith.constant 0 : index
    %9 = vector.load %arg5[%c0_10, %c0_11] : memref<64x128xf32, #tpu.memory_space<vmem>>, vector<64x128xf32>
    %c0_12 = arith.constant 0 : index
    %c0_13 = arith.constant 0 : index
    %10 = vector.load %arg6[%c0_12, %c0_13] : memref<128x64xf32, #tpu.memory_space<vmem>>, vector<128x64xf32>
    %c0_14 = arith.constant 0 : index
    %c0_15 = arith.constant 0 : index
    %11 = vector.load %arg10[%c0_14, %c0_15] : memref<64x384xf32, #tpu.memory_space<vmem>>, vector<64x16xf32>
    %c0_16 = arith.constant 0 : index
    %c128 = arith.constant 128 : index
    %12 = vector.load %arg10[%c0_16, %c128] : memref<64x384xf32, #tpu.memory_space<vmem>>, vector<64x16xf32>
    %c0_17 = arith.constant 0 : index
    %c256 = arith.constant 256 : index
    %13 = vector.load %arg10[%c0_17, %c256] : memref<64x384xf32, #tpu.memory_space<vmem>>, vector<64x16xf32>
    %cst_18 = arith.constant dense<0.000000e+00> : vector<64x64xf32>
    %14 = tpu.matmul %11, %12, %cst_18 {dimension_numbers = #tpu.dot_dimension_numbers<[1], [1], [0], [0], [0, 0, 1, 0], [], []>} : vector<64x16xf32>, vector<64x16xf32>, vector<64x64xf32> -> vector<64x64xf32>
    %cst_19 = arith.constant dense<0.000000e+00> : vector<64x128xf32>
    %15 = tpu.matmul %11, %8, %cst_19 {dimension_numbers = #tpu.dot_dimension_numbers<[1], [0], [0], [1], [0, 0, 1, 1], [], []>} : vector<64x16xf32>, vector<16x128xf32>, vector<64x128xf32> -> vector<64x128xf32>
    %16 = arith.mulf %15, %9 : vector<64x128xf32>
    %cst_20 = arith.constant dense<0.000000e+00> : vector<64x64xf32>
    %17 = tpu.matmul %16, %10, %cst_20 {dimension_numbers = #tpu.dot_dimension_numbers<[1], [0], [0], [1], [0, 0, 1, 1], [], []>} : vector<64x128xf32>, vector<128x64xf32>, vector<64x64xf32> -> vector<64x64xf32>
    %18 = arith.addf %14, %17 : vector<64x64xf32>
    %cst_21 = arith.constant dense<0xFF800000> : vector<64xf32>
    %19 = vector.multi_reduction <maximumf>, %18, %cst_21 [1] : vector<64x64xf32> to vector<64xf32>
    %20 = vector.shape_cast %19 : vector<64xf32> to vector<64x1xf32>
    %21 = vector.broadcast %20 : vector<64x1xf32> to vector<64x64xf32>
    %22 = arith.subf %18, %21 : vector<64x64xf32>
    %23 = math.exp %22 : vector<64x64xf32>
    %cst_22 = arith.constant dense<0.000000e+00> : vector<64xf32>
    %24 = vector.multi_reduction <add>, %23, %cst_22 [1] : vector<64x64xf32> to vector<64xf32>
    %25 = vector.shape_cast %24 : vector<64xf32> to vector<64x1xf32>
    %26 = tpu.reciprocal %25 {approx = true} : vector<64x1xf32> -> vector<64x1xf32>
    %cst_23 = arith.constant dense<0.000000e+00> : vector<64x16xf32>
    %27 = tpu.matmul %23, %13, %cst_23 {dimension_numbers = #tpu.dot_dimension_numbers<[1], [0], [0], [1], [0, 0, 1, 1], [], []>} : vector<64x64xf32>, vector<64x16xf32>, vector<64x16xf32> -> vector<64x16xf32>
    %28 = vector.broadcast %26 : vector<64x1xf32> to vector<64x16xf32>
    %29 = arith.mulf %27, %28 : vector<64x16xf32>
    %c0_24 = arith.constant 0 : index
    %c0_25 = arith.constant 0 : index
    %30 = vector.load %arg11[%c0_24, %c0_25] : memref<64x128xf32, #tpu.memory_space<vmem>>, vector<64x16xf32>
    tpu.vector_store %arg11[%c0_24, %c0_25], %29 {strides = array<i32>} : memref<64x128xf32, #tpu.memory_space<vmem>>, vector<64x16xf32>,
    %c0_26 = arith.constant 0 : index
    %c16 = arith.constant 16 : index
    %31 = vector.load %arg10[%c0_26, %c16] : memref<64x384xf32, #tpu.memory_space<vmem>>, vector<64x16xf32>
    %c0_27 = arith.constant 0 : index
    %c144 = arith.constant 144 : index
    %32 = vector.load %arg10[%c0_27, %c144] : memref<64x384xf32, #tpu.memory_space<vmem>>, vector<64x16xf32>
    %c0_28 = arith.constant 0 : index
    %c272 = arith.constant 272 : index
    %33 = vector.load %arg10[%c0_28, %c272] : memref<64x384xf32, #tpu.memory_space<vmem>>, vector<64x16xf32>
    %cst_29 = arith.constant dense<0.000000e+00> : vector<64x64xf32>
    %34 = tpu.matmul %31, %32, %cst_29 {dimension_numbers = #tpu.dot_dimension_numbers<[1], [1], [0], [0], [0, 0, 1, 0], [], []>} : vector<64x16xf32>, vector<64x16xf32>, vector<64x64xf32> -> vector<64x64xf32>
    %cst_30 = arith.constant dense<0.000000e+00> : vector<64x128xf32>
    %35 = tpu.matmul %31, %8, %cst_30 {dimension_numbers = #tpu.dot_dimension_numbers<[1], [0], [0], [1], [0, 0, 1, 1], [], []>} : vector<64x16xf32>, vector<16x128xf32>, vector<64x128xf32> -> vector<64x128xf32>
    %36 = arith.mulf %35, %9 : vector<64x128xf32>
    %cst_31 = arith.constant dense<0.000000e+00> : vector<64x64xf32>
    %37 = tpu.matmul %36, %10, %cst_31 {dimension_numbers = #tpu.dot_dimension_numbers<[1], [0], [0], [1], [0, 0, 1, 1], [], []>} : vector<64x128xf32>, vector<128x64xf32>, vector<64x64xf32> -> vector<64x64xf32>
    %38 = arith.addf %34, %37 : vector<64x64xf32>
    %cst_32 = arith.constant dense<0xFF800000> : vector<64xf32>
    %39 = vector.multi_reduction <maximumf>, %38, %cst_32 [1] : vector<64x64xf32> to vector<64xf32>
    %40 = vector.shape_cast %39 : vector<64xf32> to vector<64x1xf32>
    %41 = vector.broadcast %40 : vector<64x1xf32> to vector<64x64xf32>
    %42 = arith.subf %38, %41 : vector<64x64xf32>
    %43 = math.exp %42 : vector<64x64xf32>
    %cst_33 = arith.constant dense<0.000000e+00> : vector<64xf32>
    %44 = vector.multi_reduction <add>, %43, %cst_33 [1] : vector<64x64xf32> to vector<64xf32>
    %45 = vector.shape_cast %44 : vector<64xf32> to vector<64x1xf32>
    %46 = tpu.reciprocal %45 {approx = true} : vector<64x1xf32> -> vector<64x1xf32>
    %cst_34 = arith.constant dense<0.000000e+00> : vector<64x16xf32>
    %47 = tpu.matmul %43, %33, %cst_34 {dimension_numbers = #tpu.dot_dimension_numbers<[1], [0], [0], [1], [0, 0, 1, 1], [], []>} : vector<64x64xf32>, vector<64x16xf32>, vector<64x16xf32> -> vector<64x16xf32>
    %48 = vector.broadcast %46 : vector<64x1xf32> to vector<64x16xf32>
    %49 = arith.mulf %47, %48 : vector<64x16xf32>
    %c0_35 = arith.constant 0 : index
    %c16_36 = arith.constant 16 : index
    %50 = vector.load %arg11[%c0_35, %c16_36] : memref<64x128xf32, #tpu.memory_space<vmem>>, vector<64x16xf32>
    tpu.vector_store %arg11[%c0_35, %c16_36], %49 {strides = array<i32>} : memref<64x128xf32, #tpu.memory_space<vmem>>, vector<64x16xf32>,
    %c0_37 = arith.constant 0 : index
    %c32 = arith.constant 32 : index
    %51 = vector.load %arg10[%c0_37, %c32] : memref<64x384xf32, #tpu.memory_space<vmem>>, vector<64x16xf32>
    %c0_38 = arith.constant 0 : index
    %c160 = arith.constant 160 : index
    %52 = vector.load %arg10[%c0_38, %c160] : memref<64x384xf32, #tpu.memory_space<vmem>>, vector<64x16xf32>
    %c0_39 = arith.constant 0 : index
    %c288 = arith.constant 288 : index
    %53 = vector.load %arg10[%c0_39, %c288] : memref<64x384xf32, #tpu.memory_space<vmem>>, vector<64x16xf32>
    %cst_40 = arith.constant dense<0.000000e+00> : vector<64x64xf32>
    %54 = tpu.matmul %51, %52, %cst_40 {dimension_numbers = #tpu.dot_dimension_numbers<[1], [1], [0], [0], [0, 0, 1, 0], [], []>} : vector<64x16xf32>, vector<64x16xf32>, vector<64x64xf32> -> vector<64x64xf32>
    %cst_41 = arith.constant dense<0.000000e+00> : vector<64x128xf32>
    %55 = tpu.matmul %51, %8, %cst_41 {dimension_numbers = #tpu.dot_dimension_numbers<[1], [0], [0], [1], [0, 0, 1, 1], [], []>} : vector<64x16xf32>, vector<16x128xf32>, vector<64x128xf32> -> vector<64x128xf32>
    %56 = arith.mulf %55, %9 : vector<64x128xf32>
    %cst_42 = arith.constant dense<0.000000e+00> : vector<64x64xf32>
    %57 = tpu.matmul %56, %10, %cst_42 {dimension_numbers = #tpu.dot_dimension_numbers<[1], [0], [0], [1], [0, 0, 1, 1], [], []>} : vector<64x128xf32>, vector<128x64xf32>, vector<64x64xf32> -> vector<64x64xf32>
    %58 = arith.addf %54, %57 : vector<64x64xf32>
    %cst_43 = arith.constant dense<0xFF800000> : vector<64xf32>
    %59 = vector.multi_reduction <maximumf>, %58, %cst_43 [1] : vector<64x64xf32> to vector<64xf32>
    %60 = vector.shape_cast %59 : vector<64xf32> to vector<64x1xf32>
    %61 = vector.broadcast %60 : vector<64x1xf32> to vector<64x64xf32>
    %62 = arith.subf %58, %61 : vector<64x64xf32>
    %63 = math.exp %62 : vector<64x64xf32>
    %cst_44 = arith.constant dense<0.000000e+00> : vector<64xf32>
    %64 = vector.multi_reduction <add>, %63, %cst_44 [1] : vector<64x64xf32> to vector<64xf32>
    %65 = vector.shape_cast %64 : vector<64xf32> to vector<64x1xf32>
    %66 = tpu.reciprocal %65 {approx = true} : vector<64x1xf32> -> vector<64x1xf32>
    %cst_45 = arith.constant dense<0.000000e+00> : vector<64x16xf32>
    %67 = tpu.matmul %63, %53, %cst_45 {dimension_numbers = #tpu.dot_dimension_numbers<[1], [0], [0], [1], [0, 0, 1, 1], [], []>} : vector<64x64xf32>, vector<64x16xf32>, vector<64x16xf32> -> vector<64x16xf32>
    %68 = vector.broadcast %66 : vector<64x1xf32> to vector<64x16xf32>
    %69 = arith.mulf %67, %68 : vector<64x16xf32>
    %c0_46 = arith.constant 0 : index
    %c32_47 = arith.constant 32 : index
    %70 = vector.load %arg11[%c0_46, %c32_47] : memref<64x128xf32, #tpu.memory_space<vmem>>, vector<64x16xf32>
    tpu.vector_store %arg11[%c0_46, %c32_47], %69 {strides = array<i32>} : memref<64x128xf32, #tpu.memory_space<vmem>>, vector<64x16xf32>,
    %c0_48 = arith.constant 0 : index
    %c48 = arith.constant 48 : index
    %71 = vector.load %arg10[%c0_48, %c48] : memref<64x384xf32, #tpu.memory_space<vmem>>, vector<64x16xf32>
    %c0_49 = arith.constant 0 : index
    %c176 = arith.constant 176 : index
    %72 = vector.load %arg10[%c0_49, %c176] : memref<64x384xf32, #tpu.memory_space<vmem>>, vector<64x16xf32>
    %c0_50 = arith.constant 0 : index
    %c304 = arith.constant 304 : index
    %73 = vector.load %arg10[%c0_50, %c304] : memref<64x384xf32, #tpu.memory_space<vmem>>, vector<64x16xf32>
    %cst_51 = arith.constant dense<0.000000e+00> : vector<64x64xf32>
    %74 = tpu.matmul %71, %72, %cst_51 {dimension_numbers = #tpu.dot_dimension_numbers<[1], [1], [0], [0], [0, 0, 1, 0], [], []>} : vector<64x16xf32>, vector<64x16xf32>, vector<64x64xf32> -> vector<64x64xf32>
    %cst_52 = arith.constant dense<0.000000e+00> : vector<64x128xf32>
    %75 = tpu.matmul %71, %8, %cst_52 {dimension_numbers = #tpu.dot_dimension_numbers<[1], [0], [0], [1], [0, 0, 1, 1], [], []>} : vector<64x16xf32>, vector<16x128xf32>, vector<64x128xf32> -> vector<64x128xf32>
    %76 = arith.mulf %75, %9 : vector<64x128xf32>
    %cst_53 = arith.constant dense<0.000000e+00> : vector<64x64xf32>
    %77 = tpu.matmul %76, %10, %cst_53 {dimension_numbers = #tpu.dot_dimension_numbers<[1], [0], [0], [1], [0, 0, 1, 1], [], []>} : vector<64x128xf32>, vector<128x64xf32>, vector<64x64xf32> -> vector<64x64xf32>
    %78 = arith.addf %74, %77 : vector<64x64xf32>
    %cst_54 = arith.constant dense<0xFF800000> : vector<64xf32>
    %79 = vector.multi_reduction <maximumf>, %78, %cst_54 [1] : vector<64x64xf32> to vector<64xf32>
    %80 = vector.shape_cast %79 : vector<64xf32> to vector<64x1xf32>
    %81 = vector.broadcast %80 : vector<64x1xf32> to vector<64x64xf32>
    %82 = arith.subf %78, %81 : vector<64x64xf32>
    %83 = math.exp %82 : vector<64x64xf32>
    %cst_55 = arith.constant dense<0.000000e+00> : vector<64xf32>
    %84 = vector.multi_reduction <add>, %83, %cst_55 [1] : vector<64x64xf32> to vector<64xf32>
    %85 = vector.shape_cast %84 : vector<64xf32> to vector<64x1xf32>
    %86 = tpu.reciprocal %85 {approx = true} : vector<64x1xf32> -> vector<64x1xf32>
    %cst_56 = arith.constant dense<0.000000e+00> : vector<64x16xf32>
    %87 = tpu.matmul %83, %73, %cst_56 {dimension_numbers = #tpu.dot_dimension_numbers<[1], [0], [0], [1], [0, 0, 1, 1], [], []>} : vector<64x64xf32>, vector<64x16xf32>, vector<64x16xf32> -> vector<64x16xf32>
    %88 = vector.broadcast %86 : vector<64x1xf32> to vector<64x16xf32>
    %89 = arith.mulf %87, %88 : vector<64x16xf32>
    %c0_57 = arith.constant 0 : index
    %c48_58 = arith.constant 48 : index
    %90 = vector.load %arg11[%c0_57, %c48_58] : memref<64x128xf32, #tpu.memory_space<vmem>>, vector<64x16xf32>
    tpu.vector_store %arg11[%c0_57, %c48_58], %89 {strides = array<i32>} : memref<64x128xf32, #tpu.memory_space<vmem>>, vector<64x16xf32>,
    %c0_59 = arith.constant 0 : index
    %c64 = arith.constant 64 : index
    %91 = vector.load %arg10[%c0_59, %c64] : memref<64x384xf32, #tpu.memory_space<vmem>>, vector<64x16xf32>
    %c0_60 = arith.constant 0 : index
    %c192 = arith.constant 192 : index
    %92 = vector.load %arg10[%c0_60, %c192] : memref<64x384xf32, #tpu.memory_space<vmem>>, vector<64x16xf32>
    %c0_61 = arith.constant 0 : index
    %c320 = arith.constant 320 : index
    %93 = vector.load %arg10[%c0_61, %c320] : memref<64x384xf32, #tpu.memory_space<vmem>>, vector<64x16xf32>
    %cst_62 = arith.constant dense<0.000000e+00> : vector<64x64xf32>
    %94 = tpu.matmul %91, %92, %cst_62 {dimension_numbers = #tpu.dot_dimension_numbers<[1], [1], [0], [0], [0, 0, 1, 0], [], []>} : vector<64x16xf32>, vector<64x16xf32>, vector<64x64xf32> -> vector<64x64xf32>
    %cst_63 = arith.constant dense<0.000000e+00> : vector<64x128xf32>
    %95 = tpu.matmul %91, %8, %cst_63 {dimension_numbers = #tpu.dot_dimension_numbers<[1], [0], [0], [1], [0, 0, 1, 1], [], []>} : vector<64x16xf32>, vector<16x128xf32>, vector<64x128xf32> -> vector<64x128xf32>
    %96 = arith.mulf %95, %9 : vector<64x128xf32>
    %cst_64 = arith.constant dense<0.000000e+00> : vector<64x64xf32>
    %97 = tpu.matmul %96, %10, %cst_64 {dimension_numbers = #tpu.dot_dimension_numbers<[1], [0], [0], [1], [0, 0, 1, 1], [], []>} : vector<64x128xf32>, vector<128x64xf32>, vector<64x64xf32> -> vector<64x64xf32>
    %98 = arith.addf %94, %97 : vector<64x64xf32>
    %cst_65 = arith.constant dense<0xFF800000> : vector<64xf32>
    %99 = vector.multi_reduction <maximumf>, %98, %cst_65 [1] : vector<64x64xf32> to vector<64xf32>
    %100 = vector.shape_cast %99 : vector<64xf32> to vector<64x1xf32>
    %101 = vector.broadcast %100 : vector<64x1xf32> to vector<64x64xf32>
    %102 = arith.subf %98, %101 : vector<64x64xf32>
    %103 = math.exp %102 : vector<64x64xf32>
    %cst_66 = arith.constant dense<0.000000e+00> : vector<64xf32>
    %104 = vector.multi_reduction <add>, %103, %cst_66 [1] : vector<64x64xf32> to vector<64xf32>
    %105 = vector.shape_cast %104 : vector<64xf32> to vector<64x1xf32>
    %106 = tpu.reciprocal %105 {approx = true} : vector<64x1xf32> -> vector<64x1xf32>
    %cst_67 = arith.constant dense<0.000000e+00> : vector<64x16xf32>
    %107 = tpu.matmul %103, %93, %cst_67 {dimension_numbers = #tpu.dot_dimension_numbers<[1], [0], [0], [1], [0, 0, 1, 1], [], []>} : vector<64x64xf32>, vector<64x16xf32>, vector<64x16xf32> -> vector<64x16xf32>
    %108 = vector.broadcast %106 : vector<64x1xf32> to vector<64x16xf32>
    %109 = arith.mulf %107, %108 : vector<64x16xf32>
    %c0_68 = arith.constant 0 : index
    %c64_69 = arith.constant 64 : index
    %110 = vector.load %arg11[%c0_68, %c64_69] : memref<64x128xf32, #tpu.memory_space<vmem>>, vector<64x16xf32>
    tpu.vector_store %arg11[%c0_68, %c64_69], %109 {strides = array<i32>} : memref<64x128xf32, #tpu.memory_space<vmem>>, vector<64x16xf32>,
    %c0_70 = arith.constant 0 : index
    %c80 = arith.constant 80 : index
    %111 = vector.load %arg10[%c0_70, %c80] : memref<64x384xf32, #tpu.memory_space<vmem>>, vector<64x16xf32>
    %c0_71 = arith.constant 0 : index
    %c208 = arith.constant 208 : index
    %112 = vector.load %arg10[%c0_71, %c208] : memref<64x384xf32, #tpu.memory_space<vmem>>, vector<64x16xf32>
    %c0_72 = arith.constant 0 : index
    %c336 = arith.constant 336 : index
    %113 = vector.load %arg10[%c0_72, %c336] : memref<64x384xf32, #tpu.memory_space<vmem>>, vector<64x16xf32>
    %cst_73 = arith.constant dense<0.000000e+00> : vector<64x64xf32>
    %114 = tpu.matmul %111, %112, %cst_73 {dimension_numbers = #tpu.dot_dimension_numbers<[1], [1], [0], [0], [0, 0, 1, 0], [], []>} : vector<64x16xf32>, vector<64x16xf32>, vector<64x64xf32> -> vector<64x64xf32>
    %cst_74 = arith.constant dense<0.000000e+00> : vector<64x128xf32>
    %115 = tpu.matmul %111, %8, %cst_74 {dimension_numbers = #tpu.dot_dimension_numbers<[1], [0], [0], [1], [0, 0, 1, 1], [], []>} : vector<64x16xf32>, vector<16x128xf32>, vector<64x128xf32> -> vector<64x128xf32>
    %116 = arith.mulf %115, %9 : vector<64x128xf32>
    %cst_75 = arith.constant dense<0.000000e+00> : vector<64x64xf32>
    %117 = tpu.matmul %116, %10, %cst_75 {dimension_numbers = #tpu.dot_dimension_numbers<[1], [0], [0], [1], [0, 0, 1, 1], [], []>} : vector<64x128xf32>, vector<128x64xf32>, vector<64x64xf32> -> vector<64x64xf32>
    %118 = arith.addf %114, %117 : vector<64x64xf32>
    %cst_76 = arith.constant dense<0xFF800000> : vector<64xf32>
    %119 = vector.multi_reduction <maximumf>, %118, %cst_76 [1] : vector<64x64xf32> to vector<64xf32>
    %120 = vector.shape_cast %119 : vector<64xf32> to vector<64x1xf32>
    %121 = vector.broadcast %120 : vector<64x1xf32> to vector<64x64xf32>
    %122 = arith.subf %118, %121 : vector<64x64xf32>
    %123 = math.exp %122 : vector<64x64xf32>
    %cst_77 = arith.constant dense<0.000000e+00> : vector<64xf32>
    %124 = vector.multi_reduction <add>, %123, %cst_77 [1] : vector<64x64xf32> to vector<64xf32>
    %125 = vector.shape_cast %124 : vector<64xf32> to vector<64x1xf32>
    %126 = tpu.reciprocal %125 {approx = true} : vector<64x1xf32> -> vector<64x1xf32>
    %cst_78 = arith.constant dense<0.000000e+00> : vector<64x16xf32>
    %127 = tpu.matmul %123, %113, %cst_78 {dimension_numbers = #tpu.dot_dimension_numbers<[1], [0], [0], [1], [0, 0, 1, 1], [], []>} : vector<64x64xf32>, vector<64x16xf32>, vector<64x16xf32> -> vector<64x16xf32>
    %128 = vector.broadcast %126 : vector<64x1xf32> to vector<64x16xf32>
    %129 = arith.mulf %127, %128 : vector<64x16xf32>
    %c0_79 = arith.constant 0 : index
    %c80_80 = arith.constant 80 : index
    %130 = vector.load %arg11[%c0_79, %c80_80] : memref<64x128xf32, #tpu.memory_space<vmem>>, vector<64x16xf32>
    tpu.vector_store %arg11[%c0_79, %c80_80], %129 {strides = array<i32>} : memref<64x128xf32, #tpu.memory_space<vmem>>, vector<64x16xf32>,
    %c0_81 = arith.constant 0 : index
    %c96 = arith.constant 96 : index
    %131 = vector.load %arg10[%c0_81, %c96] : memref<64x384xf32, #tpu.memory_space<vmem>>, vector<64x16xf32>
    %c0_82 = arith.constant 0 : index
    %c224 = arith.constant 224 : index
    %132 = vector.load %arg10[%c0_82, %c224] : memref<64x384xf32, #tpu.memory_space<vmem>>, vector<64x16xf32>
    %c0_83 = arith.constant 0 : index
    %c352 = arith.constant 352 : index
    %133 = vector.load %arg10[%c0_83, %c352] : memref<64x384xf32, #tpu.memory_space<vmem>>, vector<64x16xf32>
    %cst_84 = arith.constant dense<0.000000e+00> : vector<64x64xf32>
    %134 = tpu.matmul %131, %132, %cst_84 {dimension_numbers = #tpu.dot_dimension_numbers<[1], [1], [0], [0], [0, 0, 1, 0], [], []>} : vector<64x16xf32>, vector<64x16xf32>, vector<64x64xf32> -> vector<64x64xf32>
    %cst_85 = arith.constant dense<0.000000e+00> : vector<64x128xf32>
    %135 = tpu.matmul %131, %8, %cst_85 {dimension_numbers = #tpu.dot_dimension_numbers<[1], [0], [0], [1], [0, 0, 1, 1], [], []>} : vector<64x16xf32>, vector<16x128xf32>, vector<64x128xf32> -> vector<64x128xf32>
    %136 = arith.mulf %135, %9 : vector<64x128xf32>
    %cst_86 = arith.constant dense<0.000000e+00> : vector<64x64xf32>
    %137 = tpu.matmul %136, %10, %cst_86 {dimension_numbers = #tpu.dot_dimension_numbers<[1], [0], [0], [1], [0, 0, 1, 1], [], []>} : vector<64x128xf32>, vector<128x64xf32>, vector<64x64xf32> -> vector<64x64xf32>
    %138 = arith.addf %134, %137 : vector<64x64xf32>
    %cst_87 = arith.constant dense<0xFF800000> : vector<64xf32>
    %139 = vector.multi_reduction <maximumf>, %138, %cst_87 [1] : vector<64x64xf32> to vector<64xf32>
    %140 = vector.shape_cast %139 : vector<64xf32> to vector<64x1xf32>
    %141 = vector.broadcast %140 : vector<64x1xf32> to vector<64x64xf32>
    %142 = arith.subf %138, %141 : vector<64x64xf32>
    %143 = math.exp %142 : vector<64x64xf32>
    %cst_88 = arith.constant dense<0.000000e+00> : vector<64xf32>
    %144 = vector.multi_reduction <add>, %143, %cst_88 [1] : vector<64x64xf32> to vector<64xf32>
    %145 = vector.shape_cast %144 : vector<64xf32> to vector<64x1xf32>
    %146 = tpu.reciprocal %145 {approx = true} : vector<64x1xf32> -> vector<64x1xf32>
    %cst_89 = arith.constant dense<0.000000e+00> : vector<64x16xf32>
    %147 = tpu.matmul %143, %133, %cst_89 {dimension_numbers = #tpu.dot_dimension_numbers<[1], [0], [0], [1], [0, 0, 1, 1], [], []>} : vector<64x64xf32>, vector<64x16xf32>, vector<64x16xf32> -> vector<64x16xf32>
    %148 = vector.broadcast %146 : vector<64x1xf32> to vector<64x16xf32>
    %149 = arith.mulf %147, %148 : vector<64x16xf32>
    %c0_90 = arith.constant 0 : index
    %c96_91 = arith.constant 96 : index
    %150 = vector.load %arg11[%c0_90, %c96_91] : memref<64x128xf32, #tpu.memory_space<vmem>>, vector<64x16xf32>
    tpu.vector_store %arg11[%c0_90, %c96_91], %149 {strides = array<i32>} : memref<64x128xf32, #tpu.memory_space<vmem>>, vector<64x16xf32>,
    %c0_92 = arith.constant 0 : index
    %c112 = arith.constant 112 : index
    %151 = vector.load %arg10[%c0_92, %c112] : memref<64x384xf32, #tpu.memory_space<vmem>>, vector<64x16xf32>
    %c0_93 = arith.constant 0 : index
    %c240 = arith.constant 240 : index
    %152 = vector.load %arg10[%c0_93, %c240] : memref<64x384xf32, #tpu.memory_space<vmem>>, vector<64x16xf32>
    %c0_94 = arith.constant 0 : index
    %c368 = arith.constant 368 : index
    %153 = vector.load %arg10[%c0_94, %c368] : memref<64x384xf32, #tpu.memory_space<vmem>>, vector<64x16xf32>
    %cst_95 = arith.constant dense<0.000000e+00> : vector<64x64xf32>
    %154 = tpu.matmul %151, %152, %cst_95 {dimension_numbers = #tpu.dot_dimension_numbers<[1], [1], [0], [0], [0, 0, 1, 0], [], []>} : vector<64x16xf32>, vector<64x16xf32>, vector<64x64xf32> -> vector<64x64xf32>
    %cst_96 = arith.constant dense<0.000000e+00> : vector<64x128xf32>
    %155 = tpu.matmul %151, %8, %cst_96 {dimension_numbers = #tpu.dot_dimension_numbers<[1], [0], [0], [1], [0, 0, 1, 1], [], []>} : vector<64x16xf32>, vector<16x128xf32>, vector<64x128xf32> -> vector<64x128xf32>
    %156 = arith.mulf %155, %9 : vector<64x128xf32>
    %cst_97 = arith.constant dense<0.000000e+00> : vector<64x64xf32>
    %157 = tpu.matmul %156, %10, %cst_97 {dimension_numbers = #tpu.dot_dimension_numbers<[1], [0], [0], [1], [0, 0, 1, 1], [], []>} : vector<64x128xf32>, vector<128x64xf32>, vector<64x64xf32> -> vector<64x64xf32>
    %158 = arith.addf %154, %157 : vector<64x64xf32>
    %cst_98 = arith.constant dense<0xFF800000> : vector<64xf32>
    %159 = vector.multi_reduction <maximumf>, %158, %cst_98 [1] : vector<64x64xf32> to vector<64xf32>
    %160 = vector.shape_cast %159 : vector<64xf32> to vector<64x1xf32>
    %161 = vector.broadcast %160 : vector<64x1xf32> to vector<64x64xf32>
    %162 = arith.subf %158, %161 : vector<64x64xf32>
    %163 = math.exp %162 : vector<64x64xf32>
    %cst_99 = arith.constant dense<0.000000e+00> : vector<64xf32>
    %164 = vector.multi_reduction <add>, %163, %cst_99 [1] : vector<64x64xf32> to vector<64xf32>
    %165 = vector.shape_cast %164 : vector<64xf32> to vector<64x1xf32>
    %166 = tpu.reciprocal %165 {approx = true} : vector<64x1xf32> -> vector<64x1xf32>
    %cst_100 = arith.constant dense<0.000000e+00> : vector<64x16xf32>
    %167 = tpu.matmul %163, %153, %cst_100 {dimension_numbers = #tpu.dot_dimension_numbers<[1], [0], [0], [1], [0, 0, 1, 1], [], []>} : vector<64x64xf32>, vector<64x16xf32>, vector<64x16xf32> -> vector<64x16xf32>
    %168 = vector.broadcast %166 : vector<64x1xf32> to vector<64x16xf32>
    %169 = arith.mulf %167, %168 : vector<64x16xf32>
    %c0_101 = arith.constant 0 : index
    %c112_102 = arith.constant 112 : index
    %170 = vector.load %arg11[%c0_101, %c112_102] : memref<64x128xf32, #tpu.memory_space<vmem>>, vector<64x16xf32>
    tpu.vector_store %arg11[%c0_101, %c112_102], %169 {strides = array<i32>} : memref<64x128xf32, #tpu.memory_space<vmem>>, vector<64x16xf32>,
    %c0_103 = arith.constant 0 : index
    %c0_104 = arith.constant 0 : index
    %171 = vector.load %arg11[%c0_103, %c0_104] : memref<64x128xf32, #tpu.memory_space<vmem>>, vector<64x128xf32>
    %c0_105 = arith.constant 0 : index
    %c0_106 = arith.constant 0 : index
    %172 = vector.load %arg7[%c0_105, %c0_106] : memref<128x128xf32, #tpu.memory_space<vmem>>, vector<128x128xf32>
    %cst_107 = arith.constant dense<0.000000e+00> : vector<64x128xf32>
    %173 = tpu.matmul %171, %172, %cst_107 {dimension_numbers = #tpu.dot_dimension_numbers<[1], [0], [0], [1], [0, 0, 1, 1], [], []>} : vector<64x128xf32>, vector<128x128xf32>, vector<64x128xf32> -> vector<64x128xf32>
    %c0_108 = arith.constant 0 : index
    %c0_109 = arith.constant 0 : index
    %174 = vector.load %arg8[%c0_108, %c0_109] : memref<1x128xf32, #tpu.memory_space<vmem>>, vector<1x128xf32>
    %175 = vector.broadcast %174 : vector<1x128xf32> to vector<64x128xf32>
    %176 = arith.addf %173, %175 : vector<64x128xf32>
    %c0_110 = arith.constant 0 : index
    %c0_111 = arith.constant 0 : index
    %c0_112 = arith.constant 0 : index
    %177 = vector.load %arg9[%c0_110, %c0_111, %c0_112] : memref<1x64x128xf32, #tpu.memory_space<vmem>>, vector<1x64x128xf32>
    %178 = vector.shape_cast %177 : vector<1x64x128xf32> to vector<64x128xf32>
    %179 = vector.shape_cast %176 : vector<64x128xf32> to vector<1x64x128xf32>
    tpu.vector_store %arg9[%c0_110, %c0_111, %c0_112], %179 {strides = array<i32>} : memref<1x64x128xf32, #tpu.memory_space<vmem>>, vector<1x64x128xf32>,
    return
  }
  func.func @transform_0(%arg0: i32) -> (i32, i32, i32) {
    %c0_i32 = arith.constant 0 : i32
    %c0_i32_0 = arith.constant 0 : i32
    %c0_i32_1 = arith.constant 0 : i32
    return %arg0, %c0_i32, %c0_i32_0 : i32, i32, i32
  }
  func.func @transform_1(%arg0: i32) -> (i32, i32) {
    %c0_i32 = arith.constant 0 : i32
    %c0_i32_0 = arith.constant 0 : i32
    %c0_i32_1 = arith.constant 0 : i32
    return %c0_i32, %c0_i32_0 : i32, i32
  }
  func.func @transform_2(%arg0: i32) -> (i32, i32) {
    %c0_i32 = arith.constant 0 : i32
    %c0_i32_0 = arith.constant 0 : i32
    %c0_i32_1 = arith.constant 0 : i32
    return %c0_i32, %c0_i32_0 : i32, i32
  }
  func.func @transform_3(%arg0: i32) -> (i32, i32) {
    %c0_i32 = arith.constant 0 : i32
    %c0_i32_0 = arith.constant 0 : i32
    %c0_i32_1 = arith.constant 0 : i32
    return %c0_i32, %c0_i32_0 : i32, i32
  }
  func.func @transform_4(%arg0: i32) -> (i32, i32) {
    %c0_i32 = arith.constant 0 : i32
    %c0_i32_0 = arith.constant 0 : i32
    %c0_i32_1 = arith.constant 0 : i32
    return %c0_i32, %c0_i32_0 : i32, i32
  }
  func.func @transform_5(%arg0: i32) -> (i32, i32) {
    %c0_i32 = arith.constant 0 : i32
    %c0_i32_0 = arith.constant 0 : i32
    %c0_i32_1 = arith.constant 0 : i32
    return %c0_i32, %c0_i32_0 : i32, i32
  }
  func.func @transform_6(%arg0: i32) -> (i32, i32) {
    %c0_i32 = arith.constant 0 : i32
    %c0_i32_0 = arith.constant 0 : i32
    %c0_i32_1 = arith.constant 0 : i32
    return %c0_i32, %c0_i32_0 : i32, i32
  }
  func.func @transform_7(%arg0: i32) -> (i32, i32) {
    %c0_i32 = arith.constant 0 : i32
    %c0_i32_0 = arith.constant 0 : i32
    %c0_i32_1 = arith.constant 0 : i32
    return %c0_i32, %c0_i32_0 : i32, i32
  }
  func.func @transform_8(%arg0: i32) -> (i32, i32, i32) {
    %c0_i32 = arith.constant 0 : i32
    %c0_i32_0 = arith.constant 0 : i32
    %c0_i32_1 = arith.constant 0 : i32
    return %arg0, %c0_i32, %c0_i32_0 : i32, i32, i32
  }
}

</mosaic_0001>

<bundles_post_ra>
// kernel: tpu_custom_call.1
= control target key start
LH: loop header
LB: loop body
LE: loop exit
PB: predicated region body
PF: predicated region fallthrough
CT: control target
= control target key end

     0   :  { %s12559_s0 = inlined_call_operand.vmem [shape: f32[2,64,128], index: 0, kind: input, shape index: {}]   ;;  %s12560_s1 = inlined_call_operand.hbm [shape: f32[128,384], index: 1, kind: input, shape index: {}]   ;;  %s12561_s2 = inlined_call_operand.vmem [shape: f32[1,384], index: 2, kind: input, shape index: {}]   ;;  %s12562_s3 = inlined_call_operand.hbm [shape: f32[16,128], index: 3, kind: input, shape index: {}]   ;;  %s12563_s4 = inlined_call_operand.vmem [shape: f32[64,128], index: 4, kind: input, shape index: {}]   ;;  %s12564_s5 = inlined_call_operand.vmem [shape: f32[128,64], index: 5, kind: input, shape index: {}]   ;;  %s12565_s6 = inlined_call_operand.hbm [shape: f32[128,128], index: 6, kind: input, shape index: {}]   ;;  %s12566_s7 = inlined_call_operand.vmem [shape: f32[1,128], index: 7, kind: input, shape index: {}]   ;;  %s12567_s8 = inlined_call_operand.hbm [shape: f32[2,64,128], index: 8, kind: output, shape index: {}]  }
   0x1   :  { %12622 = sst [smem:[#allocation102_spill]] %s12562_s3 }
   0x2   :  { %13 = vsyncpa [#allocation5], 0 }
   0x3   :  { %14 = vsyncpa [#allocation8], 0 }
   0x4   :  { %15 = vsyncpa [#allocation6], 0 }
   0x5   :  { %17 = vsyncpa [#allocation6 + $0x1], 0  ;;  %s10073_s27 = smov 0   ;;  %s10075_s28 = smov 0  }
   0x6   :  { %s10077_s29 = smov 0   ;;  %s10079_s30 = smov 0  }
   0x7 LB: > { %12623 = sst [smem:[#allocation14_spill]] %s10004_s29  ;;  %s10094_s9 = sadd.s32 4294967295, %s10008_s30   ;;  %s10008_s30 = sphi %s10079_s30, %s12825_s30   ;;  %s10004_s29 = sphi %s10077_s29, %s12830_s29   ;;  %s10000_s28 = sphi %s10075_s28, %s12829_s28   ;;  %s9996_s27 = sphi %s10073_s27, %s12828_s27  }
   0x8   : > { %s6581_s10 = sadd.s32 4294967294, %s10008_s30   ;;  %s10098_s11 = sadd.s32 1, %s10008_s30  }
   0x9   : > { %12624 = sst [smem:[#allocation15_spill]] %s10098_s11  ;;  %s203_s12 = sadd.s32 1, %s10004_s29 }
   0xa   : > { %s200_s13 = ssub.s32 %s10008_s30, %s10098_s11  ;;  %p213_p0 = scmp.ne.s32.totalorder %s10004_s29, %s10000_s28 }
   0xb   : > { %p201_p1 = scmp.eq.s32.totalorder %s200_s13, 0  ;;  %p214_p2 = scmp.eq.s32.totalorder %s10094_s9, 1 }
   0xc   : > { %p219_p3 = scmp.ne.s32.totalorder %s10000_s28, %s9996_s27  ;;  %p220_p4 = scmp.eq.s32.totalorder %s6581_s10, 1 }
   0xd   : > { %s10109_s14 = scalar_select %p201_p1, %s10004_s29, %s203_s12  }
   0xe   : > { %p10111_p5 = por %p214_p2, %p213_p0  ;;  %p10115_p6 = por %p220_p4, %p219_p3 }
   0xf   : > { %12625 = sst [smem:[#allocation16_spill]] %s10109_s14  ;;  %p6582_p7 = scmp.ge.s32.totalorder %s10008_s30, 1 }
  0x10   : > { %s12626_s15 = scalar_select %p10111_p5, 1, 0 }
  0x11   : > { %s12627_s16 = scalar_select %p10115_p6, 1, 0 }
  0x12   : > { %p227_p8 = scmp.lt.s32.totalorder %s10008_s30, 3  ;;  %p12568_p9 = scmp.eq.s32.totalorder %s10094_s9, 0 }
  0x13   : > { %s10010_s18 = smov [#allocation7]   ;;  %s10011_s21 = smov [#allocation4]  }
  0x14   : > { %p10122_p10 = pnand %p6582_p7, %p227_p8  ;;  %s255_s19 = sshll.u32 %s10010_s18, 4  ;;  %s256_s19 = int_to_ptr.vmem [resolvable:$true] %s255_s19 }
  0x15   : > { %s239_s22 = sshll.u32 %s10011_s21, 4  ;;  %s12630_s3 = sld [smem:[#allocation102_spill]]  ;;  %s10134_s22 = int_to_ptr.vmem [resolvable:$true] %s239_s22 }
  0x16   : > { %s12628_s17 = scalar_select %p10122_p10, 1, 0 }
  0x17   : > { %p9232_p11 = pneg %p10122_p10 }
  0x19   : > { %p10130_p12 = pnand %p12568_p9, %p9232_p11 }
  0x1b   : > { %s9854_s25 = scalar_lea.hbm %s12630_s3, 256  ;;  %p10144_p0 = pneg %p10130_p12 }
  0x1c   : > { %p9855_p13 = scmp.ne.s32.totalorder %s12630_s3, %s9854_s25  ;;  %p9861_p3 = scmp.lt.u32.totalorder %s9854_s25, %s12630_s3 }
  0x1e   : > { %p9857_p1 = pnand %p10144_p0, %p9855_p13 }
  0x20   : > { %p9858_p2 = pneg %p9857_p1 }
  0x22   : > { %p9863_p4 = pnand %p9861_p3, %p9858_p2 }
  0x24   : > { %9866 = shalt.err (!%p9863_p4)
}
  0x25   : > { %s9867_s21 = scalar_lea.vmem %s256_s19, 256  ;;  %p9875_p9 = scmp.lt.s32.totalorder %s256_s19, %s256_s19 }
  0x26   : > { %p9868_p7 = scmp.ne.s32.totalorder %s256_s19, %s9867_s21  ;;  %p9876_p6 = scmp.lt.s32.totalorder %s9867_s21, %s9867_s21 }
  0x28   : > { %p9870_p8 = pnand %p9868_p7, %p10144_p0  ;;  %p9877_p5 = por %p9876_p6, %p9875_p9 }
  0x2a   : > { %p9871_p11 = pneg %p9870_p8 }
  0x2c   : > { %p9878_p10 = pnand %p9877_p5, %p9871_p11 }
  0x2e   : > { %9881 = shalt.err (!%p9878_p10)
}
  0x2f   : > { %s12574_s23 = smov 128   ;;  %s12575_s24 = smov 8  }
  0x30   : > { %9238 = dma.hbm_to_vmem [thread:$0]  (!%p10130_p12), %s12630_s3, 256, %s256_s19, [#allocation8], %s12574_s23, %s12574_s23, %s12575_s24  }
  0x31   : > { %s9882_s18 = scalar_lea.hbm %s12560_s1, 6144 }
  0x32   : > { %p9883_p5 = scmp.ne.s32.totalorder %s12560_s1, %s9882_s18  ;;  %p9889_p10 = scmp.lt.u32.totalorder %s9882_s18, %s12560_s1 }
  0x34   : > { %p9885_p6 = pnand %p9883_p5, %p10144_p0 }
  0x36   : > { %p9886_p9 = pneg %p9885_p6 }
  0x38   : > { %p9891_p13 = pnand %p9889_p10, %p9886_p9 }
  0x3a   : > { %9894 = shalt.err (!%p9891_p13)
}
  0x3b   : > { %s9895_s19 = scalar_lea.vmem %s10134_s22, 6144  ;;  %p9903_p4 = scmp.lt.s32.totalorder %s10134_s22, %s10134_s22 }
  0x3c   : > { %p9896_p1 = scmp.ne.s32.totalorder %s10134_s22, %s9895_s19  ;;  %p9904_p7 = scmp.lt.s32.totalorder %s9895_s19, %s9895_s19 }
  0x3e   : > { %p9898_p2 = pnand %p9896_p1, %p10144_p0  ;;  %p9905_p8 = por %p9904_p7, %p9903_p4 }
  0x40   : > { %p9899_p3 = pneg %p9898_p2 }
  0x42   : > { %p9906_p11 = pnand %p9905_p8, %p9899_p3 }
  0x44   : > { %9909 = shalt.err (!%p9906_p11)
}
  0x45   : > { %s10014_s14 = smov 384   ;;  %s10015_s29 = smov 24  }
  0x46   : > { %9235 = dma.hbm_to_vmem [thread:$0]  (!%p10130_p12), %s12560_s1, 6144, %s10134_s22, [#allocation5], %s10014_s14, %s10014_s14, %s10015_s29  }
  0x47   : > { %s10016_s26 = smov [#allocation9]   ;;  %s9910_s21 = scalar_lea.hbm %s12565_s6, 2048 }
  0x48   : > { %s274_s10 = sshll.u32 %s10016_s26, 4  ;;  %p9911_p5 = scmp.ne.s32.totalorder %s12565_s6, %s9910_s21  ;;  %s275_s10 = int_to_ptr.vmem [resolvable:$true] %s274_s10 }
  0x49   : > { %p9917_p10 = scmp.lt.u32.totalorder %s9910_s21, %s12565_s6 }
  0x4a   : > { %p9913_p6 = pnand %p9911_p5, %p10144_p0 }
  0x4c   : > { %p9914_p9 = pneg %p9913_p6 }
  0x4e   : > { %p9919_p13 = pnand %p9917_p10, %p9914_p9 }
  0x50   : > { %9922 = shalt.err (!%p9919_p13)
}
  0x51   : > { %s9923_s22 = scalar_lea.vmem %s275_s10, 2048  ;;  %p9931_p4 = scmp.lt.s32.totalorder %s275_s10, %s275_s10 }
  0x52   : > { %p9924_p1 = scmp.ne.s32.totalorder %s275_s10, %s9923_s22  ;;  %p9932_p7 = scmp.lt.s32.totalorder %s9923_s22, %s9923_s22 }
  0x54   : > { %p9926_p2 = pnand %p9924_p1, %p10144_p0  ;;  %p9933_p8 = por %p9932_p7, %p9931_p4 }
  0x56   : > { %p9927_p3 = pneg %p9926_p2 }
  0x58   : > { %p9934_p11 = pnand %p9933_p8, %p9927_p3 }
  0x5a   : > { %9937 = shalt.err (!%p9934_p11)
}
  0x5b   : > { %s12632_s23 = smov 8   ;;  %s12633_s14 = smov 128  }
  0x5c   : > { %9241 = dma.hbm_to_vmem [thread:$0]  (!%p10130_p12), %s12565_s6, 2048, %s275_s10, [#allocation8], %s12633_s14, %s12633_s14, %s12632_s23  }
  0x5d   : > { %p12634_p5 = scmp.ne.s32.totalorder %s12628_s17, 0 }
  0x5f   : > { %301 = sbr.rel (%p12634_p5) target bundleno = 6210 (0x1842), region = 52 }
  0x66   : > { %p12635_p0 = scmp.eq.s32.totalorder %s10094_s9, 0 }
  0x68   : > { %9983 = dma.done.wait (%p12635_p0), [#allocation5], 6144   ;;  %p12636_p6 = pmov %p12635_p0 }
  0x69   : > { %p12637_p9 = pmov %p12635_p0 }
  0x6a   : > { %9985 = vsyncadd (%p12636_p6), [#allocation5], 4294961152 }
  0x6b   : > { %9987 = dma.done.wait (%p12637_p9), [#allocation8], 2304   ;;  %p12638_p10 = pmov %p12635_p0 }
  0x6c   : > { %v10017_v0 = vmov 0.0   ;;  %p343_p12 = scmp.lt.s32.totalorder %s10094_s9, 1  ;;  %v357_v1 = vld [vmem:[#allocation4 + $0x8] sm:$0xff]  ;;  %v360_v2 = vld [vmem:[#allocation4 + $0x20] sm:$0xff]  ;;  %v359_v5 = vld [vmem:[#allocation4 + $0x18] sm:$0xff]  ;;  %vm713_vm0 = vcmask 130048  }
  0x6d   : > { %9989 = vsyncadd (%p12638_p10), [#allocation8], 4294964992  ;;  %485 = vmatprep.mubr.f32.mxu0 %v10017_v0  ;;  %v356_v3 = vld [vmem:[#allocation4] sm:$0xff]  ;;  %v8450_v4 = vpack.c.bf16 %v360_v2, %v357_v1  ;;  %v363_v6 = vld [vmem:[#allocation4 + $0x38] sm:$0xff]  ;;  %vm1085_vm2 = vcmask 523264   ;;  %s10018_s25 = smov 112  }
  0x6e   : > { %s344_s17 = scalar_select %p343_p12, %s10094_s9, 1  ;;  %v366_v7 = vld [vmem:[#allocation4 + $0x50] sm:$0xff]  ;;  %v8452_v8 = vpack.c.bf16 %v359_v5, %v356_v3  ;;  %v365_v11 = vld [vmem:[#allocation4 + $0x48] sm:$0xff]  ;;  %v372_v13 = vld [vmem:[#allocation4 + $0x80] sm:$0xff]  ;;  %vm2019_vm3 = vcmask 261248   ;;  %vm2736_vm4 = vcmask 392448  }
  0x6f   : > { %v8454_v9 = vpack.c.bf16 %v366_v7, %v363_v6  ;;  %v362_v10 = vld [vmem:[#allocation4 + $0x30] sm:$0xff]  ;;  %v369_v12 = vld [vmem:[#allocation4 + $0x68] sm:$0xff]  ;;  %8451 = vmatprep.subr.bf16.mxu0 %v8450_v4  ;;  %v368_v16 = vld [vmem:[#allocation4 + $0x60] sm:$0xff]  ;;  %s10019_s26 = smov 96   ;;  %s10020_s10 = smov 80   ;;  %vm3453_vm5 = vcmask 523648  }
  0x70   : > { %8453 = vmatpush1.bf16.msra.mxu0 %v8452_v8  ;;  %v8456_v14 = vpack.c.bf16 %v365_v11, %v362_v10  ;;  %s6856_s20 = sshll.u32 %s344_s17, 6  ;;  %v8458_v15 = vpack.c.bf16 %v372_v13, %v369_v12  ;;  %v371_v17 = vld [vmem:[#allocation4 + $0x78] sm:$0xff]  ;;  %v378_v19 = vld [vmem:[#allocation4 + $0xb0] sm:$0xff]  ;;  %v377_v23 = vld [vmem:[#allocation4 + $0xa8] sm:$0xff]  ;;  %s10021_s21 = smov 64   ;;  %vm4170_vm6 = vcmask 654848  }
  0x71   : > { %8455 = vmatprep.subr.bf16.mxu0 %v8454_v9  ;;  %v375_v18 = vld [vmem:[#allocation4 + $0x98] sm:$0xff]  ;;  %s10223_s11 = scalar_lea.vmem %s12559_s0, %s6856_s20  ;;  %v8460_v20 = vpack.c.bf16 %v371_v17, %v368_v16  ;;  %v374_v22 = vld [vmem:[#allocation4 + $0x90] sm:$0xff]  ;;  %v381_v24 = vld [vmem:[#allocation4 + $0xc8] sm:$0xff]  ;;  %s10022_s19 = smov 48   ;;  %vm4887_vm7 = vcmask 786048   ;;  %vm5604_vm8 = vcmask 917248  }
  0x72   : > { %v8462_v21 = vpack.c.bf16 %v378_v19, %v375_v18  ;;  %v384_v25 = vld [vmem:[#allocation4 + $0xe0] sm:$0xff]  ;;  %v8464_v27 = vpack.c.bf16 %v377_v23, %v374_v22  ;;  %v383_v29 = vld [vmem:[#allocation4 + $0xd8] sm:$0xff]  ;;  %v358_v32 = vld [vmem:[#allocation4 + $0x10] sm:$0xff]  ;;  %s10023_s22 = smov 32   ;;  %s10024_s17 = smov 16   ;;  %vm6321_vm9 = vcmask 1048448  }
  0x73   : > { %v10226_v26 = vld [vmem:[%s10223_s11] sm:$0xff]  ;;  %v8466_v30 = vpack.c.bf16 %v384_v25, %v381_v24  ;;  %v387_v31 = vld [vmem:[#allocation4 + $0xf8] sm:$0xff]  ;;  %v361_v33 = vld [vmem:[#allocation4 + $0x28] sm:$0xff]  ;;  %s6857_s20 = sshll.u32 %s10094_s9, 10  ;;  %p12823_p1 = scmp.ne.s32.totalorder %s12626_s15, 0 }
  0x74   : > { %8457 = vmatpush1.bf16.msra.mxu0 %v8456_v14  ;;  %7466 = vmatprep.mubr.f32.mxu1 %v10226_v26  ;;  %v380_v28 = vld [vmem:[#allocation4 + $0xc0] sm:$0xff]  ;;  %v390_v34 = vld [vmem:[#allocation4 + $0x110] sm:$0xff]  ;;  %v8482_v35 = vpack.c.bf16 %v361_v33, %v358_v32  ;;  %v367_v37 = vld [vmem:[#allocation4 + $0x58] sm:$0xff]  ;;  %s12514_s13 = scalar_lea.hbm %s12567_s8, %s6857_s20  ;;  %s10025_s23 = smov [#allocation10]  }
  0x75   : > { %8459 = vmatprep.subr.bf16.mxu0 %v8458_v15  ;;  %v364_v36 = vld [vmem:[#allocation4 + $0x40] sm:$0xff]  ;;  %v370_v39 = vld [vmem:[#allocation4 + $0x70] sm:$0xff]  ;;  %v373_v40 = vld [vmem:[#allocation4 + $0x88] sm:$0xff]  ;;  %v8468_v41 = vpack.c.bf16 %v383_v29, %v380_v28  ;;  %v8470_v42 = vpack.c.bf16 %v390_v34, %v387_v31 }
  0x76   : > { %v8486_v38 = vpack.c.bf16 %v367_v37, %v364_v36  ;;  %8483 = vmatprep.subr.bf16.mxu1 %v8482_v35  ;;  %v386_v43 = vld [vmem:[#allocation4 + $0xf0] sm:$0xff]  ;;  %v389_v44 = vld [vmem:[#allocation4 + $0x108] sm:$0xff]  ;;  %v396_v46 = vld [vmem:[#allocation4 + $0x140] sm:$0xff]  ;;  %v8490_v47 = vpack.c.bf16 %v373_v40, %v370_v39 }
  0x77   : > { %8485 = vmatpush3.bf16.msra.mxu1 %v8482_v35  ;;  %v393_v45 = vld [vmem:[#allocation4 + $0x128] sm:$0xff]  ;;  %v376_v48 = vld [vmem:[#allocation4 + $0xa0] sm:$0xff]  ;;  %v379_v49 = vld [vmem:[#allocation4 + $0xb8] sm:$0xff]  ;;  %v8472_v50 = vpack.c.bf16 %v389_v44, %v386_v43  ;;  %v406_v44 = vlaneseq }
  0x78   : > { %8461 = vmatpush1.bf16.msra.mxu0 %v8460_v20  ;;  %8487 = vmatprep.subr.bf16.mxu1 %v8486_v38  ;;  %v8474_v51 = vpack.c.bf16 %v396_v46, %v393_v45  ;;  %v392_v52 = vld [vmem:[#allocation4 + $0x120] sm:$0xff]  ;;  %v395_v53 = vld [vmem:[#allocation4 + $0x138] sm:$0xff]  ;;  %v402_v55 = vld [vmem:[#allocation4 + $0x170] sm:$0xff]  ;;  %v8494_v56 = vpack.c.bf16 %v379_v49, %v376_v48 }
  0x79   : > { %8463 = vmatprep.subr.bf16.mxu0 %v8462_v21  ;;  %v399_v54 = vld [vmem:[#allocation4 + $0x158] sm:$0xff]  ;;  %v382_v57 = vld [vmem:[#allocation4 + $0xd0] sm:$0xff]  ;;  %v385_v58 = vld [vmem:[#allocation4 + $0xe8] sm:$0xff]  ;;  %v8476_v59 = vpack.c.bf16 %v395_v53, %v392_v52  ;;  %v407_v45 = vshrl.u32 %v406_v44, 7 }
  0x7a   : > { %v8478_v60 = vpack.c.bf16 %v402_v55, %v399_v54  ;;  %v398_v61 = vld [vmem:[#allocation4 + $0x150] sm:$0xff]  ;;  %v401_v62 = vld [vmem:[#allocation4 + $0x168] sm:$0xff]  ;;  %v8498_v63 = vpack.c.bf16 %v385_v58, %v382_v57  ;;  %v673_v1 = vld [vmem:[%s12564_s5] sm:$0xff] }
  0x7b   : > { %8489 = vmatpush3.bf16.msra.mxu1 %v8486_v38  ;;  %v674_v2 = vld [vmem:[%s12564_s5 + $0x8] sm:$0xff]  ;;  %v388_v3 = vld [vmem:[#allocation4 + $0x100] sm:$0xff]  ;;  %v391_v4 = vld [vmem:[#allocation4 + $0x118] sm:$0xff]  ;;  %v8480_v5 = vpack.c.bf16 %v401_v62, %v398_v61  ;;  %v408_v46 = vsub.s32 0, %v407_v45  ;;  %v412_v49 = vsub.s32 1, %v407_v45 }
  0x7c   : > { %8465 = vmatpush1.bf16.msra.mxu0 %v8464_v27  ;;  %8491 = vmatprep.subr.bf16.mxu1 %v8490_v47  ;;  %v10235_v6 = vpack.c.bf16 %v674_v2, %v673_v1  ;;  %v8502_v7 = vpack.c.bf16 %v391_v4, %v388_v3  ;;  %v675_v8 = vld [vmem:[%s12564_s5 + $0x10] sm:$0xff]  ;;  %v676_v9 = vld [vmem:[%s12564_s5 + $0x18] sm:$0xff]  ;;  %v397_v11 = vld [vmem:[#allocation4 + $0x148] sm:$0xff] }
  0x7d   : > { %8467 = vmatprep.subr.bf16.mxu0 %v8466_v30  ;;  %v394_v10 = vld [vmem:[#allocation4 + $0x130] sm:$0xff]  ;;  %v10244_v12 = vpack.c.bf16 %v676_v9, %v675_v8  ;;  %v677_v14 = vld [vmem:[%s12564_s5 + $0x20] sm:$0xff]  ;;  %v678_v15 = vld [vmem:[%s12564_s5 + $0x28] sm:$0xff] }
  0x7e   : > { %v8506_v13 = vpack.c.bf16 %v397_v11, %v394_v10  ;;  %v400_v16 = vld [vmem:[#allocation4 + $0x160] sm:$0xff]  ;;  %v403_v17 = vld [vmem:[#allocation4 + $0x178] sm:$0xff]  ;;  %v349_v18 = vld [vmem:[%s10223_s11 + $0x8] sm:$0xff]  ;;  %v10257_v19 = vpack.c.bf16 %v678_v15, %v677_v14 }
  0x7f   : > { %8493 = vmatpush3.bf16.msra.mxu1 %v8490_v47  ;;  %v8510_v20 = vpack.c.bf16 %v403_v17, %v400_v16  ;;  %v679_v21 = vld [vmem:[%s12564_s5 + $0x30] sm:$0xff]  ;;  %v680_v22 = vld [vmem:[%s12564_s5 + $0x38] sm:$0xff]  ;;  %v663_v23 = vld [vmem:[#allocation7] sm:$0xff] }
  0x80   : > { %8469 = vmatpush1.bf16.msra.mxu0 %v8468_v41  ;;  %8495 = vmatprep.subr.bf16.mxu1 %v8494_v56  ;;  %v664_v24 = vld [vmem:[#allocation7 + $0x8] sm:$0xff]  ;;  %v350_v25 = vld [vmem:[%s10223_s11 + $0x10] sm:$0xff]  ;;  %v351_v28 = vld [vmem:[%s10223_s11 + $0x18] sm:$0xff] }
  0x81   : > { %8471 = vmatprep.subr.bf16.mxu0 %v8470_v42  ;;  %v10271_v27 = vpack.c.bf16 %v664_v24, %v663_v23  ;;  %v681_v29 = vld [vmem:[%s12564_s5 + $0x40] sm:$0xff]  ;;  %v682_v30 = vld [vmem:[%s12564_s5 + $0x48] sm:$0xff]  ;;  %v354_v34 = vld [vmem:[%s10223_s11 + $0x30] sm:$0xff] }
  0x82   : > { %v10284_v31 = vpack.c.bf16 %v682_v30, %v681_v29  ;;  %v352_v32 = vld [vmem:[%s10223_s11 + $0x20] sm:$0xff]  ;;  %v353_v33 = vld [vmem:[%s10223_s11 + $0x28] sm:$0xff]  ;;  %v355_v35 = vld [vmem:[%s10223_s11 + $0x38] sm:$0xff]  ;;  %s9942_s11 = sshll.u32 %s10025_s23, 4  ;;  %s9943_s11 = int_to_ptr.vmem [resolvable:$false] %s9942_s11 }
  0x83   : > { %8497 = vmatpush3.bf16.msra.mxu1 %v8494_v56  ;;  %v683_v36 = vld [vmem:[%s12564_s5 + $0x50] sm:$0xff]  ;;  %v684_v37 = vld [vmem:[%s12564_s5 + $0x58] sm:$0xff]  ;;  %v686_v39 = vld [vmem:[%s12564_s5 + $0x68] sm:$0xff]  ;;  %s9944_s14 = scalar_lea.vmem %s9943_s11, 2048 }
  0x84   : > { %8473 = vmatpush1.bf16.msra.mxu0 %v8472_v50  ;;  %8499 = vmatprep.subr.bf16.mxu1 %v8498_v63  ;;  %v10304_v38 = vpack.c.bf16 %v684_v37, %v683_v36  ;;  %v687_v41 = vld [vmem:[%s12564_s5 + $0x70] sm:$0xff]  ;;  %v688_v42 = vld [vmem:[%s12564_s5 + $0x78] sm:$0xff]  ;;  %v404_v47 = vld [vmem:[%s12561_s2] sm:$0x7] }
  0x85   : > { %8475 = vmatprep.subr.bf16.mxu0 %v8474_v51  ;;  %v10324_v43 = vpack.c.bf16 %v688_v42, %v687_v41  ;;  %v10331_v48 = vrot.slane %v404_v47, %v408_v46  ;;  %v10336_v53 = vrot.slane %v404_v47, %v412_v49  ;;  %vm10349_vm1 = vmpackc.low %vm713_vm0, %vm713_vm0 }
  0x87   : > { %8501 = vmatpush3.bf16.msra.mxu1 %v8498_v63 }
  0x88   : > { %8477 = vmatpush1.bf16.msra.mxu0 %v8476_v59  ;;  %8503 = vmatprep.subr.bf16.mxu1 %v8502_v7  ;;  %v416_v59 = vsub.s32 2, %v407_v45 }
  0x89   : > { %8479 = vmatprep.subr.bf16.mxu0 %v8478_v60 }
  0x8a   : > { %v417_v4 = vrot.slane %v404_v47, %v416_v59 }
  0x8b   : > { %8505 = vmatpush3.bf16.msra.mxu1 %v8502_v7 }
  0x8c   : > { %8481 = vmatpush1.bf16.msra.mxu0 %v8480_v5  ;;  %8507 = vmatprep.subr.bf16.mxu1 %v8506_v13 }
  0x8d   : > { %8519 = vmatprep.subr.bf16.mxu0 %v10235_v6 }
  0x8f   : > { %486 = vmatmul.mubr.f32.vlgmr.msra.gmra.mrb[0].mxu0 %v10226_v26  ;;  %8509 = vmatpush3.bf16.msra.mxu1 %v8506_v13  ;;  %v10269_v26 = vpack.c.bf16 %v680_v22, %v679_v21 }
  0x90   : > { %491 = vmatprep.mubr.f32.mxu0 %v10017_v0  ;;  %8521 = vmatpush3.bf16.msra.mxu0 %v10235_v6 }
  0x91   : > { %8523 = vmatprep.subr.bf16.mxu0 %v10244_v12  ;;  %8511 = vmatprep.subr.bf16.mxu1 %v8510_v20 }
  0x93   : > { %492 = vmatmul.mubr.f32.gmra.mrb[2].mxu0 %v349_v18  ;;  %8513 = vmatpush3.bf16.msra.mxu1 %v8510_v20 }
  0x94   : > { %497 = vmatprep.mubr.f32.mxu0 %v10017_v0  ;;  %8525 = vmatpush3.bf16.msra.mxu0 %v10244_v12 }
  0x95   : > { %8527 = vmatprep.subr.bf16.mxu0 %v10257_v19  ;;  %8515 = vmatprep.subr.bf16.mxu1 %v10271_v27 }
  0x96   : > { %7467 = vmatmul.mubr.f32.vlgmr.msra.gmra.mrb[0].mxu1 %v349_v18 }
  0x97   : > { %498 = vmatmul.mubr.f32.gmra.mrb[4].mxu0 %v350_v25  ;;  %7469 = vmatprep.mubr.f32.mxu1 %v350_v25 }
  0x98   : > { %503 = vmatprep.mubr.f32.mxu0 %v10017_v0  ;;  %8529 = vmatpush3.bf16.msra.mxu0 %v10257_v19 }
  0x99   : > { %8531 = vmatprep.subr.bf16.mxu0 %v10269_v26  ;;  %8517 = vmatpush3.bf16.msra.mxu1 %v10271_v27 }
  0x9a   : > { %7470 = vmatmul.mubr.f32.gmra.mrb[2].mxu1 %v351_v28 }
  0x9b   : > { %504 = vmatmul.mubr.f32.gmra.mrb[6].mxu0 %v351_v28  ;;  %7472 = vmatprep.mubr.f32.mxu1 %v352_v32 }
  0x9c   : > { %509 = vmatprep.mubr.f32.mxu0 %v10017_v0  ;;  %8533 = vmatpush3.bf16.msra.mxu0 %v10269_v26 }
  0x9d   : > { %8535 = vmatprep.subr.bf16.mxu0 %v10284_v31 }
  0x9e   : > { %7473 = vmatmul.mubr.f32.gmra.mrb[4].mxu1 %v353_v33 }
  0x9f   : > { %510 = vmatmul.mubr.f32.gmra.mrb[8].mxu0 %v352_v32  ;;  %7475 = vmatprep.mubr.f32.mxu1 %v354_v34 }
  0xa0   : > { %515 = vmatprep.mubr.f32.mxu0 %v10017_v0  ;;  %8537 = vmatpush3.bf16.msra.mxu0 %v10284_v31 }
  0xa1   : > { %8539 = vmatprep.subr.bf16.mxu0 %v10304_v38 }
  0xa2   : > { %7476 = vmatmul.mubr.f32.gmra.mrb[6].mxu1 %v355_v35 }
  0xa3   : > { %516 = vmatmul.mubr.f32.gmra.mrb[10].mxu0 %v353_v33 }
  0xa4   : > { %521 = vmatprep.mubr.f32.mxu0 %v10017_v0  ;;  %8541 = vmatpush3.bf16.msra.mxu0 %v10304_v38 }
  0xa7   : > { %522 = vmatmul.mubr.f32.gmra.mrb[12].mxu0 %v354_v34 }
  0xa8   : > { %527 = vmatprep.mubr.f32.mxu0 %v10017_v0  ;;  %v685_v0 = vld [vmem:[%s12564_s5 + $0x60] sm:$0xff] }
  0xa9   : > { %v10314_v40 = vpack.c.bf16 %v686_v39, %v685_v0 }
  0xab   : > { %528 = vmatmul.mubr.f32.gmra.mrb[14].mxu0 %v355_v35  ;;  %8543 = vmatprep.subr.bf16.mxu0 %v10314_v40 }
  0xac   : > { %8545 = vmatpush3.bf16.msra.mxu0 %v10314_v40 }
  0xad   : > { %8547 = vmatprep.subr.bf16.mxu0 %v10324_v43 }
  0xb0   : > { %8549 = vmatpush3.bf16.msra.mxu0 %v10324_v43 }
 0x162   : > { %v487_v50 = vpop.f32.mrb[0].mxu0 }
 0x163   : > { %v10334_v51 = vadd.f32 %v487_v50, %v10331_v48  ;;  %v489_v52 = vpop.f32.mrb[1].mxu0 }
 0x164   : > { %v490_v57 = vadd.f32 %v489_v52, %v10336_v53 }
 0x165   : > { %7482 = vmatprep.mubr.msk.f32.mxu1 %vm713_vm0, %v10334_v51 }
 0x166   : > { %v493_v54 = vpop.f32.mrb[2].mxu0 }
 0x167   : > { %v10341_v55 = vadd.f32 %v493_v54, %v10331_v48  ;;  %v495_v56 = vpop.f32.mrb[3].mxu0 }
 0x168   : > { %v496_v58 = vadd.f32 %v495_v56, %v10336_v53 }
 0x169   : > { %7483 = vmatmul.mubr.msk.f32.vlgmr.msra.gmra.mrb[8].mxu1 %vm713_vm0, %v10341_v55  ;;  %v7468_v9 = vpop.f32.mrb[0].mxu1 }
 0x16a   : > { %v499_v61 = vpop.f32.mrb[4].mxu0  ;;  %v10353_v62 = vpack.c.bf16 %v496_v58, %v490_v57  ;;  %v10355_v63 = vpack.i.bf16 %v496_v58, %v490_v57  ;;  %v10370_v11 = vadd.f32 %v7468_v9, %v417_v4  ;;  %v600_v13 = vpop.f32.mrb[1].mxu1 }
 0x16b   : > { %v10358_v1 = vadd.f32 %v499_v61, %v10331_v48  ;;  %v501_v2 = vpop.f32.mrb[5].mxu0  ;;  %v10374_v14 = vadd.f32 %v600_v13, %v417_v4  ;;  %v10443_v13 = vld [vmem:[%s12563_s4 + $0x18] sm:$0xff] }
 0x16c   : > { %12641 = vst [vmem:[#allocation17_spill] sm:$0xff] %v10355_v63  ;;  %8552 = vmatprep.subr.msk.bf16.mxu0 %vm10349_vm1, %v10353_v62  ;;  %v502_v3 = vadd.f32 %v501_v2, %v10336_v53 }
 0x16d   : > { %7485 = vmatprep.mubr.msk.f32.mxu1 %vm713_vm0, %v10358_v1  ;;  %v7471_v21 = vpop.f32.mrb[2].mxu1  ;;  %v8574_v22 = vpack.c.bf16 %v10370_v11, %v10374_v14 }
 0x16e   : > { %v505_v5 = vpop.f32.mrb[6].mxu0  ;;  %v10386_v24 = vadd.f32 %v7471_v21, %v417_v4  ;;  %v610_v25 = vpop.f32.mrb[3].mxu1 }
 0x16f   : > { %v10367_v7 = vadd.f32 %v505_v5, %v10331_v48  ;;  %v507_v8 = vpop.f32.mrb[7].mxu0  ;;  %v10390_v28 = vadd.f32 %v610_v25, %v417_v4  ;;  %8575 = vmatprep.subr.bf16.mxu1 %v8574_v22  ;;  %v10468_v25 = vld [vmem:[%s12563_s4 + $0x20] sm:$0xff] }
 0x170   : > { %v508_v10 = vadd.f32 %v507_v8, %v10336_v53  ;;  %8577 = vmatpush3.bf16.msra.mxu1 %v8574_v22 }
 0x171   : > { %7486 = vmatmul.mubr.msk.f32.gmra.mrb[10].mxu1 %vm713_vm0, %v10367_v7  ;;  %v7474_v33 = vpop.f32.mrb[4].mxu1  ;;  %v8578_v34 = vpack.c.bf16 %v10386_v24, %v10390_v28 }
 0x172   : > { %v511_v15 = vpop.f32.mrb[8].mxu0  ;;  %v10376_v16 = vpack.c.bf16 %v508_v10, %v502_v3  ;;  %v10378_v17 = vpack.i.bf16 %v508_v10, %v502_v3  ;;  %v10398_v36 = vadd.f32 %v7474_v33, %v417_v4  ;;  %v620_v37 = vpop.f32.mrb[5].mxu1 }
 0x173   : > { %v10381_v18 = vadd.f32 %v511_v15, %v10331_v48  ;;  %v513_v20 = vpop.f32.mrb[9].mxu0  ;;  %v10402_v0 = vadd.f32 %v620_v37, %v417_v4  ;;  %8579 = vmatprep.subr.bf16.mxu1 %v8578_v34  ;;  %v10451_v15 = vld [vmem:[%s12563_s4 + $0x10] sm:$0xff] }
 0x174   : > { %v514_v23 = vadd.f32 %v513_v20, %v10336_v53  ;;  %8581 = vmatpush3.bf16.msra.mxu1 %v8578_v34 }
 0x175   : > { %7488 = vmatprep.mubr.msk.f32.mxu1 %vm713_vm0, %v10381_v18  ;;  %v7477_v46 = vpop.f32.mrb[6].mxu1  ;;  %v8582_v47 = vpack.c.bf16 %v10398_v36, %v10402_v0 }
 0x176   : > { %v517_v29 = vpop.f32.mrb[10].mxu0  ;;  %v636_v50 = vadd.f32 %v7477_v46, %v417_v4  ;;  %v630_v52 = vpop.f32.mrb[7].mxu1 }
 0x177   : > { %v10393_v30 = vadd.f32 %v517_v29, %v10331_v48  ;;  %v519_v32 = vpop.f32.mrb[11].mxu0  ;;  %v631_v54 = vadd.f32 %v630_v52, %v417_v4  ;;  %8583 = vmatprep.subr.bf16.mxu1 %v8582_v47 }
 0x178   : > { %v520_v35 = vadd.f32 %v519_v32, %v10336_v53  ;;  %8585 = vmatpush3.bf16.msra.mxu1 %v8582_v47 }
 0x179   : > { %7489 = vmatmul.mubr.msk.f32.gmra.mrb[12].mxu1 %vm713_vm0, %v10393_v30  ;;  %v8586_v3 = vpack.c.bf16 %v636_v50, %v631_v54  ;;  %v10422_v5 = vpack.i.bf16 %v636_v50, %v631_v54 }
 0x17a   : > { %v523_v39 = vpop.f32.mrb[12].mxu0  ;;  %v8562_v41 = vpack.c.bf16 %v520_v35, %v514_v23  ;;  %v10404_v42 = vpack.i.bf16 %v520_v35, %v514_v23  ;;  %v10461_v23 = vld [vmem:[%s12563_s4 + $0x28] sm:$0xff]  ;;  %v10484_v35 = vld [vmem:[%s12563_s4 + $0x30] sm:$0xff] }
 0x17b   : > { %v10407_v44 = vadd.f32 %v523_v39, %v10331_v48  ;;  %v525_v45 = vpop.f32.mrb[13].mxu0  ;;  %8587 = vmatprep.subr.bf16.mxu1 %v8586_v3 }
 0x17c   : > { %12642 = vst [vmem:[#allocation18_spill] sm:$0xff] %v10404_v42  ;;  %v526_v49 = vadd.f32 %v525_v45, %v10336_v53  ;;  %8589 = vmatpush3.bf16.msra.mxu1 %v8586_v3 }
 0x17d   : > { %7491 = vmatprep.mubr.msk.f32.mxu1 %vm713_vm0, %v10407_v44  ;;  %8591 = vmatprep.subr.bf16.mxu1 %v10271_v27 }
 0x17e   : > { %v529_v56 = vpop.f32.mrb[14].mxu0 }
 0x17f   : > { %v10415_v57 = vadd.f32 %v529_v56, %v10331_v48  ;;  %v531_v58 = vpop.f32.mrb[15].mxu0  ;;  %v10428_v48 = vld [vmem:[%s12563_s4] sm:$0xff] }
 0x180   : > { %v532_v59 = vadd.f32 %v531_v58, %v10336_v53  ;;  %v10433_v53 = vld [vmem:[%s12563_s4 + $0x8] sm:$0xff] }
 0x181   : > { %7492 = vmatmul.mubr.msk.f32.gmra.mrb[14].mxu1 %vm713_vm0, %v10415_v57 }
 0x182   : > { %v8568_v61 = vpack.c.bf16 %v532_v59, %v526_v49  ;;  %v10420_v2 = vpack.i.bf16 %v532_v59, %v526_v49 }
 0x23c   : > { %v7484_v4 = vpop.f32.mrb[8].mxu1 }
 0x23d   : > { %v804_v8 = vpop.f32.mrb[9].mxu1  ;;  %v844_v10 = vmul.f32 %v7484_v4, %v10433_v53 }
 0x23e   : > { %v843_v9 = vmul.f32 %v804_v8, %v10428_v48 }
 0x240   : > { %7526 = vmatprep.mubr.f32.mxu0 %v843_v9 }
 0x241   : > { %7527 = vmatmul.mubr.f32.vlgmr.msra.gmra.mrb[16].mxu0 %v844_v10 }
 0x242   : > { %8555 = vmatpush3.bf16.xpose.msk.msra.mxu0 %vm10349_vm1, %v10353_v62 }
 0x243   : > { %8558 = vmatprep.subr.msk.bf16.mxu0 %vm10349_vm1, %v10376_v16 }
 0x244   : > { %v7487_v20 = vpop.f32.mrb[10].mxu1 }
 0x245   : > { %v846_v21 = vmul.f32 %v7487_v20, %v10443_v13  ;;  %v814_v22 = vpop.f32.mrb[11].mxu1 }
 0x246   : > { %v845_v62 = vmul.f32 %v814_v22, %v10451_v15 }
 0x248   : > { %7529 = vmatprep.mubr.f32.mxu0 %v845_v62 }
 0x249   : > { %7530 = vmatmul.mubr.f32.gmra.mrb[18].mxu0 %v846_v21  ;;  %v10540_v21 = vpack.i.bf16 %v10370_v11, %v10374_v14 }
 0x24a   : > { %8561 = vmatpush3.bf16.xpose.msk.msra.mxu0 %vm10349_vm1, %v10376_v16  ;;  %v10477_v16 = vld [vmem:[%s12563_s4 + $0x38] sm:$0xff] }
 0x24b   : > { %8564 = vmatprep.subr.msk.bf16.mxu0 %vm10349_vm1, %v8562_v41  ;;  %12643 = vst [vmem:[#allocation19_spill] sm:$0xff] %v10540_v21 }
 0x24c   : > { %v7490_v29 = vpop.f32.mrb[12].mxu1 }
 0x24d   : > { %v848_v32 = vmul.f32 %v7490_v29, %v10461_v23  ;;  %v824_v33 = vpop.f32.mrb[13].mxu1 }
 0x24e   : > { %v847_v34 = vmul.f32 %v824_v33, %v10468_v25 }
 0x250   : > { %7532 = vmatprep.mubr.f32.mxu0 %v847_v34 }
 0x251   : > { %7533 = vmatmul.mubr.f32.gmra.mrb[20].mxu0 %v848_v32 }
 0x252   : > { %8567 = vmatpush3.bf16.xpose.msk.msra.mxu0 %vm10349_vm1, %v8562_v41 }
 0x253   : > { %8570 = vmatprep.subr.msk.bf16.mxu0 %vm10349_vm1, %v8568_v61 }
 0x254   : > { %v7493_v37 = vpop.f32.mrb[14].mxu1 }
 0x255   : > { %v850_v39 = vmul.f32 %v7493_v37, %v10477_v16  ;;  %v834_v45 = vpop.f32.mrb[15].mxu1 }
 0x256   : > { %v849_v46 = vmul.f32 %v834_v45, %v10484_v35 }
 0x258   : > { %7535 = vmatprep.mubr.f32.mxu0 %v849_v46 }
 0x259   : > { %7536 = vmatmul.mubr.f32.gmra.mrb[22].mxu0 %v850_v39 }
 0x25a   : > { %8573 = vmatpush3.bf16.xpose.msk.msra.mxu0 %vm10349_vm1, %v8568_v61  ;;  %7554 = vmatprep.mubr.msk.f32.mxu0 %vm713_vm0, %v10334_v51 }
 0x261   : > { %7555 = vmatmul.mubr.msk.f32.vlgmr.msra.gmra.mrb[16].mxu0 %vm713_vm0, %v10341_v55 }
 0x262   : > { %7557 = vmatprep.mubr.msk.f32.mxu0 %vm713_vm0, %v10358_v1 }
 0x265   : > { %7558 = vmatmul.mubr.msk.f32.gmra.mrb[18].mxu0 %vm713_vm0, %v10367_v7 }
 0x266   : > { %7560 = vmatprep.mubr.msk.f32.mxu0 %vm713_vm0, %v10381_v18 }
 0x269   : > { %7561 = vmatmul.mubr.msk.f32.gmra.mrb[20].mxu0 %vm713_vm0, %v10393_v30 }
 0x26a   : > { %7563 = vmatprep.mubr.msk.f32.mxu0 %vm713_vm0, %v10407_v44 }
 0x26d   : > { %7564 = vmatmul.mubr.msk.f32.gmra.mrb[22].mxu0 %vm713_vm0, %v10415_v57 }
 0x334   : > { %v7556_v41 = vpop.f32.mrb[16].mxu0 }
 0x335   : > { %v1046_v47 = vpop.f32.mrb[17].mxu0  ;;  %v1089_v56 = vsel %vm1085_vm2, %v7556_v41, -inf }
 0x336   : > { %v1086_v49 = vsel %vm1085_vm2, %v1046_v47, -inf }
 0x337   : > { %1087 = vmax.xlane.f32.xlu0 %v1086_v49 }
 0x338   : > { %v7559_v50 = vpop.f32.mrb[18].mxu0 }
 0x339   : > { %v1056_v52 = vpop.f32.mrb[19].mxu0  ;;  %v1095_v54 = vsel %vm1085_vm2, %v7559_v50, -inf }
 0x33a   : > { %1096 = vmax.xlane.f32.xlu1 %v1095_v54  ;;  %v1092_v61 = vsel %vm1085_vm2, %v1056_v52, -inf }
 0x33b   : > { %1090 = vmax.xlane.f32.xlu0 %v1089_v56 }
 0x33c   : > { %v7562_v58 = vpop.f32.mrb[20].mxu0 }
 0x33d   : > { %v1066_v59 = vpop.f32.mrb[21].mxu0  ;;  %v1101_v9 = vsel %vm1085_vm2, %v7562_v58, -inf }
 0x33e   : > { %1093 = vmax.xlane.f32.xlu1 %v1092_v61  ;;  %v1098_v3 = vsel %vm1085_vm2, %v1066_v59, -inf }
 0x33f   : > { %1099 = vmax.xlane.f32.xlu0 %v1098_v3 }
 0x340   : > { %v7565_v4 = vpop.f32.mrb[22].mxu0 }
 0x341   : > { %v1076_v8 = vpop.f32.mrb[23].mxu0  ;;  %v1107_v20 = vsel %vm1085_vm2, %v7565_v4, -inf }
 0x342   : > { %1102 = vmax.xlane.f32.xlu1 %v1101_v9  ;;  %v1104_v10 = vsel %vm1085_vm2, %v1076_v8, -inf }
 0x343   : > { %1105 = vmax.xlane.f32.xlu0 %v1104_v10 }
 0x346   : > { %1108 = vmax.xlane.f32.xlu1 %v1107_v20 }
 0x357   : > { %1345 = vrot.lane.b32.xlu1 %v10341_v55, %s10018_s25 }
 0x359   : > { %1343 = vrot.lane.b32.xlu0 %v10334_v51, %s10018_s25 }
 0x35b   : > { %1347 = vrot.lane.b32.xlu1 %v10358_v1, %s10018_s25 }
 0x35d   : > { %1351 = vrot.lane.b32.xlu0 %v10381_v18, %s10018_s25 }
 0x35f   : > { %1349 = vrot.lane.b32.xlu1 %v10367_v7, %s10018_s25 }
 0x361   : > { %1355 = vrot.lane.b32.xlu0 %v10407_v44, %s10018_s25 }
 0x363   : > { %1353 = vrot.lane.b32.xlu1 %v10393_v30, %s10018_s25 }
 0x365   : > { %9303 = vrot.lane.b32.xlu0 %v10355_v63, %s10018_s25 }
 0x367   : > { %1357 = vrot.lane.b32.xlu1 %v10415_v57, %s10018_s25 }
 0x369   : > { %9313 = vrot.lane.b32.xlu0 %v10404_v42, %s10018_s25 }
 0x36b   : > { %9308 = vrot.lane.b32.xlu1 %v10378_v17, %s10018_s25 }
 0x36f   : > { %9318 = vrot.lane.b32.xlu1 %v10420_v2, %s10018_s25 }
 0x373   : > { %9323 = vrot.lane.b32.xlu1 %v10540_v21, %s10018_s25 }
 0x3c4   : > { %v1088_v22 = vpop.xlane.xlu0 %1087 }
 0x3c5   : > { %v1110_v62 = vsub.f32 %v1046_v47, %v1088_v22 }
 0x3c7   : > { %v1118_v29 = vmul.f32 1.442695, %v1110_v62  ;;  %v1097_v32 = vpop.xlane.xlu1 %1096 }
 0x3c8   : > { %v1113_v33 = vsub.f32 %v7559_v50, %v1097_v32  ;;  %v1091_v34 = vpop.xlane.xlu0 %1090 }
 0x3c9   : > { %9582 = vpow2.f32 %v1118_v29  ;;  %v1111_v37 = vsub.f32 %v7556_v41, %v1091_v34 }
 0x3ca   : > { %v1124_v39 = vmul.f32 1.442695, %v1113_v33 }
 0x3cb   : > { %v1120_v45 = vmul.f32 1.442695, %v1111_v37  ;;  %v1094_v46 = vpop.xlane.xlu1 %1093 }
 0x3cc   : > { %v1112_v49 = vsub.f32 %v1056_v52, %v1094_v46  ;;  %v1100_v54 = vpop.xlane.xlu0 %1099 }
 0x3cd   : > { %9584 = vpow2.f32 %v1120_v45  ;;  %v1114_v56 = vsub.f32 %v1066_v59, %v1100_v54 }
 0x3ce   : > { %v1122_v11 = vmul.f32 1.442695, %v1112_v49  ;;  %9586 = vpow2.f32 %v1124_v39 }
 0x3cf   : > { %v1126_v14 = vmul.f32 1.442695, %v1114_v56  ;;  %v1103_v61 = vpop.xlane.xlu1 %1102 }
 0x3d0   : > { %9588 = vpow2.f32 %v1122_v11  ;;  %v1115_v3 = vsub.f32 %v7562_v58, %v1103_v61  ;;  %v1106_v47 = vpop.xlane.xlu0 %1105 }
 0x3d1   : > { %9590 = vpow2.f32 %v1126_v14  ;;  %v1116_v9 = vsub.f32 %v1076_v8, %v1106_v47 }
 0x3d2   : > { %v1128_v50 = vmul.f32 1.442695, %v1115_v3 }
 0x3d3   : > { %v10544_v10 = vpop.eup %9582  ;;  %v1130_v41 = vmul.f32 1.442695, %v1116_v9  ;;  %v1109_v20 = vpop.xlane.xlu1 %1108 }
 0x3d4   : > { %12644 = vst [vmem:[#allocation20_spill] sm:$0xff] %v10544_v10  ;;  %9592 = vpow2.f32 %v1128_v50  ;;  %v1117_v22 = vsub.f32 %v7565_v4, %v1109_v20  ;;  %7582 = vmatprep.mubr.msk.f32.mxu1 %vm1085_vm2, %v10544_v10  ;;  %v10584_v45 = vpop.permute.xlu0 %1343 }
 0x3d5   : > { %9594 = vpow2.f32 %v1130_v41 }
 0x3d6   : > { %v1132_v52 = vmul.f32 1.442695, %v1117_v22 }
 0x3d7   : > { %v10548_v59 = vpop.eup %9584  ;;  %v10550_v62 = vpop.permute.xlu1 %1345 }
 0x3d8   : > { %12645 = vst [vmem:[#allocation21_spill] sm:$0xff] %v10548_v59  ;;  %9596 = vpow2.f32 %v1132_v52  ;;  %7583 = vmatmul.mubr.msk.f32.vlgmr.msra.gmra.mrb[16].mxu1 %vm1085_vm2, %v10548_v59  ;;  %v10554_v58 = vpop.eup %9586  ;;  %v10597_v49 = vpop.permute.xlu0 %1351 }
 0x3d9   : > { %12646 = vst [vmem:[#allocation22_spill] sm:$0xff] %v10554_v58  ;;  %8593 = vmatpush3.bf16.msra.mxu1 %v10271_v27 }
 0x3da   : > { %v10557_v8 = vpop.eup %9588  ;;  %8595 = vmatprep.subr.bf16.mxu1 %v10235_v6 }
 0x3db   : > { %12647 = vst [vmem:[#allocation23_spill] sm:$0xff] %v10557_v8  ;;  %v10560_v4 = vpop.eup %9590  ;;  %7585 = vmatprep.mubr.msk.f32.mxu1 %vm1085_vm2, %v10557_v8  ;;  %v10564_v29 = vpop.permute.xlu1 %1347 }
 0x3dc   : > { %12648 = vst [vmem:[#allocation24_spill] sm:$0xff] %v10560_v4  ;;  %7586 = vmatmul.mubr.msk.f32.gmra.mrb[18].mxu1 %vm1085_vm2, %v10554_v58  ;;  %v10608_v11 = vpop.permute.xlu0 %1355 }
 0x3dd   : > { %7588 = vmatprep.mubr.msk.f32.mxu1 %vm1085_vm2, %v10560_v4 }
 0x3de   : > { %v10570_v32 = vpop.eup %9592 }
 0x3df   : > { %12649 = vst [vmem:[#allocation25_spill] sm:$0xff] %v10570_v32  ;;  %v10572_v33 = vpop.eup %9594  ;;  %v10574_v34 = vpop.permute.xlu1 %1349 }
 0x3e0   : > { %12650 = vst [vmem:[#allocation26_spill] sm:$0xff] %v10572_v33  ;;  %7589 = vmatmul.mubr.msk.f32.gmra.mrb[20].mxu1 %vm1085_vm2, %v10570_v32  ;;  %v9304_v9 = vpop.permute.xlu0 %9303 }
 0x3e1   : > { %7591 = vmatprep.mubr.msk.f32.mxu1 %vm1085_vm2, %v10572_v33  ;;  %v9306_v50 = vunpack.i.h.bf16 %v9304_v9  ;;  %v9305_v41 = vunpack.i.l.bf16 %v9304_v9 }
 0x3e2   : > { %v10580_v37 = vpop.eup %9596 }
 0x3e3   : > { %12651 = vst [vmem:[#allocation27_spill] sm:$0xff] %v10580_v37  ;;  %v10582_v39 = vpop.permute.xlu1 %1353  ;;  %v8626_v20 = vpack.c.bf16 %v9306_v50, %v9305_v41 }
 0x3e4   : > { %7592 = vmatmul.mubr.msk.f32.gmra.mrb[22].mxu1 %vm1085_vm2, %v10580_v37 }
 0x3e5   : > { %7598 = vmatprep.mubr.msk.f32.mxu1 %vm713_vm0, %v10584_v45 }
 0x3e7   : > { %v10590_v46 = vpop.permute.xlu1 %1357 }
 0x3e8   : > { %7599 = vmatmul.mubr.msk.f32.vlgmr.msra.gmra.mrb[24].mxu1 %vm713_vm0, %v10550_v62 }
 0x3e9   : > { %8597 = vmatpush3.bf16.msra.mxu1 %v10235_v6  ;;  %7601 = vmatprep.mubr.msk.f32.mxu1 %vm713_vm0, %v10564_v29 }
 0x3ea   : > { %8599 = vmatprep.subr.bf16.mxu1 %v10244_v12 }
 0x3eb   : > { %v9309_v54 = vpop.permute.xlu1 %9308 }
 0x3ec   : > { %7602 = vmatmul.mubr.msk.f32.gmra.mrb[26].mxu1 %vm713_vm0, %v10574_v34  ;;  %v9311_v33 = vunpack.i.h.bf16 %v9309_v54  ;;  %v9310_v4 = vunpack.i.l.bf16 %v9309_v54 }
 0x3ed   : > { %8601 = vmatpush3.bf16.msra.mxu1 %v10244_v12  ;;  %7604 = vmatprep.mubr.msk.f32.mxu1 %vm713_vm0, %v10597_v49 }
 0x3ee   : > { %8603 = vmatprep.subr.bf16.mxu1 %v10257_v19 }
 0x3ef   : > { %v10606_v56 = vpop.permute.xlu1 %9318 }
 0x3f0   : > { %7605 = vmatmul.mubr.msk.f32.gmra.mrb[28].mxu1 %vm713_vm0, %v10582_v39 }
 0x3f1   : > { %8605 = vmatpush3.bf16.msra.mxu1 %v10257_v19  ;;  %7607 = vmatprep.mubr.msk.f32.mxu1 %vm713_vm0, %v10608_v11 }
 0x3f2   : > { %8607 = vmatprep.subr.bf16.mxu1 %v10269_v26 }
 0x3f3   : > { %v9324_v14 = vpop.permute.xlu1 %9323 }
 0x3f4   : > { %v9326_v61 = vunpack.i.h.bf16 %v9324_v14  ;;  %v9325_v3 = vunpack.i.l.bf16 %v9324_v14  ;;  %7608 = vmatmul.mubr.msk.f32.gmra.mrb[30].mxu1 %vm713_vm0, %v10590_v46 }
 0x3f5   : > { %8609 = vmatpush3.bf16.msra.mxu1 %v10269_v26 }
 0x3f6   : > { %8611 = vmatprep.subr.bf16.mxu1 %v10284_v31  ;;  %v8650_v47 = vpack.c.bf16 %v9326_v61, %v9325_v3 }
 0x3f8   : > { %8651 = vmatprep.subr.bf16.mxu0 %v8650_v47 }
 0x3f9   : > { %8613 = vmatpush3.bf16.msra.mxu1 %v10284_v31  ;;  %8653 = vmatpush3.bf16.msra.mxu0 %v8650_v47 }
 0x3fa   : > { %8615 = vmatprep.subr.bf16.mxu1 %v10304_v38 }
 0x3fd   : > { %8617 = vmatpush3.bf16.msra.mxu1 %v10304_v38 }
 0x3fe   : > { %8619 = vmatprep.subr.bf16.mxu1 %v10314_v40 }
 0x401   : > { %8621 = vmatpush3.bf16.msra.mxu1 %v10314_v40 }
 0x402   : > { %8623 = vmatprep.subr.bf16.mxu1 %v10324_v43 }
 0x405   : > { %8625 = vmatpush3.bf16.msra.mxu1 %v10324_v43 }
 0x406   : > { %8628 = vmatprep.subr.msk.bf16.mxu1 %vm10349_vm1, %v8626_v20 }
 0x4ab   : > { %v10629_v22 = vpop.f32.mrb[16].mxu1 }
 0x4ac   : > { %12652 = vst [vmem:[#allocation28_spill] sm:$0xff] %v10629_v22  ;;  %v10631_v52 = vpop.f32.mrb[17].mxu1 }
 0x4ad   : > { %12653 = vst [vmem:[#allocation29_spill] sm:$0xff] %v10631_v52 }
 0x4af   : > { %v10633_v14 = vpop.f32.mrb[18].mxu1 }
 0x4b0   : > { %12654 = vst [vmem:[#allocation30_spill] sm:$0xff] %v10633_v14  ;;  %v10635_v61 = vpop.f32.mrb[19].mxu1  ;;  %v8632_v14 = vpack.c.bf16 %v9311_v33, %v9310_v4 }
 0x4b1   : > { %12655 = vst [vmem:[#allocation31_spill] sm:$0xff] %v10635_v61 }
 0x4b3   : > { %v10637_v3 = vpop.f32.mrb[20].mxu1 }
 0x4b4   : > { %12656 = vst [vmem:[#allocation32_spill] sm:$0xff] %v10637_v3  ;;  %v10639_v47 = vpop.f32.mrb[21].mxu1  ;;  %v9314_v3 = vpop.permute.xlu0 %9313 }
 0x4b5   : > { %12657 = vst [vmem:[#allocation33_spill] sm:$0xff] %v10639_v47 }
 0x4b7   : > { %v10641_v9 = vpop.f32.mrb[22].mxu1 }
 0x4b8   : > { %12658 = vst [vmem:[#allocation34_spill] sm:$0xff] %v10641_v9  ;;  %v10643_v50 = vpop.f32.mrb[23].mxu1 }
 0x4b9   : > { %12659 = vst [vmem:[#allocation35_spill] sm:$0xff] %v10643_v50 }
 0x4bb   : > { %v7600_v41 = vpop.f32.mrb[24].mxu1 }
 0x4bc   : > { %v1441_v8 = vpop.f32.mrb[25].mxu1  ;;  %v1481_v52 = vmul.f32 %v7600_v41, %v10433_v53  ;;  %v9315_v41 = vunpack.i.l.bf16 %v9314_v3 }
 0x4bd   : > { %v1480_v22 = vmul.f32 %v1441_v8, %v10428_v48  ;;  %v9316_v8 = vunpack.i.h.bf16 %v9314_v3  ;;  %v9321_v3 = vunpack.i.h.bf16 %v10606_v56 }
 0x4bf   : > { %v7603_v10 = vpop.f32.mrb[26].mxu1  ;;  %7642 = vmatprep.mubr.f32.mxu1 %v1480_v22 }
 0x4c0   : > { %v1451_v61 = vpop.f32.mrb[27].mxu1  ;;  %7643 = vmatmul.mubr.f32.vlgmr.msra.gmra.mrb[32].mxu1 %v1481_v52  ;;  %v1483_v50 = vmul.f32 %v7603_v10, %v10443_v13  ;;  %v8638_v52 = vpack.c.bf16 %v9316_v8, %v9315_v41 }
 0x4c1   : > { %v1482_v47 = vmul.f32 %v1451_v61, %v10451_v15  ;;  %8631 = vmatpush3.bf16.xpose.msk.msra.mxu1 %vm10349_vm1, %v8626_v20 }
 0x4c2   : > { %8634 = vmatprep.subr.msk.bf16.mxu1 %vm10349_vm1, %v8632_v14 }
 0x4c3   : > { %v7606_v54 = vpop.f32.mrb[28].mxu1  ;;  %7645 = vmatprep.mubr.f32.mxu1 %v1482_v47  ;;  %v9320_v47 = vunpack.i.l.bf16 %v10606_v56 }
 0x4c4   : > { %v1461_v9 = vpop.f32.mrb[29].mxu1  ;;  %7646 = vmatmul.mubr.f32.gmra.mrb[34].mxu1 %v1483_v50  ;;  %v1485_v33 = vmul.f32 %v7606_v54, %v10461_v23 }
 0x4c5   : > { %v1484_v4 = vmul.f32 %v1461_v9, %v10468_v25  ;;  %v8644_v9 = vpack.c.bf16 %v9321_v3, %v9320_v47 }
 0x4c7   : > { %v7609_v22 = vpop.f32.mrb[30].mxu1  ;;  %7648 = vmatprep.mubr.f32.mxu1 %v1484_v4 }
 0x4c8   : > { %v1471_v61 = vpop.f32.mrb[31].mxu1  ;;  %7649 = vmatmul.mubr.f32.gmra.mrb[36].mxu1 %v1485_v33  ;;  %v1487_v20 = vmul.f32 %v7609_v22, %v10477_v16  ;;  %v10713_v22 = vpack.i.bf16 %v10398_v36, %v10402_v0  ;;  %v10727_v36 = vpack.i.bf16 %v10386_v24, %v10390_v28 }
 0x4c9   : > { %v1486_v10 = vmul.f32 %v1471_v61, %v10484_v35  ;;  %8637 = vmatpush3.bf16.xpose.msk.msra.mxu1 %vm10349_vm1, %v8632_v14 }
 0x4ca   : > { %8640 = vmatprep.subr.msk.bf16.mxu1 %vm10349_vm1, %v8638_v52 }
 0x4cb   : > { %7651 = vmatprep.mubr.f32.mxu1 %v1486_v10 }
 0x4cc   : > { %7652 = vmatmul.mubr.f32.gmra.mrb[38].mxu1 %v1487_v20 }
 0x4cd   : > { %7670 = vmatprep.mubr.msk.f32.mxu1 %vm713_vm0, %v10584_v45 }
 0x4d1   : > { %8643 = vmatpush3.bf16.xpose.msk.msra.mxu1 %vm10349_vm1, %v8638_v52 }
 0x4d2   : > { %8646 = vmatprep.subr.msk.bf16.mxu1 %vm10349_vm1, %v8644_v9 }
 0x4d9   : > { %8649 = vmatpush3.bf16.xpose.msk.msra.mxu1 %vm10349_vm1, %v8644_v9 }
 0x4e0   : > { %7671 = vmatmul.mubr.msk.f32.vlgmr.msra.gmra.mrb[32].mxu1 %vm713_vm0, %v10550_v62 }
 0x4e1   : > { %7673 = vmatprep.mubr.msk.f32.mxu1 %vm713_vm0, %v10564_v29 }
 0x4e4   : > { %7674 = vmatmul.mubr.msk.f32.gmra.mrb[34].mxu1 %vm713_vm0, %v10574_v34 }
 0x4e5   : > { %7676 = vmatprep.mubr.msk.f32.mxu1 %vm713_vm0, %v10597_v49 }
 0x4e8   : > { %7677 = vmatmul.mubr.msk.f32.gmra.mrb[36].mxu1 %vm713_vm0, %v10582_v39 }
 0x4e9   : > { %7679 = vmatprep.mubr.msk.f32.mxu1 %vm713_vm0, %v10608_v11 }
 0x4ec   : > { %7680 = vmatmul.mubr.msk.f32.gmra.mrb[38].mxu1 %vm713_vm0, %v10590_v46 }
 0x5b3   : > { %v10685_v45 = vpop.f32.mrb[32].mxu1 }
 0x5b4   : > { %v1699_v62 = vpop.f32.mrb[33].mxu1  ;;  %v1741_v29 = vsel %vm1085_vm2, %v10685_v45, -inf }
 0x5b5   : > { %1742 = vmax.xlane.f32.xlu1 %v1741_v29  ;;  %v1738_v34 = vsel %vm1085_vm2, %v1699_v62, -inf }
 0x5b6   : > { %1739 = vmax.xlane.f32.xlu0 %v1738_v34 }
 0x5b7   : > { %v10690_v49 = vpop.f32.mrb[34].mxu1 }
 0x5b8   : > { %v1709_v56 = vpop.f32.mrb[35].mxu1  ;;  %v1747_v39 = vsel %vm1085_vm2, %v10690_v49, -inf }
 0x5b9   : > { %v1744_v50 = vsel %vm1085_vm2, %v1709_v56, -inf }
 0x5ba   : > { %1748 = vmax.xlane.f32.xlu0 %v1747_v39 }
 0x5bb   : > { %v10694_v11 = vpop.f32.mrb[36].mxu1 }
 0x5bc   : > { %v10696_v46 = vpop.f32.mrb[37].mxu1  ;;  %v1753_v14 = vsel %vm1085_vm2, %v10694_v11, -inf }
 0x5bd   : > { %1754 = vmax.xlane.f32.xlu1 %v1753_v14  ;;  %v1750_v41 = vsel %vm1085_vm2, %v10696_v46, -inf }
 0x5be   : > { %1745 = vmax.xlane.f32.xlu0 %v1744_v50 }
 0x5bf   : > { %v10701_v54 = vpop.f32.mrb[38].mxu1 }
 0x5c0   : > { %v10703_v8 = vpop.f32.mrb[39].mxu1  ;;  %v1759_v4 = vsel %vm1085_vm2, %v10701_v54, -inf }
 0x5c1   : > { %v1756_v33 = vsel %vm1085_vm2, %v10703_v8, -inf }
 0x5c2   : > { %1751 = vmax.xlane.f32.xlu0 %v1750_v41 }
 0x5c6   : > { %1760 = vmax.xlane.f32.xlu0 %v1759_v4 }
 0x5ca   : > { %1757 = vmax.xlane.f32.xlu0 %v1756_v33 }
 0x5ce   : > { %9333 = vrot.lane.b32.xlu1 %v10713_v22, %s10018_s25 }
 0x5d2   : > { %9338 = vrot.lane.b32.xlu1 %v10422_v5, %s10018_s25 }
 0x5d6   : > { %2060 = vrot.lane.b32.xlu1 %v10334_v51, %s10019_s26 }
 0x5da   : > { %2062 = vrot.lane.b32.xlu1 %v10341_v55, %s10019_s26 }
 0x5de   : > { %2066 = vrot.lane.b32.xlu1 %v10367_v7, %s10019_s26 }
 0x5e0   : > { %9328 = vrot.lane.b32.xlu0 %v10727_v36, %s10018_s25 }
 0x5e2   : > { %2070 = vrot.lane.b32.xlu1 %v10393_v30, %s10019_s26 }
 0x5e4   : > { %2064 = vrot.lane.b32.xlu0 %v10358_v1, %s10019_s26 }
 0x5e6   : > { %2074 = vrot.lane.b32.xlu1 %v10415_v57, %s10019_s26 }
 0x5e8   : > { %2068 = vrot.lane.b32.xlu0 %v10381_v18, %s10019_s26 }
 0x5ea   : > { %9348 = vrot.lane.b32.xlu1 %v10378_v17, %s10019_s26 }
 0x5ec   : > { %2072 = vrot.lane.b32.xlu0 %v10407_v44, %s10019_s26 }
 0x5ee   : > { %9358 = vrot.lane.b32.xlu1 %v10420_v2, %s10019_s26 }
 0x5f0   : > { %9343 = vrot.lane.b32.xlu0 %v10355_v63, %s10019_s26 }
 0x5f2   : > { %9363 = vrot.lane.b32.xlu1 %v10540_v21, %s10019_s26 }
 0x5f4   : > { %9353 = vrot.lane.b32.xlu0 %v10404_v42, %s10019_s26 }
 0x642   : > { %v1743_v0 = vpop.xlane.xlu1 %1742 }
 0x643   : > { %v1740_v24 = vpop.xlane.xlu0 %1739 }
 0x644   : > { %v1762_v28 = vsub.f32 %v1699_v62, %v1740_v24  ;;  %v1763_v62 = vsub.f32 %v10685_v45, %v1743_v0 }
 0x646   : > { %v1770_v52 = vmul.f32 1.442695, %v1762_v28  ;;  %v1772_v37 = vmul.f32 1.442695, %v1763_v62 }
 0x647   : > { %v1749_v61 = vpop.xlane.xlu0 %1748 }
 0x648   : > { %9598 = vpow2.f32 %v1770_v52  ;;  %v1765_v32 = vsub.f32 %v10690_v49, %v1749_v61 }
 0x649   : > { %9600 = vpow2.f32 %v1772_v37 }
 0x64a   : > { %v1755_v10 = vpop.xlane.xlu1 %1754 }
 0x64b   : > { %v1746_v20 = vpop.xlane.xlu0 %1745  ;;  %v1767_v0 = vsub.f32 %v10694_v11, %v1755_v10 }
 0x64c   : > { %v1764_v50 = vsub.f32 %v1709_v56, %v1746_v20  ;;  %v1776_v56 = vmul.f32 1.442695, %v1765_v32 }
 0x64d   : > { %v1780_v61 = vmul.f32 1.442695, %v1767_v0 }
 0x64e   : > { %v9334_v3 = vpop.permute.xlu1 %9333  ;;  %v1774_v58 = vmul.f32 1.442695, %v1764_v50 }
 0x64f   : > { %v1752_v47 = vpop.xlane.xlu0 %1751  ;;  %v9336_v33 = vunpack.i.h.bf16 %v9334_v3  ;;  %v9335_v24 = vunpack.i.l.bf16 %v9334_v3 }
 0x650   : > { %v1766_v59 = vsub.f32 %v10696_v46, %v1752_v47  ;;  %9602 = vpow2.f32 %v1774_v58 }
 0x651   : > { %v8658_v45 = vpack.c.bf16 %v9336_v33, %v9335_v24  ;;  %9604 = vpow2.f32 %v1776_v56 }
 0x652   : > { %v10751_v9 = vpop.eup %9598  ;;  %v9339_v29 = vpop.permute.xlu1 %9338  ;;  %v1778_v20 = vmul.f32 1.442695, %v1766_v59 }
 0x653   : > { %12660 = vst [vmem:[#allocation36_spill] sm:$0xff] %v10751_v9  ;;  %7698 = vmatprep.mubr.msk.f32.mxu0 %vm1085_vm2, %v10751_v9  ;;  %v1761_v34 = vpop.xlane.xlu0 %1760  ;;  %v9341_v21 = vunpack.i.h.bf16 %v9339_v29  ;;  %v9340_v63 = vunpack.i.l.bf16 %v9339_v29  ;;  %v10774_v58 = vpop.eup %9600 }
 0x654   : > { %v1769_v47 = vsub.f32 %v10701_v54, %v1761_v34  ;;  %9606 = vpow2.f32 %v1778_v20  ;;  %12661 = vst [vmem:[#allocation37_spill] sm:$0xff] %v10774_v58 }
 0x655   : > { %v8662_v46 = vpack.c.bf16 %v9341_v21, %v9340_v63  ;;  %9608 = vpow2.f32 %v1780_v61 }
 0x656   : > { %v10755_v39 = vpop.permute.xlu1 %2060 }
 0x657   : > { %v1758_v14 = vpop.xlane.xlu0 %1757 }
 0x658   : > { %v1768_v3 = vsub.f32 %v10703_v8, %v1758_v14 }
 0x65a   : > { %v10758_v41 = vpop.permute.xlu1 %2062  ;;  %v1782_v29 = vmul.f32 1.442695, %v1768_v3  ;;  %v10776_v63 = vpop.eup %9602 }
 0x65b   : > { %v9329_v4 = vpop.permute.xlu0 %9328  ;;  %12662 = vst [vmem:[#allocation38_spill] sm:$0xff] %v10776_v63  ;;  %v10786_v32 = vpop.eup %9604 }
 0x65c   : > { %v9331_v28 = vunpack.i.h.bf16 %v9329_v4  ;;  %v9330_v52 = vunpack.i.l.bf16 %v9329_v4  ;;  %9610 = vpow2.f32 %v1782_v29  ;;  %12663 = vst [vmem:[#allocation39_spill] sm:$0xff] %v10786_v32 }
 0x65e   : > { %v10762_v9 = vpop.permute.xlu1 %2066  ;;  %v8654_v42 = vpack.c.bf16 %v9331_v28, %v9330_v52  ;;  %v10788_v11 = vpop.eup %9606 }
 0x65f   : > { %12664 = vst [vmem:[#allocation40_spill] sm:$0xff] %v10788_v11  ;;  %v10794_v8 = vpop.eup %9608  ;;  %v10804_v4 = vpop.permute.xlu0 %2064 }
 0x660   : > { %8655 = vmatprep.subr.bf16.mxu0 %v8654_v42  ;;  %12665 = vst [vmem:[#allocation41_spill] sm:$0xff] %v10794_v8 }
 0x661   : > { %8657 = vmatpush3.bf16.msra.mxu0 %v8654_v42  ;;  %v1784_v42 = vmul.f32 1.442695, %v1769_v47 }
 0x662   : > { %v10766_v49 = vpop.permute.xlu1 %2070  ;;  %8659 = vmatprep.subr.bf16.mxu0 %v8658_v45 }
 0x663   : > { %9612 = vpow2.f32 %v1784_v42  ;;  %v10815_v33 = vpop.permute.xlu0 %2068 }
 0x665   : > { %8661 = vmatpush3.bf16.msra.mxu0 %v8658_v45 }
 0x666   : > { %v10769_v37 = vpop.permute.xlu1 %2074  ;;  %8663 = vmatprep.subr.bf16.mxu0 %v8662_v46  ;;  %v10796_v14 = vpop.eup %9610 }
 0x667   : > { %12666 = vst [vmem:[#allocation42_spill] sm:$0xff] %v10796_v14  ;;  %v10824_v24 = vpop.permute.xlu0 %2072 }
 0x669   : > { %8665 = vmatpush3.bf16.msra.mxu0 %v8662_v46 }
 0x66a   : > { %v10771_v59 = vpop.permute.xlu1 %9348  ;;  %8667 = vmatprep.subr.bf16.mxu0 %v10271_v27 }
 0x66b   : > { %v9344_v28 = vpop.permute.xlu0 %9343 }
 0x66c   : > { %7699 = vmatmul.mubr.msk.f32.vlgmr.msra.gmra.mrb[24].mxu0 %vm1085_vm2, %v10774_v58  ;;  %v9346_v52 = vunpack.i.h.bf16 %v9344_v28  ;;  %v9345_v45 = vunpack.i.l.bf16 %v9344_v28 }
 0x66d   : > { %7701 = vmatprep.mubr.msk.f32.mxu0 %vm1085_vm2, %v10776_v63  ;;  %8669 = vmatpush3.bf16.msra.mxu0 %v10271_v27  ;;  %v10802_v50 = vpop.eup %9612 }
 0x66e   : > { %v10783_v21 = vpop.permute.xlu1 %9358  ;;  %8671 = vmatprep.subr.bf16.mxu0 %v10235_v6  ;;  %12667 = vst [vmem:[#allocation43_spill] sm:$0xff] %v10802_v50  ;;  %v8702_v56 = vpack.c.bf16 %v9346_v52, %v9345_v45 }
 0x670   : > { %7702 = vmatmul.mubr.msk.f32.gmra.mrb[26].mxu0 %vm1085_vm2, %v10786_v32 }
 0x671   : > { %7704 = vmatprep.mubr.msk.f32.mxu0 %vm1085_vm2, %v10788_v11 }
 0x672   : > { %v9364_v54 = vpop.permute.xlu1 %9363 }
 0x673   : > { %v9366_v10 = vunpack.i.h.bf16 %v9364_v54  ;;  %v9365_v34 = vunpack.i.l.bf16 %v9364_v54 }
 0x674   : > { %7705 = vmatmul.mubr.msk.f32.gmra.mrb[28].mxu0 %vm1085_vm2, %v10794_v8 }
 0x675   : > { %7707 = vmatprep.mubr.msk.f32.mxu0 %vm1085_vm2, %v10796_v14  ;;  %v8726_v62 = vpack.c.bf16 %v9366_v10, %v9365_v34  ;;  %v9351_v10 = vunpack.i.h.bf16 %v10771_v59  ;;  %v9350_v34 = vunpack.i.l.bf16 %v10771_v59 }
 0x677   : > { %8727 = vmatprep.subr.bf16.mxu1 %v8726_v62 }
 0x678   : > { %7708 = vmatmul.mubr.msk.f32.gmra.mrb[30].mxu0 %vm1085_vm2, %v10802_v50  ;;  %8729 = vmatpush3.bf16.msra.mxu1 %v8726_v62 }
 0x679   : > { %7714 = vmatprep.mubr.msk.f32.mxu0 %vm713_vm0, %v10755_v39 }
 0x67c   : > { %7715 = vmatmul.mubr.msk.f32.vlgmr.msra.gmra.mrb[32].mxu0 %vm713_vm0, %v10758_v41 }
 0x67d   : > { %8673 = vmatpush3.bf16.msra.mxu0 %v10235_v6  ;;  %7717 = vmatprep.mubr.msk.f32.mxu0 %vm713_vm0, %v10804_v4 }
 0x67e   : > { %8675 = vmatprep.subr.bf16.mxu0 %v10244_v12 }
 0x680   : > { %7718 = vmatmul.mubr.msk.f32.gmra.mrb[34].mxu0 %vm713_vm0, %v10762_v9 }
 0x681   : > { %8677 = vmatpush3.bf16.msra.mxu0 %v10244_v12  ;;  %7720 = vmatprep.mubr.msk.f32.mxu0 %vm713_vm0, %v10815_v33 }
 0x682   : > { %8679 = vmatprep.subr.bf16.mxu0 %v10257_v19 }
 0x684   : > { %7721 = vmatmul.mubr.msk.f32.gmra.mrb[36].mxu0 %vm713_vm0, %v10766_v49 }
 0x685   : > { %8681 = vmatpush3.bf16.msra.mxu0 %v10257_v19  ;;  %7723 = vmatprep.mubr.msk.f32.mxu0 %vm713_vm0, %v10824_v24 }
 0x686   : > { %8683 = vmatprep.subr.bf16.mxu0 %v10269_v26 }
 0x688   : > { %7724 = vmatmul.mubr.msk.f32.gmra.mrb[38].mxu0 %vm713_vm0, %v10769_v37 }
 0x689   : > { %8685 = vmatpush3.bf16.msra.mxu0 %v10269_v26 }
 0x68a   : > { %8687 = vmatprep.subr.bf16.mxu0 %v10284_v31 }
 0x68d   : > { %8689 = vmatpush3.bf16.msra.mxu0 %v10284_v31 }
 0x68e   : > { %8691 = vmatprep.subr.bf16.mxu0 %v10304_v38 }
 0x691   : > { %8693 = vmatpush3.bf16.msra.mxu0 %v10304_v38 }
 0x692   : > { %8695 = vmatprep.subr.bf16.mxu0 %v10314_v40 }
 0x695   : > { %8697 = vmatpush3.bf16.msra.mxu0 %v10314_v40 }
 0x696   : > { %8699 = vmatprep.subr.bf16.mxu0 %v10324_v43 }
 0x699   : > { %8701 = vmatpush3.bf16.msra.mxu0 %v10324_v43 }
 0x69a   : > { %8704 = vmatprep.subr.msk.bf16.mxu0 %vm10349_vm1, %v8702_v56 }
 0x73f   : > { %v10845_v0 = vpop.f32.mrb[24].mxu0 }
 0x740   : > { %12668 = vst [vmem:[#allocation44_spill] sm:$0xff] %v10845_v0  ;;  %v10847_v20 = vpop.f32.mrb[25].mxu0 }
 0x741   : > { %12669 = vst [vmem:[#allocation45_spill] sm:$0xff] %v10847_v20 }
 0x743   : > { %v10849_v3 = vpop.f32.mrb[26].mxu0 }
 0x744   : > { %12670 = vst [vmem:[#allocation46_spill] sm:$0xff] %v10849_v3  ;;  %v10851_v46 = vpop.f32.mrb[27].mxu0  ;;  %v8708_v3 = vpack.c.bf16 %v9351_v10, %v9350_v34 }
 0x745   : > { %12671 = vst [vmem:[#allocation47_spill] sm:$0xff] %v10851_v46 }
 0x747   : > { %v10853_v61 = vpop.f32.mrb[28].mxu0 }
 0x748   : > { %12672 = vst [vmem:[#allocation48_spill] sm:$0xff] %v10853_v61  ;;  %v10855_v47 = vpop.f32.mrb[29].mxu0 }
 0x749   : > { %12673 = vst [vmem:[#allocation49_spill] sm:$0xff] %v10855_v47  ;;  %v9354_v47 = vpop.permute.xlu0 %9353 }
 0x74b   : > { %v10857_v29 = vpop.f32.mrb[30].mxu0 }
 0x74c   : > { %12674 = vst [vmem:[#allocation50_spill] sm:$0xff] %v10857_v29  ;;  %v10859_v42 = vpop.f32.mrb[31].mxu0 }
 0x74d   : > { %12675 = vst [vmem:[#allocation51_spill] sm:$0xff] %v10859_v42 }
 0x74f   : > { %v7716_v54 = vpop.f32.mrb[32].mxu0 }
 0x750   : > { %v2158_v62 = vpop.f32.mrb[33].mxu0  ;;  %v2198_v52 = vmul.f32 %v7716_v54, %v10433_v53  ;;  %v9355_v53 = vunpack.i.l.bf16 %v9354_v47 }
 0x751   : > { %v2197_v28 = vmul.f32 %v2158_v62, %v10428_v48  ;;  %v9356_v48 = vunpack.i.h.bf16 %v9354_v47 }
 0x753   : > { %v7719_v45 = vpop.f32.mrb[34].mxu0  ;;  %7758 = vmatprep.mubr.f32.mxu0 %v2197_v28 }
 0x754   : > { %v2168_v61 = vpop.f32.mrb[35].mxu0  ;;  %7759 = vmatmul.mubr.f32.vlgmr.msra.gmra.mrb[40].mxu0 %v2198_v52  ;;  %v2200_v42 = vmul.f32 %v7719_v45, %v10443_v13  ;;  %v12676_v45 = vld [vmem:[#allocation17_spill] sm:$0xff] }
 0x755   : > { %v2199_v29 = vmul.f32 %v2168_v61, %v10451_v15  ;;  %8707 = vmatpush3.bf16.xpose.msk.msra.mxu0 %vm10349_vm1, %v8702_v56  ;;  %v8714_v15 = vpack.c.bf16 %v9356_v48, %v9355_v53  ;;  %v12678_v48 = vld [vmem:[#allocation18_spill] sm:$0xff] }
 0x756   : > { %8710 = vmatprep.subr.msk.bf16.mxu0 %vm10349_vm1, %v8708_v3 }
 0x757   : > { %v7722_v59 = vpop.f32.mrb[36].mxu0  ;;  %7761 = vmatprep.mubr.f32.mxu0 %v2199_v29 }
 0x758   : > { %v2178_v54 = vpop.f32.mrb[37].mxu0  ;;  %7762 = vmatmul.mubr.f32.gmra.mrb[42].mxu0 %v2200_v42  ;;  %v2202_v34 = vmul.f32 %v7722_v59, %v10461_v23  ;;  %v9360_v23 = vunpack.i.l.bf16 %v10783_v21  ;;  %v12677_v59 = vld [vmem:[#allocation19_spill] sm:$0xff] }
 0x759   : > { %v2201_v10 = vmul.f32 %v2178_v54, %v10468_v25  ;;  %v9361_v25 = vunpack.i.h.bf16 %v10783_v21 }
 0x75b   : > { %v7725_v62 = vpop.f32.mrb[38].mxu0  ;;  %7764 = vmatprep.mubr.f32.mxu0 %v2201_v10  ;;  %v8720_v47 = vpack.c.bf16 %v9361_v25, %v9360_v23 }
 0x75c   : > { %v2188_v61 = vpop.f32.mrb[39].mxu0  ;;  %7765 = vmatmul.mubr.f32.gmra.mrb[44].mxu0 %v2202_v34  ;;  %v2204_v56 = vmul.f32 %v7725_v62, %v10477_v16 }
 0x75d   : > { %v2203_v13 = vmul.f32 %v2188_v61, %v10484_v35  ;;  %8713 = vmatpush3.bf16.xpose.msk.msra.mxu0 %vm10349_vm1, %v8708_v3 }
 0x75e   : > { %8716 = vmatprep.subr.msk.bf16.mxu0 %vm10349_vm1, %v8714_v15 }
 0x75f   : > { %7767 = vmatprep.mubr.f32.mxu0 %v2203_v13 }
 0x760   : > { %7768 = vmatmul.mubr.f32.gmra.mrb[46].mxu0 %v2204_v56 }
 0x761   : > { %7786 = vmatprep.mubr.msk.f32.mxu0 %vm713_vm0, %v10755_v39 }
 0x765   : > { %8719 = vmatpush3.bf16.xpose.msk.msra.mxu0 %vm10349_vm1, %v8714_v15 }
 0x766   : > { %8722 = vmatprep.subr.msk.bf16.mxu0 %vm10349_vm1, %v8720_v47 }
 0x76d   : > { %8725 = vmatpush3.bf16.xpose.msk.msra.mxu0 %vm10349_vm1, %v8720_v47 }
 0x774   : > { %7787 = vmatmul.mubr.msk.f32.vlgmr.msra.gmra.mrb[40].mxu0 %vm713_vm0, %v10758_v41 }
 0x775   : > { %7789 = vmatprep.mubr.msk.f32.mxu0 %vm713_vm0, %v10804_v4 }
 0x778   : > { %7790 = vmatmul.mubr.msk.f32.gmra.mrb[42].mxu0 %vm713_vm0, %v10762_v9 }
 0x779   : > { %7792 = vmatprep.mubr.msk.f32.mxu0 %vm713_vm0, %v10815_v33 }
 0x77c   : > { %7793 = vmatmul.mubr.msk.f32.gmra.mrb[44].mxu0 %vm713_vm0, %v10766_v49 }
 0x77d   : > { %7795 = vmatprep.mubr.msk.f32.mxu0 %vm713_vm0, %v10824_v24 }
 0x780   : > { %7796 = vmatmul.mubr.msk.f32.gmra.mrb[46].mxu0 %vm713_vm0, %v10769_v37 }
 0x847   : > { %v10903_v16 = vpop.f32.mrb[40].mxu0 }
 0x848   : > { %v2416_v35 = vpop.f32.mrb[41].mxu0  ;;  %v2458_v39 = vsel %vm1085_vm2, %v10903_v16, -inf }
 0x849   : > { %2459 = vmax.xlane.f32.xlu1 %v2458_v39  ;;  %v2455_v9 = vsel %vm1085_vm2, %v2416_v35, -inf }
 0x84a   : > { %2456 = vmax.xlane.f32.xlu0 %v2455_v9 }
 0x84b   : > { %v10908_v41 = vpop.f32.mrb[42].mxu0 }
 0x84c   : > { %v2426_v21 = vpop.f32.mrb[43].mxu0  ;;  %v2464_v49 = vsel %vm1085_vm2, %v10908_v41, -inf }
 0x84d   : > { %v2461_v24 = vsel %vm1085_vm2, %v2426_v21, -inf }
 0x84e   : > { %2465 = vmax.xlane.f32.xlu0 %v2464_v49 }
 0x84f   : > { %v10912_v4 = vpop.f32.mrb[44].mxu0 }
 0x850   : > { %v10914_v37 = vpop.f32.mrb[45].mxu0  ;;  %v2470_v33 = vsel %vm1085_vm2, %v10912_v4, -inf }
 0x851   : > { %2471 = vmax.xlane.f32.xlu1 %v2470_v33  ;;  %v2467_v42 = vsel %vm1085_vm2, %v10914_v37, -inf }
 0x852   : > { %2462 = vmax.xlane.f32.xlu0 %v2461_v24 }
 0x853   : > { %v10919_v3 = vpop.f32.mrb[46].mxu0 }
 0x854   : > { %v10921_v29 = vpop.f32.mrb[47].mxu0  ;;  %v2476_v28 = vsel %vm1085_vm2, %v10919_v3, -inf }
 0x855   : > { %v2473_v52 = vsel %vm1085_vm2, %v10921_v29, -inf }
 0x856   : > { %2468 = vmax.xlane.f32.xlu0 %v2467_v42 }
 0x85a   : > { %2477 = vmax.xlane.f32.xlu0 %v2476_v28 }
 0x85e   : > { %2474 = vmax.xlane.f32.xlu0 %v2473_v52 }
 0x862   : > { %9373 = vrot.lane.b32.xlu1 %v10713_v22, %s10019_s26 }
 0x866   : > { %9378 = vrot.lane.b32.xlu1 %v10422_v5, %s10019_s26 }
 0x86a   : > { %2777 = vrot.lane.b32.xlu1 %v10334_v51, %s10020_s10 }
 0x86e   : > { %2779 = vrot.lane.b32.xlu1 %v10341_v55, %s10020_s10 }
 0x872   : > { %2783 = vrot.lane.b32.xlu1 %v10367_v7, %s10020_s10 }
 0x874   : > { %9368 = vrot.lane.b32.xlu0 %v10727_v36, %s10019_s26 }
 0x876   : > { %2787 = vrot.lane.b32.xlu1 %v10393_v30, %s10020_s10 }
 0x878   : > { %2781 = vrot.lane.b32.xlu0 %v10358_v1, %s10020_s10 }
 0x87a   : > { %2791 = vrot.lane.b32.xlu1 %v10415_v57, %s10020_s10 }
 0x87c   : > { %2785 = vrot.lane.b32.xlu0 %v10381_v18, %s10020_s10 }
 0x87e   : > { %9388 = vrot.lane.b32.xlu1 %v10378_v17, %s10020_s10 }
 0x880   : > { %2789 = vrot.lane.b32.xlu0 %v10407_v44, %s10020_s10 }
 0x882   : > { %9398 = vrot.lane.b32.xlu1 %v10420_v2, %s10020_s10 }
 0x884   : > { %9383 = vrot.lane.b32.xlu0 %v12676_v45, %s10020_s10 }
 0x886   : > { %9403 = vrot.lane.b32.xlu1 %v12677_v59, %s10020_s10 }
 0x888   : > { %9393 = vrot.lane.b32.xlu0 %v12678_v48, %s10020_s10 }
 0x8d6   : > { %v2460_v10 = vpop.xlane.xlu1 %2459 }
 0x8d7   : > { %v2457_v53 = vpop.xlane.xlu0 %2456 }
 0x8d8   : > { %v2479_v54 = vsub.f32 %v2416_v35, %v2457_v53  ;;  %v2480_v35 = vsub.f32 %v10903_v16, %v2460_v10 }
 0x8da   : > { %v2487_v34 = vmul.f32 1.442695, %v2479_v54  ;;  %v2489_v54 = vmul.f32 1.442695, %v2480_v35 }
 0x8db   : > { %v2466_v62 = vpop.xlane.xlu0 %2465 }
 0x8dc   : > { %9614 = vpow2.f32 %v2487_v34  ;;  %v2482_v34 = vsub.f32 %v10908_v41, %v2466_v62 }
 0x8dd   : > { %9616 = vpow2.f32 %v2489_v54 }
 0x8de   : > { %v2472_v15 = vpop.xlane.xlu1 %2471 }
 0x8df   : > { %v2463_v61 = vpop.xlane.xlu0 %2462  ;;  %v2484_v10 = vsub.f32 %v10912_v4, %v2472_v15 }
 0x8e0   : > { %v2481_v49 = vsub.f32 %v2426_v21, %v2463_v61  ;;  %v2493_v21 = vmul.f32 1.442695, %v2482_v34 }
 0x8e1   : > { %v2497_v62 = vmul.f32 1.442695, %v2484_v10 }
 0x8e2   : > { %v9374_v13 = vpop.permute.xlu1 %9373  ;;  %v2491_v46 = vmul.f32 1.442695, %v2481_v49 }
 0x8e3   : > { %v2469_v56 = vpop.xlane.xlu0 %2468  ;;  %v9376_v42 = vunpack.i.h.bf16 %v9374_v13  ;;  %v9375_v28 = vunpack.i.l.bf16 %v9374_v13 }
 0x8e4   : > { %v2483_v20 = vsub.f32 %v10914_v37, %v2469_v56  ;;  %9618 = vpow2.f32 %v2491_v46 }
 0x8e5   : > { %v8734_v16 = vpack.c.bf16 %v9376_v42, %v9375_v28  ;;  %9620 = vpow2.f32 %v2493_v21 }
 0x8e6   : > { %v10961_v25 = vpop.eup %9614  ;;  %v9379_v23 = vpop.permute.xlu1 %9378  ;;  %v2495_v61 = vmul.f32 1.442695, %v2483_v20 }
 0x8e7   : > { %12679 = vst [vmem:[#allocation52_spill] sm:$0xff] %v10961_v25  ;;  %7814 = vmatprep.mubr.msk.f32.mxu1 %vm1085_vm2, %v10961_v25  ;;  %v2478_v47 = vpop.xlane.xlu0 %2477  ;;  %v9381_v14 = vunpack.i.h.bf16 %v9379_v23  ;;  %v9380_v8 = vunpack.i.l.bf16 %v9379_v23  ;;  %v10984_v46 = vpop.eup %9616 }
 0x8e8   : > { %v2486_v56 = vsub.f32 %v10919_v3, %v2478_v47  ;;  %9622 = vpow2.f32 %v2495_v61  ;;  %12680 = vst [vmem:[#allocation53_spill] sm:$0xff] %v10984_v46 }
 0x8e9   : > { %v8738_v37 = vpack.c.bf16 %v9381_v14, %v9380_v8  ;;  %9624 = vpow2.f32 %v2497_v62 }
 0x8ea   : > { %v10965_v39 = vpop.permute.xlu1 %2777 }
 0x8eb   : > { %v2475_v9 = vpop.xlane.xlu0 %2474 }
 0x8ec   : > { %v2485_v13 = vsub.f32 %v10921_v29, %v2475_v9 }
 0x8ee   : > { %v10968_v33 = vpop.permute.xlu1 %2779  ;;  %v2499_v23 = vmul.f32 1.442695, %v2485_v13  ;;  %v10986_v8 = vpop.eup %9618 }
 0x8ef   : > { %v9369_v24 = vpop.permute.xlu0 %9368  ;;  %12681 = vst [vmem:[#allocation54_spill] sm:$0xff] %v10986_v8  ;;  %v10996_v4 = vpop.eup %9620 }
 0x8f0   : > { %v9371_v52 = vunpack.i.h.bf16 %v9369_v24  ;;  %v9370_v53 = vunpack.i.l.bf16 %v9369_v24  ;;  %9626 = vpow2.f32 %v2499_v23  ;;  %12682 = vst [vmem:[#allocation55_spill] sm:$0xff] %v10996_v4 }
 0x8f2   : > { %v10972_v0 = vpop.permute.xlu1 %2783  ;;  %v8730_v50 = vpack.c.bf16 %v9371_v52, %v9370_v53  ;;  %v10998_v3 = vpop.eup %9622 }
 0x8f3   : > { %12683 = vst [vmem:[#allocation56_spill] sm:$0xff] %v10998_v3  ;;  %v11004_v15 = vpop.eup %9624  ;;  %v11014_v28 = vpop.permute.xlu0 %2781 }
 0x8f4   : > { %8731 = vmatprep.subr.bf16.mxu1 %v8730_v50  ;;  %12684 = vst [vmem:[#allocation57_spill] sm:$0xff] %v11004_v15 }
 0x8f5   : > { %8733 = vmatpush3.bf16.msra.mxu1 %v8730_v50  ;;  %v2501_v50 = vmul.f32 1.442695, %v2486_v56 }
 0x8f6   : > { %v10976_v41 = vpop.permute.xlu1 %2787  ;;  %8735 = vmatprep.subr.bf16.mxu1 %v8734_v16 }
 0x8f7   : > { %9628 = vpow2.f32 %v2501_v50  ;;  %v11025_v52 = vpop.permute.xlu0 %2785 }
 0x8f9   : > { %8737 = vmatpush3.bf16.msra.mxu1 %v8734_v16 }
 0x8fa   : > { %v10979_v35 = vpop.permute.xlu1 %2791  ;;  %8739 = vmatprep.subr.bf16.mxu1 %v8738_v37  ;;  %v11006_v49 = vpop.eup %9626 }
 0x8fb   : > { %12685 = vst [vmem:[#allocation58_spill] sm:$0xff] %v11006_v49  ;;  %v11034_v53 = vpop.permute.xlu0 %2789 }
 0x8fd   : > { %8741 = vmatpush3.bf16.msra.mxu1 %v8738_v37 }
 0x8fe   : > { %v10981_v20 = vpop.permute.xlu1 %9388  ;;  %8743 = vmatprep.subr.bf16.mxu1 %v10271_v27 }
 0x8ff   : > { %v9384_v54 = vpop.permute.xlu0 %9383 }
 0x900   : > { %7815 = vmatmul.mubr.msk.f32.vlgmr.msra.gmra.mrb[40].mxu1 %vm1085_vm2, %v10984_v46  ;;  %v9386_v34 = vunpack.i.h.bf16 %v9384_v54  ;;  %v9385_v16 = vunpack.i.l.bf16 %v9384_v54  ;;  %v11076_v54 = vld [vmem:[%s12563_s4] sm:$0xff] }
 0x901   : > { %7817 = vmatprep.mubr.msk.f32.mxu1 %vm1085_vm2, %v10986_v8  ;;  %8745 = vmatpush3.bf16.msra.mxu1 %v10271_v27  ;;  %v11012_v42 = vpop.eup %9628 }
 0x902   : > { %v10993_v14 = vpop.permute.xlu1 %9398  ;;  %8747 = vmatprep.subr.bf16.mxu1 %v10235_v6  ;;  %12686 = vst [vmem:[#allocation59_spill] sm:$0xff] %v11012_v42  ;;  %v8778_v21 = vpack.c.bf16 %v9386_v34, %v9385_v16  ;;  %v11082_v16 = vld [vmem:[%s12563_s4 + $0x8] sm:$0xff] }
 0x904   : > { %7818 = vmatmul.mubr.msk.f32.gmra.mrb[42].mxu1 %vm1085_vm2, %v10996_v4 }
 0x905   : > { %7820 = vmatprep.mubr.msk.f32.mxu1 %vm1085_vm2, %v10998_v3 }
 0x906   : > { %v9404_v29 = vpop.permute.xlu1 %9403 }
 0x907   : > { %v9406_v47 = vunpack.i.h.bf16 %v9404_v29  ;;  %v9405_v9 = vunpack.i.l.bf16 %v9404_v29 }
 0x908   : > { %7821 = vmatmul.mubr.msk.f32.gmra.mrb[44].mxu1 %vm1085_vm2, %v11004_v15 }
 0x909   : > { %7823 = vmatprep.mubr.msk.f32.mxu1 %vm1085_vm2, %v11006_v49  ;;  %v8802_v24 = vpack.c.bf16 %v9406_v47, %v9405_v9  ;;  %v9391_v47 = vunpack.i.h.bf16 %v10981_v20  ;;  %v9390_v9 = vunpack.i.l.bf16 %v10981_v20  ;;  %v9394_v20 = vpop.permute.xlu0 %9393 }
 0x90b   : > { %8803 = vmatprep.subr.bf16.mxu0 %v8802_v24 }
 0x90c   : > { %7824 = vmatmul.mubr.msk.f32.gmra.mrb[46].mxu1 %vm1085_vm2, %v11012_v42  ;;  %8805 = vmatpush3.bf16.msra.mxu0 %v8802_v24 }
 0x90d   : > { %7830 = vmatprep.mubr.msk.f32.mxu1 %vm713_vm0, %v10965_v39 }
 0x910   : > { %7831 = vmatmul.mubr.msk.f32.vlgmr.msra.gmra.mrb[48].mxu1 %vm713_vm0, %v10968_v33 }
 0x911   : > { %8749 = vmatpush3.bf16.msra.mxu1 %v10235_v6  ;;  %7833 = vmatprep.mubr.msk.f32.mxu1 %vm713_vm0, %v11014_v28 }
 0x912   : > { %8751 = vmatprep.subr.bf16.mxu1 %v10244_v12 }
 0x914   : > { %7834 = vmatmul.mubr.msk.f32.gmra.mrb[50].mxu1 %vm713_vm0, %v10972_v0 }
 0x915   : > { %8753 = vmatpush3.bf16.msra.mxu1 %v10244_v12  ;;  %7836 = vmatprep.mubr.msk.f32.mxu1 %vm713_vm0, %v11025_v52 }
 0x916   : > { %8755 = vmatprep.subr.bf16.mxu1 %v10257_v19 }
 0x918   : > { %7837 = vmatmul.mubr.msk.f32.gmra.mrb[52].mxu1 %vm713_vm0, %v10976_v41 }
 0x919   : > { %8757 = vmatpush3.bf16.msra.mxu1 %v10257_v19  ;;  %7839 = vmatprep.mubr.msk.f32.mxu1 %vm713_vm0, %v11034_v53 }
 0x91a   : > { %8759 = vmatprep.subr.bf16.mxu1 %v10269_v26 }
 0x91c   : > { %7840 = vmatmul.mubr.msk.f32.gmra.mrb[54].mxu1 %vm713_vm0, %v10979_v35 }
 0x91d   : > { %8761 = vmatpush3.bf16.msra.mxu1 %v10269_v26 }
 0x91e   : > { %8763 = vmatprep.subr.bf16.mxu1 %v10284_v31 }
 0x921   : > { %8765 = vmatpush3.bf16.msra.mxu1 %v10284_v31 }
 0x922   : > { %8767 = vmatprep.subr.bf16.mxu1 %v10304_v38 }
 0x925   : > { %8769 = vmatpush3.bf16.msra.mxu1 %v10304_v38 }
 0x926   : > { %8771 = vmatprep.subr.bf16.mxu1 %v10314_v40 }
 0x929   : > { %8773 = vmatpush3.bf16.msra.mxu1 %v10314_v40 }
 0x92a   : > { %8775 = vmatprep.subr.bf16.mxu1 %v10324_v43 }
 0x92d   : > { %8777 = vmatpush3.bf16.msra.mxu1 %v10324_v43 }
 0x92e   : > { %8780 = vmatprep.subr.msk.bf16.mxu1 %vm10349_vm1, %v8778_v21 }
 0x9d3   : > { %v11055_v10 = vpop.f32.mrb[40].mxu1 }
 0x9d4   : > { %12687 = vst [vmem:[#allocation60_spill] sm:$0xff] %v11055_v10  ;;  %v11057_v61 = vpop.f32.mrb[41].mxu1 }
 0x9d5   : > { %12688 = vst [vmem:[#allocation61_spill] sm:$0xff] %v11057_v61 }
 0x9d7   : > { %v11059_v13 = vpop.f32.mrb[42].mxu1 }
 0x9d8   : > { %12689 = vst [vmem:[#allocation62_spill] sm:$0xff] %v11059_v13  ;;  %v11061_v37 = vpop.f32.mrb[43].mxu1  ;;  %v11088_v13 = vld [vmem:[%s12563_s4 + $0x10] sm:$0xff] }
 0x9d9   : > { %12690 = vst [vmem:[#allocation63_spill] sm:$0xff] %v11061_v37 }
 0x9db   : > { %v11063_v62 = vpop.f32.mrb[44].mxu1 }
 0x9dc   : > { %12691 = vst [vmem:[#allocation64_spill] sm:$0xff] %v11063_v62  ;;  %v11065_v56 = vpop.f32.mrb[45].mxu1 }
 0x9dd   : > { %12692 = vst [vmem:[#allocation65_spill] sm:$0xff] %v11065_v56 }
 0x9df   : > { %v11067_v23 = vpop.f32.mrb[46].mxu1 }
 0x9e0   : > { %12693 = vst [vmem:[#allocation66_spill] sm:$0xff] %v11067_v23  ;;  %v11069_v50 = vpop.f32.mrb[47].mxu1 }
 0x9e1   : > { %12694 = vst [vmem:[#allocation67_spill] sm:$0xff] %v11069_v50  ;;  %v8784_v50 = vpack.c.bf16 %v9391_v47, %v9390_v9  ;;  %v9396_v9 = vunpack.i.h.bf16 %v9394_v20 }
 0x9e3   : > { %v7832_v29 = vpop.f32.mrb[48].mxu1 }
 0x9e4   : > { %v2875_v24 = vpop.f32.mrb[49].mxu1  ;;  %v2915_v23 = vmul.f32 %v11082_v16, %v7832_v29  ;;  %v11096_v29 = vld [vmem:[%s12563_s4 + $0x18] sm:$0xff] }
 0x9e5   : > { %v2914_v34 = vmul.f32 %v11076_v54, %v2875_v24 }
 0x9e7   : > { %v7835_v62 = vpop.f32.mrb[50].mxu1  ;;  %7874 = vmatprep.mubr.f32.mxu1 %v2914_v34  ;;  %v9395_v34 = vunpack.i.l.bf16 %v9394_v20 }
 0x9e8   : > { %v2885_v56 = vpop.f32.mrb[51].mxu1  ;;  %7875 = vmatmul.mubr.f32.vlgmr.msra.gmra.mrb[56].mxu1 %v2915_v23  ;;  %v2917_v47 = vmul.f32 %v11096_v29, %v7835_v62  ;;  %v11110_v62 = vld [vmem:[%s12563_s4 + $0x28] sm:$0xff] }
 0x9e9   : > { %v2916_v24 = vmul.f32 %v11088_v13, %v2885_v56  ;;  %8783 = vmatpush3.bf16.xpose.msk.msra.mxu1 %vm10349_vm1, %v8778_v21  ;;  %v11104_v21 = vld [vmem:[%s12563_s4 + $0x20] sm:$0xff] }
 0x9ea   : > { %8786 = vmatprep.subr.msk.bf16.mxu1 %vm10349_vm1, %v8784_v50 }
 0x9eb   : > { %v7838_v23 = vpop.f32.mrb[52].mxu1  ;;  %7877 = vmatprep.mubr.f32.mxu1 %v2916_v24  ;;  %v8790_v24 = vpack.c.bf16 %v9396_v9, %v9395_v34  ;;  %v9400_v9 = vunpack.i.l.bf16 %v10993_v14 }
 0x9ec   : > { %v2895_v37 = vpop.f32.mrb[53].mxu1  ;;  %7878 = vmatmul.mubr.f32.gmra.mrb[58].mxu1 %v2917_v47  ;;  %v2919_v10 = vmul.f32 %v11110_v62, %v7838_v23  ;;  %v11116_v47 = vld [vmem:[%s12563_s4 + $0x30] sm:$0xff] }
 0x9ed   : > { %v2918_v56 = vmul.f32 %v11104_v21, %v2895_v37  ;;  %v11124_v37 = vld [vmem:[%s12563_s4 + $0x38] sm:$0xff] }
 0x9ef   : > { %v7841_v61 = vpop.f32.mrb[54].mxu1  ;;  %7880 = vmatprep.mubr.f32.mxu1 %v2918_v56 }
 0x9f0   : > { %v2905_v20 = vpop.f32.mrb[55].mxu1  ;;  %7881 = vmatmul.mubr.f32.gmra.mrb[60].mxu1 %v2919_v10  ;;  %v2921_v23 = vmul.f32 %v11124_v37, %v7841_v61  ;;  %v9401_v10 = vunpack.i.h.bf16 %v10993_v14 }
 0x9f1   : > { %v2920_v42 = vmul.f32 %v11116_v47, %v2905_v20  ;;  %8789 = vmatpush3.bf16.xpose.msk.msra.mxu1 %vm10349_vm1, %v8784_v50 }
 0x9f2   : > { %8792 = vmatprep.subr.msk.bf16.mxu1 %vm10349_vm1, %v8790_v24  ;;  %v8796_v50 = vpack.c.bf16 %v9401_v10, %v9400_v9 }
 0x9f3   : > { %7883 = vmatprep.mubr.f32.mxu1 %v2920_v42 }
 0x9f4   : > { %7884 = vmatmul.mubr.f32.gmra.mrb[62].mxu1 %v2921_v23 }
 0x9f5   : > { %7902 = vmatprep.mubr.msk.f32.mxu1 %vm713_vm0, %v10965_v39 }
 0x9f9   : > { %8795 = vmatpush3.bf16.xpose.msk.msra.mxu1 %vm10349_vm1, %v8790_v24 }
 0x9fa   : > { %8798 = vmatprep.subr.msk.bf16.mxu1 %vm10349_vm1, %v8796_v50 }
 0xa01   : > { %8801 = vmatpush3.bf16.xpose.msk.msra.mxu1 %vm10349_vm1, %v8796_v50 }
 0xa08   : > { %7903 = vmatmul.mubr.msk.f32.vlgmr.msra.gmra.mrb[56].mxu1 %vm713_vm0, %v10968_v33 }
 0xa09   : > { %7905 = vmatprep.mubr.msk.f32.mxu1 %vm713_vm0, %v11014_v28 }
 0xa0c   : > { %7906 = vmatmul.mubr.msk.f32.gmra.mrb[58].mxu1 %vm713_vm0, %v10972_v0 }
 0xa0d   : > { %7908 = vmatprep.mubr.msk.f32.mxu1 %vm713_vm0, %v11025_v52 }
 0xa10   : > { %7909 = vmatmul.mubr.msk.f32.gmra.mrb[60].mxu1 %vm713_vm0, %v10976_v41 }
 0xa11   : > { %7911 = vmatprep.mubr.msk.f32.mxu1 %vm713_vm0, %v11034_v53 }
 0xa14   : > { %7912 = vmatmul.mubr.msk.f32.gmra.mrb[62].mxu1 %vm713_vm0, %v10979_v35 }
 0xadb   : > { %v11153_v39 = vpop.f32.mrb[56].mxu1 }
 0xadc   : > { %v3133_v33 = vpop.f32.mrb[57].mxu1  ;;  %v3175_v14 = vsel %vm1085_vm2, %v11153_v39, -inf }
 0xadd   : > { %3176 = vmax.xlane.f32.xlu1 %v3175_v14  ;;  %v3172_v0 = vsel %vm1085_vm2, %v3133_v33, -inf }
 0xade   : > { %3173 = vmax.xlane.f32.xlu0 %v3172_v0 }
 0xadf   : > { %v11158_v42 = vpop.f32.mrb[58].mxu1 }
 0xae0   : > { %v3143_v28 = vpop.f32.mrb[59].mxu1  ;;  %v3181_v41 = vsel %vm1085_vm2, %v11158_v42, -inf }
 0xae1   : > { %v3178_v61 = vsel %vm1085_vm2, %v3143_v28, -inf }
 0xae2   : > { %3182 = vmax.xlane.f32.xlu0 %v3181_v41 }
 0xae3   : > { %v11162_v52 = vpop.f32.mrb[60].mxu1 }
 0xae4   : > { %v11164_v35 = vpop.f32.mrb[61].mxu1  ;;  %v3187_v53 = vsel %vm1085_vm2, %v11162_v52, -inf }
 0xae5   : > { %3188 = vmax.xlane.f32.xlu1 %v3187_v53  ;;  %v3184_v24 = vsel %vm1085_vm2, %v11164_v35, -inf }
 0xae6   : > { %3179 = vmax.xlane.f32.xlu0 %v3178_v61 }
 0xae7   : > { %v11169_v34 = vpop.f32.mrb[62].mxu1 }
 0xae8   : > { %v11171_v56 = vpop.f32.mrb[63].mxu1  ;;  %v3193_v20 = vsel %vm1085_vm2, %v11169_v34, -inf }
 0xae9   : > { %v3190_v23 = vsel %vm1085_vm2, %v11171_v56, -inf }
 0xaea   : > { %3185 = vmax.xlane.f32.xlu0 %v3184_v24 }
 0xaee   : > { %3194 = vmax.xlane.f32.xlu0 %v3193_v20 }
 0xaf2   : > { %3191 = vmax.xlane.f32.xlu0 %v3190_v23 }
 0xaf6   : > { %9413 = vrot.lane.b32.xlu1 %v10713_v22, %s10020_s10 }
 0xafa   : > { %9418 = vrot.lane.b32.xlu1 %v10422_v5, %s10020_s10 }
 0xafe   : > { %3494 = vrot.lane.b32.xlu1 %v10334_v51, %s10021_s21 }
 0xb02   : > { %3496 = vrot.lane.b32.xlu1 %v10341_v55, %s10021_s21 }
 0xb06   : > { %3500 = vrot.lane.b32.xlu1 %v10367_v7, %s10021_s21 }
 0xb08   : > { %9408 = vrot.lane.b32.xlu0 %v10727_v36, %s10020_s10 }
 0xb0a   : > { %3504 = vrot.lane.b32.xlu1 %v10393_v30, %s10021_s21 }
 0xb0c   : > { %3498 = vrot.lane.b32.xlu0 %v10358_v1, %s10021_s21 }
 0xb0e   : > { %3508 = vrot.lane.b32.xlu1 %v10415_v57, %s10021_s21 }
 0xb10   : > { %3502 = vrot.lane.b32.xlu0 %v10381_v18, %s10021_s21 }
 0xb12   : > { %9428 = vrot.lane.b32.xlu1 %v10378_v17, %s10021_s21 }
 0xb14   : > { %3506 = vrot.lane.b32.xlu0 %v10407_v44, %s10021_s21 }
 0xb16   : > { %9438 = vrot.lane.b32.xlu1 %v10420_v2, %s10021_s21 }
 0xb18   : > { %9423 = vrot.lane.b32.xlu0 %v12676_v45, %s10021_s21 }
 0xb1a   : > { %9443 = vrot.lane.b32.xlu1 %v12677_v59, %s10021_s21 }
 0xb1c   : > { %9433 = vrot.lane.b32.xlu0 %v12678_v48, %s10021_s21 }
 0xb6a   : > { %v3177_v50 = vpop.xlane.xlu1 %3176 }
 0xb6b   : > { %v3174_v10 = vpop.xlane.xlu0 %3173 }
 0xb6c   : > { %v3196_v9 = vsub.f32 %v3133_v33, %v3174_v10  ;;  %v3197_v33 = vsub.f32 %v11153_v39, %v3177_v50 }
 0xb6e   : > { %v3204_v14 = vmul.f32 1.442695, %v3196_v9  ;;  %v3206_v25 = vmul.f32 1.442695, %v3197_v33 }
 0xb6f   : > { %v3183_v0 = vpop.xlane.xlu0 %3182 }
 0xb70   : > { %9630 = vpow2.f32 %v3204_v14  ;;  %v3199_v63 = vsub.f32 %v11158_v42, %v3183_v0 }
 0xb71   : > { %9632 = vpow2.f32 %v3206_v25 }
 0xb72   : > { %v3189_v41 = vpop.xlane.xlu1 %3188 }
 0xb73   : > { %v3180_v53 = vpop.xlane.xlu0 %3179  ;;  %v3201_v50 = vsub.f32 %v11162_v52, %v3189_v41 }
 0xb74   : > { %v3198_v10 = vsub.f32 %v3143_v28, %v3180_v53  ;;  %v3210_v28 = vmul.f32 1.442695, %v3199_v63 }
 0xb75   : > { %v3214_v0 = vmul.f32 1.442695, %v3201_v50 }
 0xb76   : > { %v9414_v61 = vpop.permute.xlu1 %9413  ;;  %v3208_v46 = vmul.f32 1.442695, %v3198_v10 }
 0xb77   : > { %v3186_v24 = vpop.xlane.xlu0 %3185  ;;  %v9416_v4 = vunpack.i.h.bf16 %v9414_v61  ;;  %v9415_v11 = vunpack.i.l.bf16 %v9414_v61 }
 0xb78   : > { %9634 = vpow2.f32 %v3208_v46 }
 0xb79   : > { %v8810_v39 = vpack.c.bf16 %v9416_v4, %v9415_v11  ;;  %9636 = vpow2.f32 %v3210_v28 }
 0xb7a   : > { %v11211_v20 = vpop.eup %9630  ;;  %v9419_v23 = vpop.permute.xlu1 %9418 }
 0xb7b   : > { %12695 = vst [vmem:[#allocation68_spill] sm:$0xff] %v11211_v20  ;;  %7930 = vmatprep.mubr.msk.f32.mxu0 %vm1085_vm2, %v11211_v20  ;;  %v3195_v49 = vpop.xlane.xlu0 %3194  ;;  %v3200_v20 = vsub.f32 %v11164_v35, %v3186_v24  ;;  %v9421_v59 = vunpack.i.h.bf16 %v9419_v23  ;;  %v9420_v45 = vunpack.i.l.bf16 %v9419_v23  ;;  %v11234_v46 = vpop.eup %9632 }
 0xb7c   : > { %12696 = vst [vmem:[#allocation69_spill] sm:$0xff] %v11234_v46 }
 0xb7d   : > { %v3212_v53 = vmul.f32 1.442695, %v3200_v20  ;;  %v8814_v35 = vpack.c.bf16 %v9421_v59, %v9420_v45 }
 0xb7e   : > { %v11215_v15 = vpop.permute.xlu1 %3494 }
 0xb7f   : > { %v3192_v3 = vpop.xlane.xlu0 %3191  ;;  %9638 = vpow2.f32 %v3212_v53 }
 0xb80   : > { %v3202_v61 = vsub.f32 %v11171_v56, %v3192_v3  ;;  %9640 = vpow2.f32 %v3214_v0 }
 0xb82   : > { %v11218_v9 = vpop.permute.xlu1 %3496  ;;  %v3216_v11 = vmul.f32 1.442695, %v3202_v61  ;;  %v11236_v45 = vpop.eup %9634 }
 0xb83   : > { %v9409_v14 = vpop.permute.xlu0 %9408  ;;  %12697 = vst [vmem:[#allocation70_spill] sm:$0xff] %v11236_v45 }
 0xb84   : > { %v9411_v32 = vunpack.i.h.bf16 %v9409_v14  ;;  %v9410_v8 = vunpack.i.l.bf16 %v9409_v14  ;;  %9642 = vpow2.f32 %v3216_v11 }
 0xb86   : > { %v11222_v58 = vpop.permute.xlu1 %3500  ;;  %v8806_v48 = vpack.c.bf16 %v9411_v32, %v9410_v8  ;;  %v3203_v32 = vsub.f32 %v11169_v34, %v3195_v49  ;;  %v11246_v8 = vpop.eup %9636 }
 0xb87   : > { %12698 = vst [vmem:[#allocation71_spill] sm:$0xff] %v11246_v8  ;;  %v11264_v20 = vpop.permute.xlu0 %3498 }
 0xb88   : > { %8807 = vmatprep.subr.bf16.mxu0 %v8806_v48  ;;  %v3218_v63 = vmul.f32 1.442695, %v3203_v32 }
 0xb89   : > { %8809 = vmatpush3.bf16.msra.mxu0 %v8806_v48  ;;  %v11248_v4 = vpop.eup %9638 }
 0xb8a   : > { %v11226_v42 = vpop.permute.xlu1 %3504  ;;  %8811 = vmatprep.subr.bf16.mxu0 %v8810_v39  ;;  %9644 = vpow2.f32 %v3218_v63  ;;  %12699 = vst [vmem:[#allocation72_spill] sm:$0xff] %v11248_v4  ;;  %v11254_v49 = vpop.eup %9640 }
 0xb8b   : > { %12700 = vst [vmem:[#allocation73_spill] sm:$0xff] %v11254_v49  ;;  %v11275_v23 = vpop.permute.xlu0 %3502 }
 0xb8d   : > { %8813 = vmatpush3.bf16.msra.mxu0 %v8810_v39 }
 0xb8e   : > { %v11229_v25 = vpop.permute.xlu1 %3508  ;;  %8815 = vmatprep.subr.bf16.mxu0 %v8814_v35  ;;  %v11256_v56 = vpop.eup %9642 }
 0xb8f   : > { %12701 = vst [vmem:[#allocation74_spill] sm:$0xff] %v11256_v56  ;;  %v11284_v33 = vpop.permute.xlu0 %3506 }
 0xb91   : > { %8817 = vmatpush3.bf16.msra.mxu0 %v8814_v35 }
 0xb92   : > { %v11231_v48 = vpop.permute.xlu1 %9428  ;;  %8819 = vmatprep.subr.bf16.mxu0 %v10271_v27 }
 0xb93   : > { %v9424_v10 = vpop.permute.xlu0 %9423 }
 0xb94   : > { %7931 = vmatmul.mubr.msk.f32.vlgmr.msra.gmra.mrb[48].mxu0 %vm1085_vm2, %v11234_v46  ;;  %v11262_v24 = vpop.eup %9644  ;;  %v9426_v14 = vunpack.i.h.bf16 %v9424_v10  ;;  %v9425_v39 = vunpack.i.l.bf16 %v9424_v10 }
 0xb95   : > { %7933 = vmatprep.mubr.msk.f32.mxu0 %vm1085_vm2, %v11236_v45  ;;  %8821 = vmatpush3.bf16.msra.mxu0 %v10271_v27  ;;  %12702 = vst [vmem:[#allocation75_spill] sm:$0xff] %v11262_v24 }
 0xb96   : > { %v11243_v59 = vpop.permute.xlu1 %9438  ;;  %8823 = vmatprep.subr.bf16.mxu0 %v10235_v6  ;;  %v8854_v28 = vpack.c.bf16 %v9426_v14, %v9425_v39 }
 0xb98   : > { %7934 = vmatmul.mubr.msk.f32.gmra.mrb[50].mxu0 %vm1085_vm2, %v11246_v8 }
 0xb99   : > { %7936 = vmatprep.mubr.msk.f32.mxu0 %vm1085_vm2, %v11248_v4 }
 0xb9a   : > { %v9444_v3 = vpop.permute.xlu1 %9443 }
 0xb9b   : > { %v9446_v52 = vunpack.i.h.bf16 %v9444_v3  ;;  %v9445_v34 = vunpack.i.l.bf16 %v9444_v3 }
 0xb9c   : > { %7937 = vmatmul.mubr.msk.f32.gmra.mrb[52].mxu0 %vm1085_vm2, %v11254_v49 }
 0xb9d   : > { %7939 = vmatprep.mubr.msk.f32.mxu0 %vm1085_vm2, %v11256_v56  ;;  %v8878_v41 = vpack.c.bf16 %v9446_v52, %v9445_v34  ;;  %v9431_v52 = vunpack.i.h.bf16 %v11231_v48  ;;  %v9430_v34 = vunpack.i.l.bf16 %v11231_v48 }
 0xb9f   : > { %8879 = vmatprep.subr.bf16.mxu1 %v8878_v41 }
 0xba0   : > { %7940 = vmatmul.mubr.msk.f32.gmra.mrb[54].mxu0 %vm1085_vm2, %v11262_v24  ;;  %8881 = vmatpush3.bf16.msra.mxu1 %v8878_v41 }
 0xba1   : > { %7946 = vmatprep.mubr.msk.f32.mxu0 %vm713_vm0, %v11215_v15 }
 0xba4   : > { %7947 = vmatmul.mubr.msk.f32.vlgmr.msra.gmra.mrb[56].mxu0 %vm713_vm0, %v11218_v9 }
 0xba5   : > { %8825 = vmatpush3.bf16.msra.mxu0 %v10235_v6  ;;  %7949 = vmatprep.mubr.msk.f32.mxu0 %vm713_vm0, %v11264_v20 }
 0xba6   : > { %8827 = vmatprep.subr.bf16.mxu0 %v10244_v12 }
 0xba8   : > { %7950 = vmatmul.mubr.msk.f32.gmra.mrb[58].mxu0 %vm713_vm0, %v11222_v58 }
 0xba9   : > { %8829 = vmatpush3.bf16.msra.mxu0 %v10244_v12  ;;  %7952 = vmatprep.mubr.msk.f32.mxu0 %vm713_vm0, %v11275_v23 }
 0xbaa   : > { %8831 = vmatprep.subr.bf16.mxu0 %v10257_v19 }
 0xbac   : > { %7953 = vmatmul.mubr.msk.f32.gmra.mrb[60].mxu0 %vm713_vm0, %v11226_v42 }
 0xbad   : > { %8833 = vmatpush3.bf16.msra.mxu0 %v10257_v19  ;;  %7955 = vmatprep.mubr.msk.f32.mxu0 %vm713_vm0, %v11284_v33 }
 0xbae   : > { %8835 = vmatprep.subr.bf16.mxu0 %v10269_v26 }
 0xbb0   : > { %7956 = vmatmul.mubr.msk.f32.gmra.mrb[62].mxu0 %vm713_vm0, %v11229_v25 }
 0xbb1   : > { %8837 = vmatpush3.bf16.msra.mxu0 %v10269_v26 }
 0xbb2   : > { %8839 = vmatprep.subr.bf16.mxu0 %v10284_v31 }
 0xbb5   : > { %8841 = vmatpush3.bf16.msra.mxu0 %v10284_v31 }
 0xbb6   : > { %8843 = vmatprep.subr.bf16.mxu0 %v10304_v38 }
 0xbb9   : > { %8845 = vmatpush3.bf16.msra.mxu0 %v10304_v38 }
 0xbba   : > { %8847 = vmatprep.subr.bf16.mxu0 %v10314_v40 }
 0xbbd   : > { %8849 = vmatpush3.bf16.msra.mxu0 %v10314_v40 }
 0xbbe   : > { %8851 = vmatprep.subr.bf16.mxu0 %v10324_v43 }
 0xbc1   : > { %8853 = vmatpush3.bf16.msra.mxu0 %v10324_v43 }
 0xbc2   : > { %8856 = vmatprep.subr.msk.bf16.mxu0 %vm10349_vm1, %v8854_v28 }
 0xc67   : > { %v11305_v50 = vpop.f32.mrb[48].mxu0 }
 0xc68   : > { %12703 = vst [vmem:[#allocation76_spill] sm:$0xff] %v11305_v50  ;;  %v11307_v53 = vpop.f32.mrb[49].mxu0 }
 0xc69   : > { %12704 = vst [vmem:[#allocation77_spill] sm:$0xff] %v11307_v53 }
 0xc6b   : > { %v11309_v61 = vpop.f32.mrb[50].mxu0 }
 0xc6c   : > { %12705 = vst [vmem:[#allocation78_spill] sm:$0xff] %v11309_v61  ;;  %v11311_v35 = vpop.f32.mrb[51].mxu0  ;;  %v8860_v61 = vpack.c.bf16 %v9431_v52, %v9430_v34 }
 0xc6d   : > { %12706 = vst [vmem:[#allocation79_spill] sm:$0xff] %v11311_v35 }
 0xc6f   : > { %v11313_v0 = vpop.f32.mrb[52].mxu0 }
 0xc70   : > { %12707 = vst [vmem:[#allocation80_spill] sm:$0xff] %v11313_v0  ;;  %v11315_v32 = vpop.f32.mrb[53].mxu0 }
 0xc71   : > { %12708 = vst [vmem:[#allocation81_spill] sm:$0xff] %v11315_v32  ;;  %v9434_v32 = vpop.permute.xlu0 %9433 }
 0xc73   : > { %v11317_v11 = vpop.f32.mrb[54].mxu0 }
 0xc74   : > { %12709 = vst [vmem:[#allocation82_spill] sm:$0xff] %v11317_v11  ;;  %v11319_v63 = vpop.f32.mrb[55].mxu0 }
 0xc75   : > { %12710 = vst [vmem:[#allocation83_spill] sm:$0xff] %v11319_v63 }
 0xc77   : > { %v7948_v3 = vpop.f32.mrb[56].mxu0 }
 0xc78   : > { %v3592_v41 = vpop.f32.mrb[57].mxu0  ;;  %v3632_v14 = vmul.f32 %v11082_v16, %v7948_v3  ;;  %v9435_v3 = vunpack.i.l.bf16 %v9434_v32 }
 0xc79   : > { %v3631_v10 = vmul.f32 %v11076_v54, %v3592_v41  ;;  %v9436_v41 = vunpack.i.h.bf16 %v9434_v32  ;;  %v9440_v32 = vunpack.i.l.bf16 %v11243_v59 }
 0xc7b   : > { %v7951_v39 = vpop.f32.mrb[58].mxu0  ;;  %7990 = vmatprep.mubr.f32.mxu0 %v3631_v10 }
 0xc7c   : > { %v3602_v0 = vpop.f32.mrb[59].mxu0  ;;  %7991 = vmatmul.mubr.f32.vlgmr.msra.gmra.mrb[64].mxu0 %v3632_v14  ;;  %v3634_v63 = vmul.f32 %v11096_v29, %v7951_v39 }
 0xc7d   : > { %v3633_v11 = vmul.f32 %v11088_v13, %v3602_v0  ;;  %8859 = vmatpush3.bf16.xpose.msk.msra.mxu0 %vm10349_vm1, %v8854_v28  ;;  %v8866_v0 = vpack.c.bf16 %v9436_v41, %v9435_v3 }
 0xc7e   : > { %8862 = vmatprep.subr.msk.bf16.mxu0 %vm10349_vm1, %v8860_v61 }
 0xc7f   : > { %v7954_v48 = vpop.f32.mrb[60].mxu0  ;;  %7993 = vmatprep.mubr.f32.mxu0 %v3633_v11 }
 0xc80   : > { %v3612_v35 = vpop.f32.mrb[61].mxu0  ;;  %7994 = vmatmul.mubr.f32.gmra.mrb[66].mxu0 %v3634_v63  ;;  %v3636_v34 = vmul.f32 %v11110_v62, %v7954_v48 }
 0xc81   : > { %v3635_v52 = vmul.f32 %v11104_v21, %v3612_v35  ;;  %v9441_v35 = vunpack.i.h.bf16 %v11243_v59 }
 0xc83   : > { %v7957_v10 = vpop.f32.mrb[62].mxu0  ;;  %7996 = vmatprep.mubr.f32.mxu0 %v3635_v52  ;;  %v8872_v63 = vpack.c.bf16 %v9441_v35, %v9440_v32 }
 0xc84   : > { %v3622_v14 = vpop.f32.mrb[63].mxu0  ;;  %7997 = vmatmul.mubr.f32.gmra.mrb[68].mxu0 %v3636_v34  ;;  %v3638_v11 = vmul.f32 %v11124_v37, %v7957_v10  ;;  %v12711_v10 = vld [vmem:[#allocation17_spill] sm:$0xff] }
 0xc85   : > { %v3637_v28 = vmul.f32 %v11116_v47, %v3622_v14  ;;  %8865 = vmatpush3.bf16.xpose.msk.msra.mxu0 %vm10349_vm1, %v8860_v61  ;;  %v12713_v14 = vld [vmem:[#allocation18_spill] sm:$0xff] }
 0xc86   : > { %8868 = vmatprep.subr.msk.bf16.mxu0 %vm10349_vm1, %v8866_v0 }
 0xc87   : > { %7999 = vmatprep.mubr.f32.mxu0 %v3637_v28 }
 0xc88   : > { %8000 = vmatmul.mubr.f32.gmra.mrb[70].mxu0 %v3638_v11 }
 0xc89   : > { %8018 = vmatprep.mubr.msk.f32.mxu0 %vm713_vm0, %v11215_v15 }
 0xc8d   : > { %8871 = vmatpush3.bf16.xpose.msk.msra.mxu0 %vm10349_vm1, %v8866_v0  ;;  %v12712_v0 = vld [vmem:[#allocation19_spill] sm:$0xff] }
 0xc8e   : > { %8874 = vmatprep.subr.msk.bf16.mxu0 %vm10349_vm1, %v8872_v63 }
 0xc95   : > { %8877 = vmatpush3.bf16.xpose.msk.msra.mxu0 %vm10349_vm1, %v8872_v63 }
 0xc9c   : > { %8019 = vmatmul.mubr.msk.f32.vlgmr.msra.gmra.mrb[64].mxu0 %vm713_vm0, %v11218_v9 }
 0xc9d   : > { %8021 = vmatprep.mubr.msk.f32.mxu0 %vm713_vm0, %v11264_v20 }
 0xca0   : > { %8022 = vmatmul.mubr.msk.f32.gmra.mrb[66].mxu0 %vm713_vm0, %v11222_v58 }
 0xca1   : > { %8024 = vmatprep.mubr.msk.f32.mxu0 %vm713_vm0, %v11275_v23 }
 0xca4   : > { %8025 = vmatmul.mubr.msk.f32.gmra.mrb[68].mxu0 %vm713_vm0, %v11226_v42 }
 0xca5   : > { %8027 = vmatprep.mubr.msk.f32.mxu0 %vm713_vm0, %v11284_v33 }
 0xca8   : > { %8028 = vmatmul.mubr.msk.f32.gmra.mrb[70].mxu0 %vm713_vm0, %v11229_v25 }
 0xd6f   : > { %v11363_v15 = vpop.f32.mrb[64].mxu0 }
 0xd70   : > { %v3850_v9 = vpop.f32.mrb[65].mxu0  ;;  %v3892_v59 = vsel %vm1085_vm2, %v11363_v15, -inf }
 0xd71   : > { %3893 = vmax.xlane.f32.xlu1 %v3892_v59  ;;  %v3889_v58 = vsel %vm1085_vm2, %v3850_v9, -inf }
 0xd72   : > { %3890 = vmax.xlane.f32.xlu0 %v3889_v58 }
 0xd73   : > { %v11368_v20 = vpop.f32.mrb[66].mxu0 }
 0xd74   : > { %v3860_v23 = vpop.f32.mrb[67].mxu0  ;;  %v3898_v42 = vsel %vm1085_vm2, %v11368_v20, -inf }
 0xd75   : > { %v3895_v39 = vsel %vm1085_vm2, %v3860_v23, -inf }
 0xd76   : > { %3899 = vmax.xlane.f32.xlu0 %v3898_v42 }
 0xd77   : > { %v11372_v33 = vpop.f32.mrb[68].mxu0 }
 0xd78   : > { %v11374_v25 = vpop.f32.mrb[69].mxu0  ;;  %v3904_v61 = vsel %vm1085_vm2, %v11372_v33, -inf }
 0xd79   : > { %3905 = vmax.xlane.f32.xlu1 %v3904_v61  ;;  %v3901_v3 = vsel %vm1085_vm2, %v11374_v25, -inf }
 0xd7a   : > { %3896 = vmax.xlane.f32.xlu0 %v3895_v39 }
 0xd7b   : > { %v11379_v48 = vpop.f32.mrb[70].mxu0 }
 0xd7c   : > { %v11381_v41 = vpop.f32.mrb[71].mxu0  ;;  %v3910_v52 = vsel %vm1085_vm2, %v11379_v48, -inf }
 0xd7d   : > { %v3907_v34 = vsel %vm1085_vm2, %v11381_v41, -inf }
 0xd7e   : > { %3902 = vmax.xlane.f32.xlu0 %v3901_v3 }
 0xd82   : > { %3911 = vmax.xlane.f32.xlu0 %v3910_v52 }
 0xd86   : > { %3908 = vmax.xlane.f32.xlu0 %v3907_v34 }
 0xd8a   : > { %9453 = vrot.lane.b32.xlu1 %v10713_v22, %s10021_s21 }
 0xd8e   : > { %9458 = vrot.lane.b32.xlu1 %v10422_v5, %s10021_s21 }
 0xd92   : > { %4211 = vrot.lane.b32.xlu1 %v10334_v51, %s10022_s19 }
 0xd96   : > { %4213 = vrot.lane.b32.xlu1 %v10341_v55, %s10022_s19 }
 0xd9a   : > { %4217 = vrot.lane.b32.xlu1 %v10367_v7, %s10022_s19 }
 0xd9c   : > { %9448 = vrot.lane.b32.xlu0 %v10727_v36, %s10021_s21 }
 0xd9e   : > { %4221 = vrot.lane.b32.xlu1 %v10393_v30, %s10022_s19 }
 0xda0   : > { %4215 = vrot.lane.b32.xlu0 %v10358_v1, %s10022_s19 }
 0xda2   : > { %4225 = vrot.lane.b32.xlu1 %v10415_v57, %s10022_s19 }
 0xda4   : > { %4219 = vrot.lane.b32.xlu0 %v10381_v18, %s10022_s19 }
 0xda6   : > { %9468 = vrot.lane.b32.xlu1 %v10378_v17, %s10022_s19 }
 0xda8   : > { %4223 = vrot.lane.b32.xlu0 %v10407_v44, %s10022_s19 }
 0xdaa   : > { %9478 = vrot.lane.b32.xlu1 %v10420_v2, %s10022_s19 }
 0xdac   : > { %9463 = vrot.lane.b32.xlu0 %v12711_v10, %s10022_s19 }
 0xdae   : > { %9483 = vrot.lane.b32.xlu1 %v12712_v0, %s10022_s19 }
 0xdb0   : > { %9473 = vrot.lane.b32.xlu0 %v12713_v14, %s10022_s19 }
 0xdfe   : > { %v3894_v35 = vpop.xlane.xlu1 %3893 }
 0xdff   : > { %v3891_v28 = vpop.xlane.xlu0 %3890 }
 0xe00   : > { %v3913_v11 = vsub.f32 %v3850_v9, %v3891_v28  ;;  %v3914_v9 = vsub.f32 %v11363_v15, %v3894_v35 }
 0xe02   : > { %v3921_v32 = vmul.f32 1.442695, %v3913_v11  ;;  %v3923_v4 = vmul.f32 1.442695, %v3914_v9 }
 0xe03   : > { %v3900_v63 = vpop.xlane.xlu0 %3899 }
 0xe04   : > { %9646 = vpow2.f32 %v3921_v32  ;;  %v3916_v8 = vsub.f32 %v11368_v20, %v3900_v63 }
 0xe05   : > { %9648 = vpow2.f32 %v3923_v4 }
 0xe06   : > { %v3906_v59 = vpop.xlane.xlu1 %3905 }
 0xe07   : > { %v3897_v58 = vpop.xlane.xlu0 %3896  ;;  %v3918_v35 = vsub.f32 %v11372_v33, %v3906_v59 }
 0xe08   : > { %v3915_v28 = vsub.f32 %v3860_v23, %v3897_v58  ;;  %v3927_v23 = vmul.f32 1.442695, %v3916_v8 }
 0xe09   : > { %v3931_v63 = vmul.f32 1.442695, %v3918_v35 }
 0xe0a   : > { %v9454_v42 = vpop.permute.xlu1 %9453  ;;  %v3925_v45 = vmul.f32 1.442695, %v3915_v28 }
 0xe0b   : > { %v3903_v61 = vpop.xlane.xlu0 %3902  ;;  %v9456_v53 = vunpack.i.h.bf16 %v9454_v42  ;;  %v9455_v24 = vunpack.i.l.bf16 %v9454_v42 }
 0xe0c   : > { %9650 = vpow2.f32 %v3925_v45 }
 0xe0d   : > { %v8886_v15 = vpack.c.bf16 %v9456_v53, %v9455_v24  ;;  %9652 = vpow2.f32 %v3927_v23 }
 0xe0e   : > { %v11421_v39 = vpop.eup %9646  ;;  %v9459_v3 = vpop.permute.xlu1 %9458 }
 0xe0f   : > { %12714 = vst [vmem:[#allocation84_spill] sm:$0xff] %v11421_v39  ;;  %8046 = vmatprep.mubr.msk.f32.mxu1 %vm1085_vm2, %v11421_v39  ;;  %v3912_v52 = vpop.xlane.xlu0 %3911  ;;  %v3917_v39 = vsub.f32 %v11374_v25, %v3903_v61  ;;  %v9461_v0 = vunpack.i.h.bf16 %v9459_v3  ;;  %v9460_v10 = vunpack.i.l.bf16 %v9459_v3  ;;  %v11444_v24 = vpop.eup %9648 }
 0xe11   : > { %v3929_v58 = vmul.f32 1.442695, %v3917_v39  ;;  %v8890_v25 = vpack.c.bf16 %v9461_v0, %v9460_v10 }
 0xe12   : > { %v11425_v34 = vpop.permute.xlu1 %4211 }
 0xe13   : > { %v3909_v50 = vpop.xlane.xlu0 %3908  ;;  %9654 = vpow2.f32 %v3929_v58 }
 0xe14   : > { %v3919_v42 = vsub.f32 %v11381_v41, %v3909_v50  ;;  %9656 = vpow2.f32 %v3931_v63 }
 0xe16   : > { %v11428_v11 = vpop.permute.xlu1 %4213  ;;  %v11446_v50 = vpop.eup %9650 }
 0xe17   : > { %v9449_v32 = vpop.permute.xlu0 %9448  ;;  %v11456_v33 = vpop.eup %9652 }
 0xe18   : > { %v9451_v56 = vunpack.i.h.bf16 %v9449_v32  ;;  %v9450_v49 = vunpack.i.l.bf16 %v9449_v32 }
 0xe1a   : > { %v11432_v46 = vpop.permute.xlu1 %4217  ;;  %v8882_v14 = vpack.c.bf16 %v9451_v56, %v9450_v49  ;;  %v3920_v49 = vsub.f32 %v11379_v48, %v3912_v52  ;;  %v3933_v56 = vmul.f32 1.442695, %v3919_v42 }
 0xe1b   : > { %v11474_v3 = vpop.permute.xlu0 %4215 }
 0xe1c   : > { %8883 = vmatprep.subr.bf16.mxu1 %v8882_v14  ;;  %v3935_v8 = vmul.f32 1.442695, %v3920_v49  ;;  %9658 = vpow2.f32 %v3933_v56 }
 0xe1d   : > { %8885 = vmatpush3.bf16.msra.mxu1 %v8882_v14  ;;  %v11458_v48 = vpop.eup %9654 }
 0xe1e   : > { %v11436_v20 = vpop.permute.xlu1 %4221  ;;  %8887 = vmatprep.subr.bf16.mxu1 %v8886_v15  ;;  %9660 = vpow2.f32 %v3935_v8  ;;  %v11464_v10 = vpop.eup %9656 }
 0xe1f   : > { %12715 = vst [vmem:[#allocation85_spill] sm:$0xff] %v11464_v10  ;;  %v11485_v52 = vpop.permute.xlu0 %4219 }
 0xe21   : > { %8889 = vmatpush3.bf16.msra.mxu1 %v8886_v15 }
 0xe22   : > { %v11439_v4 = vpop.permute.xlu1 %4225  ;;  %8891 = vmatprep.subr.bf16.mxu1 %v8890_v25 }
 0xe23   : > { %v11494_v9 = vpop.permute.xlu0 %4223 }
 0xe25   : > { %8893 = vmatpush3.bf16.msra.mxu1 %v8890_v25 }
 0xe26   : > { %v11441_v45 = vpop.permute.xlu1 %9468  ;;  %8895 = vmatprep.subr.bf16.mxu1 %v10271_v27  ;;  %v11466_v59 = vpop.eup %9658 }
 0xe27   : > { %12716 = vst [vmem:[#allocation86_spill] sm:$0xff] %v11466_v59  ;;  %v9464_v28 = vpop.permute.xlu0 %9463 }
 0xe28   : > { %8047 = vmatmul.mubr.msk.f32.vlgmr.msra.gmra.mrb[64].mxu1 %vm1085_vm2, %v11444_v24  ;;  %v11472_v39 = vpop.eup %9660  ;;  %v9466_v32 = vunpack.i.h.bf16 %v9464_v28  ;;  %v9465_v15 = vunpack.i.l.bf16 %v9464_v28 }
 0xe29   : > { %8049 = vmatprep.mubr.msk.f32.mxu1 %vm1085_vm2, %v11446_v50  ;;  %8897 = vmatpush3.bf16.msra.mxu1 %v10271_v27  ;;  %12717 = vst [vmem:[#allocation87_spill] sm:$0xff] %v11472_v39 }
 0xe2a   : > { %v11453_v53 = vpop.permute.xlu1 %9478  ;;  %8899 = vmatprep.subr.bf16.mxu1 %v10235_v6  ;;  %v8930_v23 = vpack.c.bf16 %v9466_v32, %v9465_v15 }
 0xe2c   : > { %8050 = vmatmul.mubr.msk.f32.gmra.mrb[66].mxu1 %vm1085_vm2, %v11456_v33 }
 0xe2d   : > { %8052 = vmatprep.mubr.msk.f32.mxu1 %vm1085_vm2, %v11458_v48 }
 0xe2e   : > { %v9484_v41 = vpop.permute.xlu1 %9483 }
 0xe2f   : > { %v9486_v0 = vunpack.i.h.bf16 %v9484_v41  ;;  %v9485_v14 = vunpack.i.l.bf16 %v9484_v41 }
 0xe30   : > { %8053 = vmatmul.mubr.msk.f32.gmra.mrb[68].mxu1 %vm1085_vm2, %v11464_v10 }
 0xe31   : > { %8055 = vmatprep.mubr.msk.f32.mxu1 %vm1085_vm2, %v11466_v59  ;;  %v8954_v61 = vpack.c.bf16 %v9486_v0, %v9485_v14  ;;  %v9471_v0 = vunpack.i.h.bf16 %v11441_v45  ;;  %v9470_v14 = vunpack.i.l.bf16 %v11441_v45 }
 0xe33   : > { %8955 = vmatprep.subr.bf16.mxu0 %v8954_v61 }
 0xe34   : > { %8056 = vmatmul.mubr.msk.f32.gmra.mrb[70].mxu1 %vm1085_vm2, %v11472_v39  ;;  %8957 = vmatpush3.bf16.msra.mxu0 %v8954_v61 }
 0xe35   : > { %8062 = vmatprep.mubr.msk.f32.mxu1 %vm713_vm0, %v11425_v34 }
 0xe38   : > { %8063 = vmatmul.mubr.msk.f32.vlgmr.msra.gmra.mrb[72].mxu1 %vm713_vm0, %v11428_v11 }
 0xe39   : > { %8901 = vmatpush3.bf16.msra.mxu1 %v10235_v6  ;;  %8065 = vmatprep.mubr.msk.f32.mxu1 %vm713_vm0, %v11474_v3 }
 0xe3a   : > { %8903 = vmatprep.subr.bf16.mxu1 %v10244_v12 }
 0xe3c   : > { %8066 = vmatmul.mubr.msk.f32.gmra.mrb[74].mxu1 %vm713_vm0, %v11432_v46 }
 0xe3d   : > { %8905 = vmatpush3.bf16.msra.mxu1 %v10244_v12  ;;  %8068 = vmatprep.mubr.msk.f32.mxu1 %vm713_vm0, %v11485_v52 }
 0xe3e   : > { %8907 = vmatprep.subr.bf16.mxu1 %v10257_v19 }
 0xe40   : > { %8069 = vmatmul.mubr.msk.f32.gmra.mrb[76].mxu1 %vm713_vm0, %v11436_v20 }
 0xe41   : > { %8909 = vmatpush3.bf16.msra.mxu1 %v10257_v19  ;;  %8071 = vmatprep.mubr.msk.f32.mxu1 %vm713_vm0, %v11494_v9 }
 0xe42   : > { %8911 = vmatprep.subr.bf16.mxu1 %v10269_v26 }
 0xe44   : > { %8072 = vmatmul.mubr.msk.f32.gmra.mrb[78].mxu1 %vm713_vm0, %v11439_v4 }
 0xe45   : > { %8913 = vmatpush3.bf16.msra.mxu1 %v10269_v26 }
 0xe46   : > { %8915 = vmatprep.subr.bf16.mxu1 %v10284_v31 }
 0xe49   : > { %8917 = vmatpush3.bf16.msra.mxu1 %v10284_v31 }
 0xe4a   : > { %8919 = vmatprep.subr.bf16.mxu1 %v10304_v38 }
 0xe4d   : > { %8921 = vmatpush3.bf16.msra.mxu1 %v10304_v38 }
 0xe4e   : > { %8923 = vmatprep.subr.bf16.mxu1 %v10314_v40 }
 0xe51   : > { %8925 = vmatpush3.bf16.msra.mxu1 %v10314_v40 }
 0xe52   : > { %8927 = vmatprep.subr.bf16.mxu1 %v10324_v43 }
 0xe55   : > { %8929 = vmatpush3.bf16.msra.mxu1 %v10324_v43 }
 0xe56   : > { %8932 = vmatprep.subr.msk.bf16.mxu1 %vm10349_vm1, %v8930_v23 }
 0xefb   : > { %v11515_v35 = vpop.f32.mrb[64].mxu1 }
 0xefc   : > { %12718 = vst [vmem:[#allocation88_spill] sm:$0xff] %v11515_v35  ;;  %v11517_v58 = vpop.f32.mrb[65].mxu1 }
 0xefd   : > { %12719 = vst [vmem:[#allocation89_spill] sm:$0xff] %v11517_v58 }
 0xeff   : > { %v11519_v42 = vpop.f32.mrb[66].mxu1 }
 0xf00   : > { %12720 = vst [vmem:[#allocation90_spill] sm:$0xff] %v11519_v42  ;;  %v11521_v25 = vpop.f32.mrb[67].mxu1  ;;  %v8936_v42 = vpack.c.bf16 %v9471_v0, %v9470_v14 }
 0xf01   : > { %12721 = vst [vmem:[#allocation91_spill] sm:$0xff] %v11521_v25 }
 0xf03   : > { %v11523_v63 = vpop.f32.mrb[68].mxu1 }
 0xf04   : > { %12722 = vst [vmem:[#allocation92_spill] sm:$0xff] %v11523_v63  ;;  %v11525_v49 = vpop.f32.mrb[69].mxu1 }
 0xf05   : > { %12723 = vst [vmem:[#allocation93_spill] sm:$0xff] %v11525_v49  ;;  %v9474_v49 = vpop.permute.xlu0 %9473 }
 0xf07   : > { %v11527_v56 = vpop.f32.mrb[70].mxu1 }
 0xf08   : > { %12724 = vst [vmem:[#allocation94_spill] sm:$0xff] %v11527_v56  ;;  %v11529_v8 = vpop.f32.mrb[71].mxu1 }
 0xf09   : > { %12725 = vst [vmem:[#allocation95_spill] sm:$0xff] %v11529_v8 }
 0xf0b   : > { %v8064_v41 = vpop.f32.mrb[72].mxu1 }
 0xf0c   : > { %v4309_v61 = vpop.f32.mrb[73].mxu1  ;;  %v4349_v32 = vmul.f32 %v11082_v16, %v8064_v41  ;;  %v9475_v16 = vunpack.i.l.bf16 %v9474_v49 }
 0xf0d   : > { %v4348_v28 = vmul.f32 %v11076_v54, %v4309_v61  ;;  %v9476_v54 = vunpack.i.h.bf16 %v9474_v49 }
 0xf0f   : > { %v8067_v15 = vpop.f32.mrb[74].mxu1  ;;  %8106 = vmatprep.mubr.f32.mxu1 %v4348_v28 }
 0xf10   : > { %v4319_v63 = vpop.f32.mrb[75].mxu1  ;;  %8107 = vmatmul.mubr.f32.vlgmr.msra.gmra.mrb[80].mxu1 %v4349_v32  ;;  %v4351_v8 = vmul.f32 %v11096_v29, %v8067_v15  ;;  %v12726_v15 = vld [vmem:[#allocation17_spill] sm:$0xff] }
 0xf11   : > { %v4350_v56 = vmul.f32 %v11088_v13, %v4319_v63  ;;  %8935 = vmatpush3.bf16.xpose.msk.msra.mxu1 %vm10349_vm1, %v8930_v23  ;;  %v8942_v13 = vpack.c.bf16 %v9476_v54, %v9475_v16  ;;  %v12728_v54 = vld [vmem:[#allocation18_spill] sm:$0xff] }
 0xf12   : > { %8938 = vmatprep.subr.msk.bf16.mxu1 %vm10349_vm1, %v8936_v42 }
 0xf13   : > { %v8070_v45 = vpop.f32.mrb[76].mxu1  ;;  %8109 = vmatprep.mubr.f32.mxu1 %v4350_v56 }
 0xf14   : > { %v4329_v41 = vpop.f32.mrb[77].mxu1  ;;  %8110 = vmatmul.mubr.f32.gmra.mrb[82].mxu1 %v4351_v8  ;;  %v4353_v14 = vmul.f32 %v11110_v62, %v8070_v45  ;;  %v9480_v62 = vunpack.i.l.bf16 %v11453_v53  ;;  %v12727_v45 = vld [vmem:[#allocation19_spill] sm:$0xff] }
 0xf15   : > { %v4352_v0 = vmul.f32 %v11104_v21, %v4329_v41  ;;  %v9481_v21 = vunpack.i.h.bf16 %v11453_v53 }
 0xf17   : > { %v8073_v61 = vpop.f32.mrb[78].mxu1  ;;  %8112 = vmatprep.mubr.f32.mxu1 %v4352_v0  ;;  %v8948_v49 = vpack.c.bf16 %v9481_v21, %v9480_v62 }
 0xf18   : > { %v4339_v63 = vpop.f32.mrb[79].mxu1  ;;  %8113 = vmatmul.mubr.f32.gmra.mrb[84].mxu1 %v4353_v14  ;;  %v4355_v23 = vmul.f32 %v11124_v37, %v8073_v61 }
 0xf19   : > { %v4354_v29 = vmul.f32 %v11116_v47, %v4339_v63  ;;  %8941 = vmatpush3.bf16.xpose.msk.msra.mxu1 %vm10349_vm1, %v8936_v42 }
 0xf1a   : > { %8944 = vmatprep.subr.msk.bf16.mxu1 %vm10349_vm1, %v8942_v13 }
 0xf1b   : > { %8115 = vmatprep.mubr.f32.mxu1 %v4354_v29 }
 0xf1c   : > { %8116 = vmatmul.mubr.f32.gmra.mrb[86].mxu1 %v4355_v23 }
 0xf1d   : > { %8134 = vmatprep.mubr.msk.f32.mxu1 %vm713_vm0, %v11425_v34 }
 0xf21   : > { %8947 = vmatpush3.bf16.xpose.msk.msra.mxu1 %vm10349_vm1, %v8942_v13 }
 0xf22   : > { %8950 = vmatprep.subr.msk.bf16.mxu1 %vm10349_vm1, %v8948_v49 }
 0xf29   : > { %8953 = vmatpush3.bf16.xpose.msk.msra.mxu1 %vm10349_vm1, %v8948_v49 }
 0xf30   : > { %8135 = vmatmul.mubr.msk.f32.vlgmr.msra.gmra.mrb[80].mxu1 %vm713_vm0, %v11428_v11 }
 0xf31   : > { %8137 = vmatprep.mubr.msk.f32.mxu1 %vm713_vm0, %v11474_v3 }
 0xf34   : > { %8138 = vmatmul.mubr.msk.f32.gmra.mrb[82].mxu1 %vm713_vm0, %v11432_v46 }
 0xf35   : > { %8140 = vmatprep.mubr.msk.f32.mxu1 %vm713_vm0, %v11485_v52 }
 0xf38   : > { %8141 = vmatmul.mubr.msk.f32.gmra.mrb[84].mxu1 %vm713_vm0, %v11436_v20 }
 0xf39   : > { %8143 = vmatprep.mubr.msk.f32.mxu1 %vm713_vm0, %v11494_v9 }
 0xf3c   : > { %8144 = vmatmul.mubr.msk.f32.gmra.mrb[86].mxu1 %vm713_vm0, %v11439_v4 }
0x1003   : > { %v11573_v47 = vpop.f32.mrb[80].mxu1 }
0x1004   : > { %v4567_v37 = vpop.f32.mrb[81].mxu1  ;;  %v4609_v34 = vsel %vm1085_vm2, %v11573_v47, -inf }
0x1005   : > { %4610 = vmax.xlane.f32.xlu1 %v4609_v34  ;;  %v4606_v46 = vsel %vm1085_vm2, %v4567_v37, -inf }
0x1006   : > { %4607 = vmax.xlane.f32.xlu0 %v4606_v46 }
0x1007   : > { %v11578_v11 = vpop.f32.mrb[82].mxu1 }
0x1008   : > { %v4577_v53 = vpop.f32.mrb[83].mxu1  ;;  %v4615_v20 = vsel %vm1085_vm2, %v11578_v11, -inf }
0x1009   : > { %v4612_v9 = vsel %vm1085_vm2, %v4577_v53, -inf }
0x100a   : > { %4616 = vmax.xlane.f32.xlu0 %v4615_v20 }
0x100b   : > { %v11582_v3 = vpop.f32.mrb[84].mxu1 }
0x100c   : > { %v11584_v4 = vpop.f32.mrb[85].mxu1  ;;  %v4621_v52 = vsel %vm1085_vm2, %v11582_v3, -inf }
0x100d   : > { %4622 = vmax.xlane.f32.xlu1 %v4621_v52  ;;  %v4618_v8 = vsel %vm1085_vm2, %v11584_v4, -inf }
0x100e   : > { %4613 = vmax.xlane.f32.xlu0 %v4612_v9 }
0x100f   : > { %v11589_v42 = vpop.f32.mrb[86].mxu1 }
0x1010   : > { %v11591_v56 = vpop.f32.mrb[87].mxu1  ;;  %v4627_v28 = vsel %vm1085_vm2, %v11589_v42, -inf }
0x1011   : > { %v4624_v32 = vsel %vm1085_vm2, %v11591_v56, -inf }
0x1012   : > { %4619 = vmax.xlane.f32.xlu0 %v4618_v8 }
0x1016   : > { %4628 = vmax.xlane.f32.xlu0 %v4627_v28 }
0x101a   : > { %4625 = vmax.xlane.f32.xlu0 %v4624_v32 }
0x101e   : > { %9493 = vrot.lane.b32.xlu1 %v10713_v22, %s10022_s19 }
0x1022   : > { %9498 = vrot.lane.b32.xlu1 %v10422_v5, %s10022_s19 }
0x1026   : > { %4928 = vrot.lane.b32.xlu1 %v10334_v51, %s10023_s22 }
0x102a   : > { %4930 = vrot.lane.b32.xlu1 %v10341_v55, %s10023_s22 }
0x102e   : > { %4934 = vrot.lane.b32.xlu1 %v10367_v7, %s10023_s22 }
0x1030   : > { %9488 = vrot.lane.b32.xlu0 %v10727_v36, %s10022_s19 }
0x1032   : > { %4938 = vrot.lane.b32.xlu1 %v10393_v30, %s10023_s22 }
0x1034   : > { %4932 = vrot.lane.b32.xlu0 %v10358_v1, %s10023_s22 }
0x1036   : > { %4942 = vrot.lane.b32.xlu1 %v10415_v57, %s10023_s22 }
0x1038   : > { %4936 = vrot.lane.b32.xlu0 %v10381_v18, %s10023_s22 }
0x103a   : > { %9508 = vrot.lane.b32.xlu1 %v10378_v17, %s10023_s22 }
0x103c   : > { %4940 = vrot.lane.b32.xlu0 %v10407_v44, %s10023_s22 }
0x103e   : > { %9518 = vrot.lane.b32.xlu1 %v10420_v2, %s10023_s22 }
0x1040   : > { %9503 = vrot.lane.b32.xlu0 %v12726_v15, %s10023_s22 }
0x1042   : > { %9523 = vrot.lane.b32.xlu1 %v12727_v45, %s10023_s22 }
0x1044   : > { %9513 = vrot.lane.b32.xlu0 %v12728_v54, %s10023_s22 }
0x1092   : > { %v4611_v0 = vpop.xlane.xlu1 %4610 }
0x1093   : > { %v4608_v16 = vpop.xlane.xlu0 %4607 }
0x1094   : > { %v4630_v41 = vsub.f32 %v4567_v37, %v4608_v16  ;;  %v4631_v37 = vsub.f32 %v11573_v47, %v4611_v0 }
0x1096   : > { %v4638_v14 = vmul.f32 1.442695, %v4630_v41  ;;  %v4640_v41 = vmul.f32 1.442695, %v4631_v37 }
0x1097   : > { %v4617_v61 = vpop.xlane.xlu0 %4616 }
0x1098   : > { %9662 = vpow2.f32 %v4638_v14  ;;  %v4633_v14 = vsub.f32 %v11578_v11, %v4617_v61 }
0x1099   : > { %9664 = vpow2.f32 %v4640_v41 }
0x109a   : > { %v4623_v13 = vpop.xlane.xlu1 %4622 }
0x109b   : > { %v4614_v63 = vpop.xlane.xlu0 %4613  ;;  %v4635_v0 = vsub.f32 %v11582_v3, %v4623_v13 }
0x109c   : > { %v4632_v20 = vsub.f32 %v4577_v53, %v4614_v63  ;;  %v4644_v53 = vmul.f32 1.442695, %v4633_v14 }
0x109d   : > { %v4648_v61 = vmul.f32 1.442695, %v4635_v0 }
0x109e   : > { %v9494_v29 = vpop.permute.xlu1 %9493  ;;  %v4642_v25 = vmul.f32 1.442695, %v4632_v20 }
0x109f   : > { %v4620_v23 = vpop.xlane.xlu0 %4619  ;;  %v9496_v8 = vunpack.i.h.bf16 %v9494_v29  ;;  %v9495_v28 = vunpack.i.l.bf16 %v9494_v29 }
0x10a0   : > { %v4634_v35 = vsub.f32 %v11584_v4, %v4620_v23  ;;  %9666 = vpow2.f32 %v4642_v25 }
0x10a1   : > { %v8962_v47 = vpack.c.bf16 %v9496_v8, %v9495_v28  ;;  %9668 = vpow2.f32 %v4644_v53 }
0x10a2   : > { %v11631_v21 = vpop.eup %9662  ;;  %v9499_v62 = vpop.permute.xlu1 %9498  ;;  %v4646_v63 = vmul.f32 1.442695, %v4634_v35 }
0x10a3   : > { %8162 = vmatprep.mubr.msk.f32.mxu0 %vm1085_vm2, %v11631_v21  ;;  %v4629_v49 = vpop.xlane.xlu0 %4628  ;;  %v9501_v59 = vunpack.i.h.bf16 %v9499_v62  ;;  %v9500_v10 = vunpack.i.l.bf16 %v9499_v62  ;;  %v11654_v25 = vpop.eup %9664 }
0x10a4   : > { %v4637_v23 = vsub.f32 %v11589_v42, %v4629_v49  ;;  %9670 = vpow2.f32 %v4646_v63 }
0x10a5   : > { %v8966_v4 = vpack.c.bf16 %v9501_v59, %v9500_v10  ;;  %9672 = vpow2.f32 %v4648_v61 }
0x10a6   : > { %v11635_v34 = vpop.permute.xlu1 %4928 }
0x10a7   : > { %v4626_v46 = vpop.xlane.xlu0 %4625 }
0x10a8   : > { %v4636_v29 = vsub.f32 %v11591_v56, %v4626_v46 }
0x10aa   : > { %v11638_v52 = vpop.permute.xlu1 %4930  ;;  %v4650_v62 = vmul.f32 1.442695, %v4636_v29  ;;  %v11656_v10 = vpop.eup %9666 }
0x10ab   : > { %v9489_v9 = vpop.permute.xlu0 %9488  ;;  %v11666_v3 = vpop.eup %9668 }
0x10ac   : > { %v9491_v32 = vunpack.i.h.bf16 %v9489_v9  ;;  %v9490_v16 = vunpack.i.l.bf16 %v9489_v9  ;;  %9674 = vpow2.f32 %v4650_v62 }
0x10ae   : > { %v11642_v58 = vpop.permute.xlu1 %4934  ;;  %v8958_v39 = vpack.c.bf16 %v9491_v32, %v9490_v16  ;;  %v11668_v42 = vpop.eup %9670 }
0x10af   : > { %v11674_v13 = vpop.eup %9672  ;;  %v11684_v28 = vpop.permute.xlu0 %4932 }
0x10b0   : > { %8959 = vmatprep.subr.bf16.mxu0 %v8958_v39 }
0x10b1   : > { %8961 = vmatpush3.bf16.msra.mxu0 %v8958_v39  ;;  %v4652_v39 = vmul.f32 1.442695, %v4637_v23 }
0x10b2   : > { %v11646_v11 = vpop.permute.xlu1 %4938  ;;  %8963 = vmatprep.subr.bf16.mxu0 %v8962_v47 }
0x10b3   : > { %9676 = vpow2.f32 %v4652_v39  ;;  %v11695_v32 = vpop.permute.xlu0 %4936 }
0x10b5   : > { %8965 = vmatpush3.bf16.msra.mxu0 %v8962_v47 }
0x10b6   : > { %v11649_v37 = vpop.permute.xlu1 %4942  ;;  %8967 = vmatprep.subr.bf16.mxu0 %v8966_v4  ;;  %v11676_v20 = vpop.eup %9674 }
0x10b7   : > { %12729 = vst [vmem:[#allocation17_spill] sm:$0xff] %v11676_v20  ;;  %v11704_v16 = vpop.permute.xlu0 %4940 }
0x10b9   : > { %8969 = vmatpush3.bf16.msra.mxu0 %v8966_v4 }
0x10ba   : > { %v11651_v35 = vpop.permute.xlu1 %9508  ;;  %8971 = vmatprep.subr.bf16.mxu0 %v10271_v27 }
0x10bb   : > { %v9504_v41 = vpop.permute.xlu0 %9503 }
0x10bc   : > { %8163 = vmatmul.mubr.msk.f32.vlgmr.msra.gmra.mrb[72].mxu0 %vm1085_vm2, %v11654_v25  ;;  %v9506_v14 = vunpack.i.h.bf16 %v9504_v41  ;;  %v9505_v47 = vunpack.i.l.bf16 %v9504_v41  ;;  %v11746_v41 = vld [vmem:[%s12563_s4] sm:$0xff] }
0x10bd   : > { %8165 = vmatprep.mubr.msk.f32.mxu0 %vm1085_vm2, %v11656_v10  ;;  %8973 = vmatpush3.bf16.msra.mxu0 %v10271_v27  ;;  %v11682_v8 = vpop.eup %9676 }
0x10be   : > { %v11663_v59 = vpop.permute.xlu1 %9518  ;;  %8975 = vmatprep.subr.bf16.mxu0 %v10235_v6  ;;  %v9006_v53 = vpack.c.bf16 %v9506_v14, %v9505_v47  ;;  %v11752_v47 = vld [vmem:[%s12563_s4 + $0x8] sm:$0xff] }
0x10c0   : > { %8166 = vmatmul.mubr.msk.f32.gmra.mrb[74].mxu0 %vm1085_vm2, %v11666_v3 }
0x10c1   : > { %8168 = vmatprep.mubr.msk.f32.mxu0 %vm1085_vm2, %v11668_v42 }
0x10c2   : > { %v9524_v56 = vpop.permute.xlu1 %9523 }
0x10c3   : > { %v9526_v49 = vunpack.i.h.bf16 %v9524_v56  ;;  %v9525_v46 = vunpack.i.l.bf16 %v9524_v56 }
0x10c4   : > { %8169 = vmatmul.mubr.msk.f32.gmra.mrb[76].mxu0 %vm1085_vm2, %v11674_v13 }
0x10c5   : > { %8171 = vmatprep.mubr.msk.f32.mxu0 %vm1085_vm2, %v11676_v20  ;;  %v9030_v9 = vpack.c.bf16 %v9526_v49, %v9525_v46  ;;  %v9511_v49 = vunpack.i.h.bf16 %v11651_v35  ;;  %v9510_v46 = vunpack.i.l.bf16 %v11651_v35  ;;  %v9514_v35 = vpop.permute.xlu0 %9513 }
0x10c7   : > { %9031 = vmatprep.subr.bf16.mxu1 %v9030_v9 }
0x10c8   : > { %8172 = vmatmul.mubr.msk.f32.gmra.mrb[78].mxu0 %vm1085_vm2, %v11682_v8  ;;  %9033 = vmatpush3.bf16.msra.mxu1 %v9030_v9 }
0x10c9   : > { %8178 = vmatprep.mubr.msk.f32.mxu0 %vm713_vm0, %v11635_v34 }
0x10cc   : > { %8179 = vmatmul.mubr.msk.f32.vlgmr.msra.gmra.mrb[80].mxu0 %vm713_vm0, %v11638_v52 }
0x10cd   : > { %8977 = vmatpush3.bf16.msra.mxu0 %v10235_v6  ;;  %8181 = vmatprep.mubr.msk.f32.mxu0 %vm713_vm0, %v11684_v28 }
0x10ce   : > { %8979 = vmatprep.subr.bf16.mxu0 %v10244_v12 }
0x10d0   : > { %8182 = vmatmul.mubr.msk.f32.gmra.mrb[82].mxu0 %vm713_vm0, %v11642_v58 }
0x10d1   : > { %8981 = vmatpush3.bf16.msra.mxu0 %v10244_v12  ;;  %8184 = vmatprep.mubr.msk.f32.mxu0 %vm713_vm0, %v11695_v32 }
0x10d2   : > { %8983 = vmatprep.subr.bf16.mxu0 %v10257_v19 }
0x10d4   : > { %8185 = vmatmul.mubr.msk.f32.gmra.mrb[84].mxu0 %vm713_vm0, %v11646_v11 }
0x10d5   : > { %8985 = vmatpush3.bf16.msra.mxu0 %v10257_v19  ;;  %8187 = vmatprep.mubr.msk.f32.mxu0 %vm713_vm0, %v11704_v16 }
0x10d6   : > { %8987 = vmatprep.subr.bf16.mxu0 %v10269_v26 }
0x10d8   : > { %8188 = vmatmul.mubr.msk.f32.gmra.mrb[86].mxu0 %vm713_vm0, %v11649_v37 }
0x10d9   : > { %8989 = vmatpush3.bf16.msra.mxu0 %v10269_v26 }
0x10da   : > { %8991 = vmatprep.subr.bf16.mxu0 %v10284_v31 }
0x10dd   : > { %8993 = vmatpush3.bf16.msra.mxu0 %v10284_v31 }
0x10de   : > { %8995 = vmatprep.subr.bf16.mxu0 %v10304_v38 }
0x10e1   : > { %8997 = vmatpush3.bf16.msra.mxu0 %v10304_v38 }
0x10e2   : > { %8999 = vmatprep.subr.bf16.mxu0 %v10314_v40 }
0x10e5   : > { %9001 = vmatpush3.bf16.msra.mxu0 %v10314_v40 }
0x10e6   : > { %9003 = vmatprep.subr.bf16.mxu0 %v10324_v43 }
0x10e9   : > { %9005 = vmatpush3.bf16.msra.mxu0 %v10324_v43 }
0x10ea   : > { %9008 = vmatprep.subr.msk.bf16.mxu0 %vm10349_vm1, %v9006_v53 }
0x118f   : > { %v11725_v0 = vpop.f32.mrb[72].mxu0 }
0x1190   : > { %12730 = vst [vmem:[#allocation19_spill] sm:$0xff] %v11725_v0  ;;  %v11727_v63 = vpop.f32.mrb[73].mxu0 }
0x1191   : > { %12731 = vst [vmem:[#allocation18_spill] sm:$0xff] %v11727_v63 }
0x1193   : > { %v11729_v29 = vpop.f32.mrb[74].mxu0 }
0x1194   : > { %12732 = vst [vmem:[#allocation96_spill] sm:$0xff] %v11729_v29  ;;  %v11731_v4 = vpop.f32.mrb[75].mxu0  ;;  %v11758_v29 = vld [vmem:[%s12563_s4 + $0x10] sm:$0xff] }
0x1195   : > { %12733 = vst [vmem:[#allocation97_spill] sm:$0xff] %v11731_v4 }
0x1197   : > { %v11733_v61 = vpop.f32.mrb[76].mxu0 }
0x1198   : > { %12734 = vst [vmem:[#allocation98_spill] sm:$0xff] %v11733_v61  ;;  %v11735_v23 = vpop.f32.mrb[77].mxu0 }
0x1199   : > { %12735 = vst [vmem:[#allocation99_spill] sm:$0xff] %v11735_v23 }
0x119b   : > { %v11737_v62 = vpop.f32.mrb[78].mxu0 }
0x119c   : > { %12736 = vst [vmem:[#allocation100_spill] sm:$0xff] %v11737_v62  ;;  %v11739_v39 = vpop.f32.mrb[79].mxu0  ;;  %v9012_v62 = vpack.c.bf16 %v9511_v49, %v9510_v46  ;;  %v9516_v46 = vunpack.i.h.bf16 %v9514_v35 }
0x119d   : > { %12737 = vst [vmem:[#allocation101_spill] sm:$0xff] %v11739_v39 }
0x119f   : > { %v8180_v56 = vpop.f32.mrb[80].mxu0 }
0x11a0   : > { %v5026_v9 = vpop.f32.mrb[81].mxu0  ;;  %v5066_v39 = vmul.f32 %v11752_v47, %v8180_v56  ;;  %v11766_v56 = vld [vmem:[%s12563_s4 + $0x18] sm:$0xff] }
0x11a1   : > { %v5065_v14 = vmul.f32 %v11746_v41, %v5026_v9 }
0x11a3   : > { %v8183_v61 = vpop.f32.mrb[82].mxu0  ;;  %8222 = vmatprep.mubr.f32.mxu0 %v5065_v14  ;;  %v9515_v14 = vunpack.i.l.bf16 %v9514_v35 }
0x11a4   : > { %v5036_v23 = vpop.f32.mrb[83].mxu0  ;;  %8223 = vmatmul.mubr.f32.vlgmr.msra.gmra.mrb[88].mxu0 %v5066_v39  ;;  %v5068_v49 = vmul.f32 %v11766_v56, %v8183_v61  ;;  %v11780_v61 = vld [vmem:[%s12563_s4 + $0x28] sm:$0xff] }
0x11a5   : > { %v5067_v9 = vmul.f32 %v11758_v29, %v5036_v23  ;;  %9011 = vmatpush3.bf16.xpose.msk.msra.mxu0 %vm10349_vm1, %v9006_v53  ;;  %v11774_v53 = vld [vmem:[%s12563_s4 + $0x20] sm:$0xff] }
0x11a6   : > { %9014 = vmatprep.subr.msk.bf16.mxu0 %vm10349_vm1, %v9012_v62 }
0x11a7   : > { %v8186_v39 = vpop.f32.mrb[84].mxu0  ;;  %8225 = vmatprep.mubr.f32.mxu0 %v5067_v9  ;;  %v9018_v9 = vpack.c.bf16 %v9516_v46, %v9515_v14  ;;  %v9520_v46 = vunpack.i.l.bf16 %v11663_v59 }
0x11a8   : > { %v5046_v4 = vpop.f32.mrb[85].mxu0  ;;  %8226 = vmatmul.mubr.f32.gmra.mrb[90].mxu0 %v5068_v49  ;;  %v5070_v0 = vmul.f32 %v11780_v61, %v8186_v39  ;;  %v11786_v49 = vld [vmem:[%s12563_s4 + $0x30] sm:$0xff] }
0x11a9   : > { %v5069_v23 = vmul.f32 %v11774_v53, %v5046_v4  ;;  %v11794_v4 = vld [vmem:[%s12563_s4 + $0x38] sm:$0xff] }
0x11ab   : > { %v8189_v63 = vpop.f32.mrb[86].mxu0  ;;  %8228 = vmatprep.mubr.f32.mxu0 %v5069_v23 }
0x11ac   : > { %v5056_v35 = vpop.f32.mrb[87].mxu0  ;;  %8229 = vmatmul.mubr.f32.gmra.mrb[92].mxu0 %v5070_v0  ;;  %v5072_v39 = vmul.f32 %v11794_v4, %v8189_v63  ;;  %v9521_v0 = vunpack.i.h.bf16 %v11663_v59 }
0x11ad   : > { %v5071_v20 = vmul.f32 %v11786_v49, %v5056_v35  ;;  %9017 = vmatpush3.bf16.xpose.msk.msra.mxu0 %vm10349_vm1, %v9012_v62 }
0x11ae   : > { %9020 = vmatprep.subr.msk.bf16.mxu0 %vm10349_vm1, %v9018_v9  ;;  %v9024_v62 = vpack.c.bf16 %v9521_v0, %v9520_v46 }
0x11af   : > { %8231 = vmatprep.mubr.f32.mxu0 %v5071_v20 }
0x11b0   : > { %8232 = vmatmul.mubr.f32.gmra.mrb[94].mxu0 %v5072_v39 }
0x11b1   : > { %8250 = vmatprep.mubr.msk.f32.mxu0 %vm713_vm0, %v11635_v34 }
0x11b5   : > { %9023 = vmatpush3.bf16.xpose.msk.msra.mxu0 %vm10349_vm1, %v9018_v9 }
0x11b6   : > { %9026 = vmatprep.subr.msk.bf16.mxu0 %vm10349_vm1, %v9024_v62 }
0x11bd   : > { %9029 = vmatpush3.bf16.xpose.msk.msra.mxu0 %vm10349_vm1, %v9024_v62 }
0x11c4   : > { %8251 = vmatmul.mubr.msk.f32.vlgmr.msra.gmra.mrb[88].mxu0 %vm713_vm0, %v11638_v52 }
0x11c5   : > { %8253 = vmatprep.mubr.msk.f32.mxu0 %vm713_vm0, %v11684_v28 }
0x11c8   : > { %8254 = vmatmul.mubr.msk.f32.gmra.mrb[90].mxu0 %vm713_vm0, %v11642_v58 }
0x11c9   : > { %8256 = vmatprep.mubr.msk.f32.mxu0 %vm713_vm0, %v11695_v32 }
0x11cc   : > { %8257 = vmatmul.mubr.msk.f32.gmra.mrb[92].mxu0 %vm713_vm0, %v11646_v11 }
0x11cd   : > { %8259 = vmatprep.mubr.msk.f32.mxu0 %vm713_vm0, %v11704_v16 }
0x11d0   : > { %8260 = vmatmul.mubr.msk.f32.gmra.mrb[94].mxu0 %vm713_vm0, %v11649_v37 }
0x1297   : > { %v11823_v34 = vpop.f32.mrb[88].mxu0 }
0x1298   : > { %v5284_v52 = vpop.f32.mrb[89].mxu0  ;;  %v5326_v59 = vsel %vm1085_vm2, %v11823_v34, -inf }
0x1299   : > { %5327 = vmax.xlane.f32.xlu1 %v5326_v59  ;;  %v5323_v58 = vsel %vm1085_vm2, %v5284_v52, -inf }
0x129a   : > { %5324 = vmax.xlane.f32.xlu0 %v5323_v58 }
0x129b   : > { %v11828_v20 = vpop.f32.mrb[90].mxu0 }
0x129c   : > { %v11830_v28 = vpop.f32.mrb[91].mxu0  ;;  %v5332_v11 = vsel %vm1085_vm2, %v11828_v20, -inf }
0x129d   : > { %v5329_v63 = vsel %vm1085_vm2, %v11830_v28, -inf }
0x129e   : > { %5333 = vmax.xlane.f32.xlu0 %v5332_v11 }
0x129f   : > { %v11834_v32 = vpop.f32.mrb[92].mxu0 }
0x12a0   : > { %v11836_v37 = vpop.f32.mrb[93].mxu0  ;;  %v5338_v16 = vsel %vm1085_vm2, %v11834_v32, -inf }
0x12a1   : > { %5339 = vmax.xlane.f32.xlu1 %v5338_v16  ;;  %v5335_v9 = vsel %vm1085_vm2, %v11836_v37, -inf }
0x12a2   : > { %5330 = vmax.xlane.f32.xlu0 %v5329_v63 }
0x12a3   : > { %v11842_v14 = vpop.f32.mrb[94].mxu0 }
0x12a4   : > { %v11844_v23 = vpop.f32.mrb[95].mxu0  ;;  %v5344_v35 = vsel %vm1085_vm2, %v11842_v14, -inf }
0x12a5   : > { %v5341_v39 = vsel %vm1085_vm2, %v11844_v23, -inf }
0x12a6   : > { %5336 = vmax.xlane.f32.xlu0 %v5335_v9 }
0x12aa   : > { %5345 = vmax.xlane.f32.xlu0 %v5344_v35 }
0x12ae   : > { %5342 = vmax.xlane.f32.xlu0 %v5341_v39 }
0x12b2   : > { %9533 = vrot.lane.b32.xlu1 %v10713_v22, %s10023_s22 }
0x12b6   : > { %9538 = vrot.lane.b32.xlu1 %v10422_v5, %s10023_s22 }
0x12ba   : > { %5645 = vrot.lane.b32.xlu1 %v10334_v51, %s10024_s17  ;;  %v12738_v51 = vld [vmem:[#allocation37_spill] sm:$0xff] }
0x12be   : > { %5647 = vrot.lane.b32.xlu1 %v10341_v55, %s10024_s17  ;;  %v1789_v55 = vsel %vm1085_vm2, %v12738_v51, 0.0 }
0x12c2   : > { %5651 = vrot.lane.b32.xlu1 %v10367_v7, %s10024_s17 }
0x12c4   : > { %9528 = vrot.lane.b32.xlu0 %v10727_v36, %s10023_s22 }
0x12c6   : > { %5655 = vrot.lane.b32.xlu1 %v10393_v30, %s10024_s17 }
0x12c8   : > { %5649 = vrot.lane.b32.xlu0 %v10358_v1, %s10024_s17  ;;  %v12739_v1 = vld [vmem:[#allocation36_spill] sm:$0xff] }
0x12c9   : > { %v1786_v7 = vsel %vm1085_vm2, %v12739_v1, 0.0 }
0x12ca   : > { %5659 = vrot.lane.b32.xlu1 %v10415_v57, %s10024_s17 }
0x12cc   : > { %5653 = vrot.lane.b32.xlu0 %v10381_v18, %s10024_s17 }
0x12ce   : > { %9548 = vrot.lane.b32.xlu1 %v10378_v17, %s10024_s17 }
0x12d0   : > { %5657 = vrot.lane.b32.xlu0 %v10407_v44, %s10024_s17 }
0x12d2   : > { %9558 = vrot.lane.b32.xlu1 %v10420_v2, %s10024_s17 }
0x12d4   : > { %9543 = vrot.lane.b32.xlu0 %v12726_v15, %s10024_s17 }
0x12d6   : > { %9563 = vrot.lane.b32.xlu1 %v12727_v45, %s10024_s17 }
0x12d8   : > { %9553 = vrot.lane.b32.xlu0 %v12728_v54, %s10024_s17 }
0x12da   : > { %9573 = vrot.lane.b32.xlu1 %v10713_v22, %s10024_s17 }
0x12dc   : > { %9568 = vrot.lane.b32.xlu0 %v10727_v36, %s10024_s17 }
0x12de   : > { %9578 = vrot.lane.b32.xlu1 %v10422_v5, %s10024_s17 }
0x12fb   : > { %1790 = vadd.xlane.f32.xlu0 %v1789_v55 }
0x1302   : > { %1787 = vadd.xlane.f32.xlu1 %v1786_v7 }
0x1326   : > { %v5328_v30 = vpop.xlane.xlu1 %5327 }
0x1327   : > { %v5325_v17 = vpop.xlane.xlu0 %5324  ;;  %v5348_v62 = vsub.f32 %v11823_v34, %v5328_v30 }
0x1328   : > { %v5347_v18 = vsub.f32 %v5284_v52, %v5325_v17 }
0x1329   : > { %v5357_v35 = vmul.f32 1.442695, %v5348_v62 }
0x132a   : > { %v5355_v44 = vmul.f32 1.442695, %v5347_v18 }
0x132b   : > { %v5334_v57 = vpop.xlane.xlu0 %5333 }
0x132c   : > { %9678 = vpow2.f32 %v5355_v44  ;;  %v5350_v39 = vsub.f32 %v11828_v20, %v5334_v57 }
0x132d   : > { %9680 = vpow2.f32 %v5357_v35 }
0x132e   : > { %v5340_v2 = vpop.xlane.xlu1 %5339  ;;  %v5361_v30 = vmul.f32 1.442695, %v5350_v39 }
0x132f   : > { %v5331_v22 = vpop.xlane.xlu0 %5330  ;;  %v5352_v44 = vsub.f32 %v11834_v32, %v5340_v2 }
0x1330   : > { %v5349_v52 = vsub.f32 %v11830_v28, %v5331_v22 }
0x1332   : > { %v9534_v36 = vpop.permute.xlu1 %9533  ;;  %v5359_v51 = vmul.f32 1.442695, %v5349_v52 }
0x1333   : > { %v5337_v15 = vpop.xlane.xlu0 %5336  ;;  %v9536_v11 = vunpack.i.h.bf16 %v9534_v36  ;;  %v9535_v16 = vunpack.i.l.bf16 %v9534_v36 }
0x1334   : > { %v5351_v55 = vsub.f32 %v11836_v37, %v5337_v15  ;;  %9682 = vpow2.f32 %v5359_v51  ;;  %v5365_v15 = vmul.f32 1.442695, %v5352_v44 }
0x1335   : > { %v9038_v18 = vpack.c.bf16 %v9536_v11, %v9535_v16  ;;  %9684 = vpow2.f32 %v5361_v30 }
0x1336   : > { %v11894_v45 = vpop.eup %9678  ;;  %v9539_v5 = vpop.permute.xlu1 %9538  ;;  %v5363_v22 = vmul.f32 1.442695, %v5351_v55 }
0x1337   : > { %8278 = vmatprep.mubr.msk.f32.mxu1 %vm1085_vm2, %v11894_v45  ;;  %v5346_v54 = vpop.xlane.xlu0 %5345  ;;  %v9541_v34 = vunpack.i.h.bf16 %v9539_v5  ;;  %v9540_v28 = vunpack.i.l.bf16 %v9539_v5 }
0x1338   : > { %v5354_v5 = vsub.f32 %v11842_v14, %v5346_v54  ;;  %9686 = vpow2.f32 %v5363_v22 }
0x1339   : > { %v9042_v36 = vpack.c.bf16 %v9541_v34, %v9540_v28  ;;  %9688 = vpow2.f32 %v5365_v15 }
0x133a   : > { %v11898_v0 = vpop.permute.xlu1 %5645 }
0x133b   : > { %v5343_v46 = vpop.xlane.xlu0 %5342 }
0x133c   : > { %v5353_v20 = vsub.f32 %v11844_v23, %v5343_v46  ;;  %v5369_v23 = vmul.f32 1.442695, %v5354_v5  ;;  %v11924_v46 = vpop.eup %9680 }
0x133e   : > { %v11902_v59 = vpop.permute.xlu1 %5647  ;;  %v5367_v62 = vmul.f32 1.442695, %v5353_v20  ;;  %v11928_v14 = vpop.eup %9682 }
0x133f   : > { %v9529_v58 = vpop.permute.xlu0 %9528  ;;  %v11938_v11 = vpop.eup %9684 }
0x1340   : > { %v9531_v63 = vunpack.i.h.bf16 %v9529_v58  ;;  %v9530_v9 = vunpack.i.l.bf16 %v9529_v58  ;;  %9690 = vpow2.f32 %v5367_v62 }
0x1341   : > { %9692 = vpow2.f32 %v5369_v23 }
0x1342   : > { %v11906_v1 = vpop.permute.xlu1 %5651  ;;  %v9034_v7 = vpack.c.bf16 %v9531_v63, %v9530_v9  ;;  %v11942_v63 = vpop.eup %9686 }
0x1343   : > { %v11908_v17 = vpop.permute.xlu0 %5649  ;;  %v11948_v35 = vpop.eup %9688 }
0x1344   : > { %9035 = vmatprep.subr.bf16.mxu1 %v9034_v7 }
0x1345   : > { %9037 = vmatpush3.bf16.msra.mxu1 %v9034_v7 }
0x1346   : > { %v11912_v57 = vpop.permute.xlu1 %5655  ;;  %9039 = vmatprep.subr.bf16.mxu1 %v9038_v18 }
0x1347   : > { %v11914_v37 = vpop.permute.xlu0 %5653 }
0x1349   : > { %9041 = vmatpush3.bf16.msra.mxu1 %v9038_v18 }
0x134a   : > { %v11917_v52 = vpop.permute.xlu1 %5659  ;;  %9043 = vmatprep.subr.bf16.mxu1 %v9042_v36  ;;  %v11950_v55 = vpop.eup %9690 }
0x134b   : > { %v11919_v32 = vpop.permute.xlu0 %5657  ;;  %v11956_v44 = vpop.eup %9692 }
0x134d   : > { %9045 = vmatpush3.bf16.msra.mxu1 %v9042_v36 }
0x134e   : > { %v11921_v2 = vpop.permute.xlu1 %9548  ;;  %9047 = vmatprep.subr.bf16.mxu1 %v10271_v27 }
0x134f   : > { %v11926_v58 = vpop.permute.xlu0 %9543 }
0x1350   : > { %8279 = vmatmul.mubr.msk.f32.vlgmr.msra.gmra.mrb[88].mxu1 %vm1085_vm2, %v11924_v46 }
0x1351   : > { %8281 = vmatprep.mubr.msk.f32.mxu1 %vm1085_vm2, %v11928_v14  ;;  %9049 = vmatpush3.bf16.msra.mxu1 %v10271_v27 }
0x1352   : > { %v11935_v54 = vpop.permute.xlu1 %9558  ;;  %9051 = vmatprep.subr.bf16.mxu1 %v10235_v6 }
0x1353   : > { %v11940_v16 = vpop.permute.xlu0 %9553 }
0x1354   : > { %8282 = vmatmul.mubr.msk.f32.gmra.mrb[90].mxu1 %vm1085_vm2, %v11938_v11 }
0x1355   : > { %8284 = vmatprep.mubr.msk.f32.mxu1 %vm1085_vm2, %v11942_v63 }
0x1356   : > { %v9564_v9 = vpop.permute.xlu1 %9563 }
0x1357   : > { %v9566_v27 = vunpack.i.h.bf16 %v9564_v9  ;;  %v9565_v39 = vunpack.i.l.bf16 %v9564_v9  ;;  %v9569_v51 = vpop.permute.xlu0 %9568 }
0x1358   : > { %v9571_v7 = vunpack.i.h.bf16 %v9569_v51  ;;  %v9570_v34 = vunpack.i.l.bf16 %v9569_v51  ;;  %8285 = vmatmul.mubr.msk.f32.gmra.mrb[92].mxu1 %vm1085_vm2, %v11948_v35  ;;  %v9551_v51 = vunpack.i.h.bf16 %v11921_v2 }
0x1359   : > { %8287 = vmatprep.mubr.msk.f32.mxu1 %vm1085_vm2, %v11950_v55  ;;  %v9106_v28 = vpack.c.bf16 %v9566_v27, %v9565_v39 }
0x135a   : > { %v9574_v18 = vpop.permute.xlu1 %9573  ;;  %v9110_v30 = vpack.c.bf16 %v9571_v7, %v9570_v34  ;;  %v9550_v7 = vunpack.i.l.bf16 %v11921_v2 }
0x135b   : > { %9107 = vmatprep.subr.bf16.mxu0 %v9106_v28  ;;  %v9576_v22 = vunpack.i.h.bf16 %v9574_v18  ;;  %v9575_v20 = vunpack.i.l.bf16 %v9574_v18 }
0x135c   : > { %8288 = vmatmul.mubr.msk.f32.gmra.mrb[94].mxu1 %vm1085_vm2, %v11956_v44  ;;  %9109 = vmatpush3.bf16.msra.mxu0 %v9106_v28 }
0x135d   : > { %8294 = vmatprep.mubr.msk.f32.mxu1 %vm713_vm0, %v11898_v0  ;;  %9111 = vmatprep.subr.bf16.mxu0 %v9110_v30  ;;  %v9114_v62 = vpack.c.bf16 %v9576_v22, %v9575_v20  ;;  %v9088_v22 = vpack.c.bf16 %v9551_v51, %v9550_v7  ;;  %v12740_v51 = vld [vmem:[#allocation53_spill] sm:$0xff] }
0x135e   : > { %v9579_v36 = vpop.permute.xlu1 %9578  ;;  %v2506_v7 = vsel %vm1085_vm2, %v12740_v51, 0.0  ;;  %v5374_v51 = vsel %vm1085_vm2, %v11924_v46, 0.0  ;;  %v3949_v46 = vsel %vm1085_vm2, %v11458_v48, 0.0 }
0x135f   : > { %v9581_v15 = vunpack.i.h.bf16 %v9579_v36  ;;  %v9580_v5 = vunpack.i.l.bf16 %v9579_v36 }
0x1360   : > { %8295 = vmatmul.mubr.msk.f32.vlgmr.msra.gmra.mrb[96].mxu1 %vm713_vm0, %v11902_v59  ;;  %9113 = vmatpush3.bf16.msra.mxu0 %v9110_v30 }
0x1361   : > { %9053 = vmatpush3.bf16.msra.mxu1 %v10235_v6  ;;  %8297 = vmatprep.mubr.msk.f32.mxu1 %vm713_vm0, %v11908_v17  ;;  %v9118_v23 = vpack.c.bf16 %v9581_v15, %v9580_v5  ;;  %v9546_v6 = vunpack.i.h.bf16 %v11926_v58 }
0x1362   : > { %9115 = vmatprep.subr.bf16.mxu0 %v9114_v62  ;;  %9055 = vmatprep.subr.bf16.mxu1 %v10244_v12 }
0x1364   : > { %8298 = vmatmul.mubr.msk.f32.gmra.mrb[98].mxu1 %vm713_vm0, %v11906_v1  ;;  %9117 = vmatpush3.bf16.msra.mxu0 %v9114_v62 }
0x1365   : > { %9057 = vmatpush3.bf16.msra.mxu1 %v10244_v12  ;;  %8300 = vmatprep.mubr.msk.f32.mxu1 %vm713_vm0, %v11914_v37  ;;  %v9545_v12 = vunpack.i.l.bf16 %v11926_v58 }
0x1366   : > { %9119 = vmatprep.subr.bf16.mxu0 %v9118_v23  ;;  %9059 = vmatprep.subr.bf16.mxu1 %v10257_v19 }
0x1368   : > { %8301 = vmatmul.mubr.msk.f32.gmra.mrb[100].mxu1 %vm713_vm0, %v11912_v57  ;;  %9121 = vmatpush3.bf16.msra.mxu0 %v9118_v23 }
0x1369   : > { %9061 = vmatpush3.bf16.msra.mxu1 %v10257_v19  ;;  %8303 = vmatprep.mubr.msk.f32.mxu1 %vm713_vm0, %v11919_v32  ;;  %v9082_v19 = vpack.c.bf16 %v9546_v6, %v9545_v12 }
0x136a   : > { %9063 = vmatprep.subr.bf16.mxu1 %v10269_v26 }
0x136c   : > { %8304 = vmatmul.mubr.msk.f32.gmra.mrb[102].mxu1 %vm713_vm0, %v11917_v52 }
0x136d   : > { %9065 = vmatpush3.bf16.msra.mxu1 %v10269_v26 }
0x136e   : > { %9067 = vmatprep.subr.bf16.mxu1 %v10284_v31 }
0x1371   : > { %9069 = vmatpush3.bf16.msra.mxu1 %v10284_v31 }
0x1372   : > { %9071 = vmatprep.subr.bf16.mxu1 %v10304_v38 }
0x1375   : > { %9073 = vmatpush3.bf16.msra.mxu1 %v10304_v38 }
0x1376   : > { %9075 = vmatprep.subr.bf16.mxu1 %v10314_v40 }
0x1379   : > { %9077 = vmatpush3.bf16.msra.mxu1 %v10314_v40 }
0x137a   : > { %9079 = vmatprep.subr.bf16.mxu1 %v10324_v43 }
0x137d   : > { %9081 = vmatpush3.bf16.msra.mxu1 %v10324_v43 }
0x137e   : > { %9084 = vmatprep.subr.msk.bf16.mxu1 %vm10349_vm1, %v9082_v19 }
0x1423   : > { %v11995_v26 = vpop.f32.mrb[88].mxu1 }
0x1424   : > { %v11997_v31 = vpop.f32.mrb[89].mxu1 }
0x1427   : > { %v11999_v38 = vpop.f32.mrb[90].mxu1 }
0x1428   : > { %v12001_v9 = vpop.f32.mrb[91].mxu1 }
0x142b   : > { %v12003_v27 = vpop.f32.mrb[92].mxu1 }
0x142c   : > { %v12005_v58 = vpop.f32.mrb[93].mxu1 }
0x142f   : > { %v12007_v40 = vpop.f32.mrb[94].mxu1 }
0x1430   : > { %v12009_v39 = vpop.f32.mrb[95].mxu1 }
0x1433   : > { %v8296_v43 = vpop.f32.mrb[96].mxu1 }
0x1434   : > { %v5743_v34 = vpop.f32.mrb[97].mxu1  ;;  %v5783_v18 = vmul.f32 %v11752_v47, %v8296_v43  ;;  %v9555_v47 = vunpack.i.l.bf16 %v11940_v16 }
0x1435   : > { %v5782_v28 = vmul.f32 %v11746_v41, %v5743_v34  ;;  %v9556_v41 = vunpack.i.h.bf16 %v11940_v16 }
0x1437   : > { %v8299_v30 = vpop.f32.mrb[98].mxu1  ;;  %8338 = vmatprep.mubr.f32.mxu1 %v5782_v28  ;;  %v9094_v6 = vpack.c.bf16 %v9556_v41, %v9555_v47  ;;  %v12741_v28 = vld [vmem:[#allocation69_spill] sm:$0xff]  ;;  %v12744_v47 = vld [vmem:[#allocation54_spill] sm:$0xff] }
0x1438   : > { %v5753_v20 = vpop.f32.mrb[99].mxu1  ;;  %8339 = vmatmul.mubr.f32.vlgmr.msra.gmra.mrb[104].mxu1 %v5783_v18  ;;  %v5785_v15 = vmul.f32 %v11766_v56, %v8299_v30  ;;  %v3223_v18 = vsel %vm1085_vm2, %v12741_v28, 0.0 }
0x1439   : > { %v5784_v36 = vmul.f32 %v11758_v29, %v5753_v20  ;;  %9087 = vmatpush3.bf16.xpose.msk.msra.mxu1 %vm10349_vm1, %v9082_v19 }
0x143a   : > { %9090 = vmatprep.subr.msk.bf16.mxu1 %vm10349_vm1, %v9088_v22 }
0x143b   : > { %v8302_v2 = vpop.f32.mrb[100].mxu1  ;;  %8341 = vmatprep.mubr.f32.mxu1 %v5784_v36 }
0x143c   : > { %v5763_v5 = vpop.f32.mrb[101].mxu1  ;;  %8342 = vmatmul.mubr.f32.gmra.mrb[106].mxu1 %v5785_v15  ;;  %v5787_v29 = vmul.f32 %v11780_v61, %v8302_v2  ;;  %v9560_v61 = vunpack.i.l.bf16 %v11935_v54  ;;  %v4654_v15 = vsel %vm1085_vm2, %v11631_v21, 0.0  ;;  %v12743_v2 = vld [vmem:[#allocation52_spill] sm:$0xff] }
0x143d   : > { %v5786_v62 = vmul.f32 %v11774_v53, %v5763_v5  ;;  %v9561_v53 = vunpack.i.h.bf16 %v11935_v54  ;;  %v2503_v41 = vsel %vm1085_vm2, %v12743_v2, 0.0  ;;  %v2509_v5 = vsel %vm1085_vm2, %v12744_v47, 0.0  ;;  %v12757_v2 = vld [vmem:[#allocation58_spill] sm:$0xff] }
0x143e   : > { %v5380_v47 = vsel %vm1085_vm2, %v11938_v11, 0.0 }
0x143f   : > { %v8305_v23 = vpop.f32.mrb[102].mxu1  ;;  %8344 = vmatprep.mubr.f32.mxu1 %v5786_v62  ;;  %v9100_v16 = vpack.c.bf16 %v9561_v53, %v9560_v61  ;;  %v12745_v62 = vld [vmem:[#allocation68_spill] sm:$0xff]  ;;  %v3943_v53 = vsel %vm1085_vm2, %v11446_v50, 0.0  ;;  %v12748_v61 = vld [vmem:[#allocation39_spill] sm:$0xff] }
0x1440   : > { %v5773_v12 = vpop.f32.mrb[103].mxu1  ;;  %8345 = vmatmul.mubr.f32.gmra.mrb[108].mxu1 %v5787_v29  ;;  %v5789_v19 = vmul.f32 %v11794_v4, %v8305_v23  ;;  %v3220_v29 = vsel %vm1085_vm2, %v12745_v62, 0.0  ;;  %v5371_v23 = vsel %vm1085_vm2, %v11894_v45, 0.0  ;;  %v1795_v45 = vsel %vm1085_vm2, %v12748_v61, 0.0  ;;  %v12759_v62 = vld [vmem:[#allocation74_spill] sm:$0xff] }
0x1441   : > { %v5788_v56 = vmul.f32 %v11786_v49, %v5773_v12  ;;  %9093 = vmatpush3.bf16.xpose.msk.msra.mxu1 %vm10349_vm1, %v9088_v22  ;;  %v12742_v22 = vld [vmem:[#allocation38_spill] sm:$0xff]  ;;  %v4675_v61 = vsel %vm1085_vm2, %v11682_v8, 0.0 }
0x1442   : > { %9096 = vmatprep.subr.msk.bf16.mxu1 %vm10349_vm1, %v9094_v6  ;;  %v1792_v20 = vsel %vm1085_vm2, %v12742_v22, 0.0  ;;  %v12747_v12 = vld [vmem:[#allocation70_spill] sm:$0xff] }
0x1443   : > { %8347 = vmatprep.mubr.f32.mxu1 %v5788_v56  ;;  %v3226_v56 = vsel %vm1085_vm2, %v12747_v12, 0.0  ;;  %v12755_v22 = vld [vmem:[#allocation42_spill] sm:$0xff]  ;;  %v12762_v12 = vld [vmem:[#allocation43_spill] sm:$0xff] }
0x1444   : > { %8348 = vmatmul.mubr.f32.gmra.mrb[110].mxu1 %v5789_v19  ;;  %v3940_v19 = vsel %vm1085_vm2, %v11444_v24, 0.0  ;;  %v4660_v24 = vsel %vm1085_vm2, %v11656_v10, 0.0 }
0x1445   : > { %8366 = vmatprep.mubr.msk.f32.mxu1 %vm713_vm0, %v11898_v0 }
0x1449   : > { %9099 = vmatpush3.bf16.xpose.msk.msra.mxu1 %vm10349_vm1, %v9094_v6  ;;  %v12746_v6 = vld [vmem:[#allocation84_spill] sm:$0xff] }
0x144a   : > { %9102 = vmatprep.subr.msk.bf16.mxu1 %vm10349_vm1, %v9100_v16  ;;  %v3937_v21 = vsel %vm1085_vm2, %v12746_v6, 0.0 }
0x1451   : > { %9105 = vmatpush3.bf16.xpose.msk.msra.mxu1 %vm10349_vm1, %v9100_v16  ;;  %v12749_v16 = vld [vmem:[#allocation40_spill] sm:$0xff] }
0x1458   : > { %8367 = vmatmul.mubr.msk.f32.vlgmr.msra.gmra.mrb[104].mxu1 %vm713_vm0, %v11902_v59 }
0x1459   : > { %8369 = vmatprep.mubr.msk.f32.mxu1 %vm713_vm0, %v11908_v17 }
0x145c   : > { %8370 = vmatmul.mubr.msk.f32.gmra.mrb[106].mxu1 %vm713_vm0, %v11906_v1 }
0x145d   : > { %8372 = vmatprep.mubr.msk.f32.mxu1 %vm713_vm0, %v11914_v37 }
0x1460   : > { %8373 = vmatmul.mubr.msk.f32.gmra.mrb[108].mxu1 %vm713_vm0, %v11912_v57 }
0x1461   : > { %8375 = vmatprep.mubr.msk.f32.mxu1 %vm713_vm0, %v11919_v32 }
0x1464   : > { %8376 = vmatmul.mubr.msk.f32.gmra.mrb[110].mxu1 %vm713_vm0, %v11917_v52 }
0x152b   : > { %v12055_v60 = vpop.f32.mrb[104].mxu1 }
0x152c   : > { %v12057_v49 = vpop.f32.mrb[105].mxu1  ;;  %v6043_v4 = vsel %vm1085_vm2, %v12055_v60, -inf }
0x152d   : > { %6044 = vmax.xlane.f32.xlu1 %v6043_v4  ;;  %v6040_v0 = vsel %vm1085_vm2, %v12057_v49, -inf  ;;  %v1798_v4 = vsel %vm1085_vm2, %v12749_v16, 0.0 }
0x152e   : > { %6041 = vmax.xlane.f32.xlu0 %v6040_v0  ;;  %v4657_v0 = vsel %vm1085_vm2, %v11654_v25, 0.0  ;;  %v5377_v25 = vsel %vm1085_vm2, %v11928_v14, 0.0 }
0x152f   : > { %v12063_v59 = vpop.f32.mrb[106].mxu1 }
0x1530   : > { %v12065_v1 = vpop.f32.mrb[107].mxu1  ;;  %v6049_v17 = vsel %vm1085_vm2, %v12063_v59, -inf }
0x1531   : > { %v6046_v32 = vsel %vm1085_vm2, %v12065_v1, -inf }
0x1532   : > { %6050 = vmax.xlane.f32.xlu0 %v6049_v17  ;;  %v12750_v17 = vld [vmem:[#allocation55_spill] sm:$0xff] }
0x1533   : > { %v12069_v57 = vpop.f32.mrb[108].mxu1  ;;  %v2512_v50 = vsel %vm1085_vm2, %v12750_v17, 0.0  ;;  %v12766_v17 = vld [vmem:[#allocation75_spill] sm:$0xff] }
0x1534   : > { %v12071_v37 = vpop.f32.mrb[109].mxu1  ;;  %v6055_v52 = vsel %vm1085_vm2, %v12069_v57, -inf  ;;  %v3241_v8 = vsel %vm1085_vm2, %v12766_v17, 0.0 }
0x1535   : > { %6056 = vmax.xlane.f32.xlu1 %v6055_v52  ;;  %v6052_v34 = vsel %vm1085_vm2, %v12071_v37, -inf  ;;  %v12751_v52 = vld [vmem:[#allocation56_spill] sm:$0xff] }
0x1536   : > { %6047 = vmax.xlane.f32.xlu0 %v6046_v32  ;;  %v2515_v32 = vsel %vm1085_vm2, %v12751_v52, 0.0 }
0x1537   : > { %v12077_v54 = vpop.f32.mrb[110].mxu1 }
0x1538   : > { %v12079_v43 = vpop.f32.mrb[111].mxu1  ;;  %v6061_v30 = vsel %vm1085_vm2, %v12077_v54, -inf }
0x1539   : > { %2507 = vadd.xlane.f32.xlu1 %v2506_v7  ;;  %v6058_v36 = vsel %vm1085_vm2, %v12079_v43, -inf  ;;  %v12752_v7 = vld [vmem:[#allocation71_spill] sm:$0xff] }
0x153a   : > { %6053 = vmax.xlane.f32.xlu0 %v6052_v34  ;;  %v3229_v10 = vsel %vm1085_vm2, %v12752_v7, 0.0  ;;  %v12753_v34 = vld [vmem:[#allocation72_spill] sm:$0xff]  ;;  %v1791_v7 = vpop.xlane.xlu0 %1790 }
0x153b   : > { %v3232_v28 = vsel %vm1085_vm2, %v12753_v34, 0.0  ;;  %9694 = vrcp.f32 %v1791_v7 }
0x153d   : > { %3224 = vadd.xlane.f32.xlu1 %v3223_v18  ;;  %v3946_v18 = vsel %vm1085_vm2, %v11456_v33, 0.0  ;;  %v4666_v33 = vsel %vm1085_vm2, %v11668_v42, 0.0 }
0x153e   : > { %6062 = vmax.xlane.f32.xlu0 %v6061_v30  ;;  %v12754_v30 = vld [vmem:[#allocation41_spill] sm:$0xff] }
0x153f   : > { %v1801_v14 = vsel %vm1085_vm2, %v12754_v30, 0.0 }
0x1541   : > { %1793 = vadd.xlane.f32.xlu1 %v1792_v20  ;;  %v1804_v20 = vsel %vm1085_vm2, %v12755_v22, 0.0 }
0x1542   : > { %6059 = vmax.xlane.f32.xlu0 %v6058_v36  ;;  %v4663_v36 = vsel %vm1085_vm2, %v11666_v3, 0.0  ;;  %v5383_v3 = vsel %vm1085_vm2, %v11942_v63, 0.0  ;;  %v1807_v63 = vsel %vm1085_vm2, %v12762_v12, 0.0 }
0x1545   : > { %4655 = vadd.xlane.f32.xlu1 %v4654_v15  ;;  %v12756_v15 = vld [vmem:[#allocation57_spill] sm:$0xff] }
0x1546   : > { %2504 = vadd.xlane.f32.xlu0 %v2503_v41  ;;  %v2518_v48 = vsel %vm1085_vm2, %v12756_v15, 0.0  ;;  %v2521_v41 = vsel %vm1085_vm2, %v12757_v2, 0.0 }
0x1549   : > { %2510 = vadd.xlane.f32.xlu1 %v2509_v5  ;;  %v12758_v5 = vld [vmem:[#allocation73_spill] sm:$0xff] }
0x154a   : > { %3221 = vadd.xlane.f32.xlu0 %v3220_v29  ;;  %v3235_v42 = vsel %vm1085_vm2, %v12758_v5, 0.0  ;;  %v3238_v29 = vsel %vm1085_vm2, %v12759_v62, 0.0 }
0x154d   : > { %5372 = vadd.xlane.f32.xlu1 %v5371_v23  ;;  %v12760_v23 = vld [vmem:[#allocation85_spill] sm:$0xff] }
0x154e   : > { %3938 = vadd.xlane.f32.xlu0 %v3937_v21  ;;  %v3952_v6 = vsel %vm1085_vm2, %v12760_v23, 0.0  ;;  %v12761_v21 = vld [vmem:[#allocation86_spill] sm:$0xff] }
0x154f   : > { %v3955_v11 = vsel %vm1085_vm2, %v12761_v21, 0.0  ;;  %v12776_v21 = vld [vmem:[#allocation45_spill] sm:$0xff] }
0x1551   : > { %3227 = vadd.xlane.f32.xlu1 %v3226_v56  ;;  %v12763_v56 = vld [vmem:[#allocation87_spill] sm:$0xff] }
0x1552   : > { %3941 = vadd.xlane.f32.xlu0 %v3940_v19  ;;  %v3958_v19 = vsel %vm1085_vm2, %v12763_v56, 0.0 }
0x1555   : > { %3944 = vadd.xlane.f32.xlu1 %v3943_v53  ;;  %v4669_v53 = vsel %vm1085_vm2, %v11674_v13, 0.0 }
0x1556   : > { %1796 = vadd.xlane.f32.xlu0 %v1795_v45  ;;  %v12764_v45 = vld [vmem:[#allocation59_spill] sm:$0xff] }
0x1557   : > { %v2524_v16 = vsel %vm1085_vm2, %v12764_v45, 0.0 }
0x1559   : > { %1799 = vadd.xlane.f32.xlu1 %v1798_v4  ;;  %v5392_v4 = vsel %vm1085_vm2, %v11956_v44, 0.0 }
0x155a   : > { %4658 = vadd.xlane.f32.xlu0 %v4657_v0  ;;  %v5386_v0 = vsel %vm1085_vm2, %v11948_v35, 0.0 }
0x155d   : > { %4661 = vadd.xlane.f32.xlu1 %v4660_v24  ;;  %v12765_v24 = vld [vmem:[#allocation21_spill] sm:$0xff] }
0x155e   : > { %2513 = vadd.xlane.f32.xlu0 %v2512_v50  ;;  %v1137_v13 = vsel %vm1085_vm2, %v12765_v24, 0.0  ;;  %v12767_v50 = vld [vmem:[#allocation22_spill] sm:$0xff] }
0x155f   : > { %v1143_v52 = vsel %vm1085_vm2, %v12767_v50, 0.0 }
0x1561   : > { %2516 = vadd.xlane.f32.xlu1 %v2515_v32  ;;  %v12768_v32 = vld [vmem:[#allocation17_spill] sm:$0xff] }
0x1562   : > { %5375 = vadd.xlane.f32.xlu0 %v5374_v51  ;;  %v4672_v44 = vsel %vm1085_vm2, %v12768_v32, 0.0  ;;  %v12769_v51 = vld [vmem:[#allocation25_spill] sm:$0xff] }
0x1563   : > { %v1149_v35 = vsel %vm1085_vm2, %v12769_v51, 0.0 }
0x1565   : > { %5378 = vadd.xlane.f32.xlu1 %v5377_v25  ;;  %v5389_v25 = vsel %vm1085_vm2, %v11950_v55, 0.0  ;;  %v9695_v55 = vpop.eup %9694 }
0x1566   : > { %3230 = vadd.xlane.f32.xlu0 %v3229_v10  ;;  %v12770_v10 = vld [vmem:[#allocation27_spill] sm:$0xff] }
0x1567   : > { %v1155_v34 = vsel %vm1085_vm2, %v12770_v10, 0.0 }
0x1569   : > { %3233 = vadd.xlane.f32.xlu1 %v3232_v28  ;;  %v12771_v28 = vld [vmem:[#allocation20_spill] sm:$0xff] }
0x156a   : > { %3947 = vadd.xlane.f32.xlu0 %v3946_v18  ;;  %v1134_v18 = vsel %vm1085_vm2, %v12771_v28, 0.0 }
0x156d   : > { %3950 = vadd.xlane.f32.xlu1 %v3949_v46  ;;  %v12772_v46 = vld [vmem:[#allocation23_spill] sm:$0xff] }
0x156e   : > { %1802 = vadd.xlane.f32.xlu0 %v1801_v14  ;;  %v1140_v30 = vsel %vm1085_vm2, %v12772_v46, 0.0  ;;  %v12773_v14 = vld [vmem:[#allocation24_spill] sm:$0xff] }
0x156f   : > { %v1146_v22 = vsel %vm1085_vm2, %v12773_v14, 0.0 }
0x1571   : > { %1805 = vadd.xlane.f32.xlu1 %v1804_v20  ;;  %v12774_v20 = vld [vmem:[#allocation26_spill] sm:$0xff] }
0x1572   : > { %4664 = vadd.xlane.f32.xlu0 %v4663_v36  ;;  %v1152_v36 = vsel %vm1085_vm2, %v12774_v20, 0.0 }
0x1575   : > { %4667 = vadd.xlane.f32.xlu1 %v4666_v33  ;;  %v12775_v33 = vld [vmem:[#allocation44_spill] sm:$0xff] }
0x1576   : > { %2519 = vadd.xlane.f32.xlu0 %v2518_v48  ;;  %v1980_v15 = vmul.f32 %v9695_v55, %v12775_v33  ;;  %v1788_v48 = vpop.xlane.xlu1 %1787  ;;  %v12778_v33 = vld [vmem:[#allocation77_spill] sm:$0xff] }
0x1577   : > { %9696 = vrcp.f32 %v1788_v48  ;;  %v12779_v48 = vld [vmem:[#allocation60_spill] sm:$0xff] }
0x1579   : > { %2522 = vadd.xlane.f32.xlu1 %v2521_v41 }
0x157a   : > { %5381 = vadd.xlane.f32.xlu0 %v5380_v47 }
0x157d   : > { %5384 = vadd.xlane.f32.xlu1 %v5383_v3 }
0x157e   : > { %3236 = vadd.xlane.f32.xlu0 %v3235_v42 }
0x1581   : > { %3239 = vadd.xlane.f32.xlu1 %v3238_v29  ;;  %v9697_v62 = vpop.eup %9696 }
0x1582   : > { %3953 = vadd.xlane.f32.xlu0 %v3952_v6 }
0x1585   : > { %3956 = vadd.xlane.f32.xlu1 %v3955_v11  ;;  %v1979_v11 = vmul.f32 %v9697_v62, %v12776_v21 }
0x1586   : > { %1808 = vadd.xlane.f32.xlu0 %v1807_v63 }
0x1589   : > { %3959 = vadd.xlane.f32.xlu1 %v3958_v19 }
0x158a   : > { %4670 = vadd.xlane.f32.xlu0 %v4669_v53 }
0x158d   : > { %4676 = vadd.xlane.f32.xlu1 %v4675_v61 }
0x158e   : > { %2525 = vadd.xlane.f32.xlu0 %v2524_v16 }
0x1591   : > { %5393 = vadd.xlane.f32.xlu1 %v5392_v4 }
0x1592   : > { %5387 = vadd.xlane.f32.xlu0 %v5386_v0 }
0x1595   : > { %1138 = vadd.xlane.f32.xlu1 %v1137_v13 }
0x1596   : > { %3242 = vadd.xlane.f32.xlu0 %v3241_v8 }
0x1599   : > { %1144 = vadd.xlane.f32.xlu1 %v1143_v52 }
0x159a   : > { %4673 = vadd.xlane.f32.xlu0 %v4672_v44 }
0x159d   : > { %1150 = vadd.xlane.f32.xlu1 %v1149_v35 }
0x159e   : > { %5390 = vadd.xlane.f32.xlu0 %v5389_v25 }
0x15a1   : > { %1156 = vadd.xlane.f32.xlu1 %v1155_v34 }
0x15a2   : > { %1135 = vadd.xlane.f32.xlu0 %v1134_v18 }
0x15a6   : > { %1141 = vadd.xlane.f32.xlu0 %v1140_v30  ;;  %v12777_v30 = vld [vmem:[#allocation61_spill] sm:$0xff] }
0x15aa   : > { %1147 = vadd.xlane.f32.xlu0 %v1146_v22 }
0x15ae   : > { %1153 = vadd.xlane.f32.xlu0 %v1152_v36 }
0x15b2   : > { %1997 = vrot.lane.b32.xlu1 %v1980_v15, %s10024_s17 }
0x15ba   : > { %v6045_v2 = vpop.xlane.xlu1 %6044 }
0x15bb   : > { %v6065_v41 = vsub.f32 %v12055_v60, %v6045_v2  ;;  %v6042_v47 = vpop.xlane.xlu0 %6041 }
0x15bc   : > { %v6064_v3 = vsub.f32 %v12057_v49, %v6042_v47 }
0x15bd   : > { %v6074_v5 = vmul.f32 1.442695, %v6065_v41 }
0x15be   : > { %v6072_v42 = vmul.f32 1.442695, %v6064_v3 }
0x15bf   : > { %v6051_v29 = vpop.xlane.xlu0 %6050 }
0x15c0   : > { %9698 = vpow2.f32 %v6072_v42  ;;  %v6067_v23 = vsub.f32 %v12063_v59, %v6051_v29  ;;  %v12780_v42 = vld [vmem:[#allocation89_spill] sm:$0xff]  ;;  %v12781_v29 = vld [vmem:[#allocation76_spill] sm:$0xff] }
0x15c1   : > { %9700 = vpow2.f32 %v6074_v5 }
0x15c2   : > { %v6057_v6 = vpop.xlane.xlu1 %6056  ;;  %v6078_v60 = vmul.f32 1.442695, %v6067_v23 }
0x15c3   : > { %v6048_v12 = vpop.xlane.xlu0 %6047  ;;  %v6069_v56 = vsub.f32 %v12069_v57, %v6057_v6 }
0x15c4   : > { %v6066_v63 = vsub.f32 %v12065_v1, %v6048_v12  ;;  %1995 = vrot.lane.b32.xlu0 %v1979_v11, %s10024_s17 }
0x15c5   : > { %v6082_v45 = vmul.f32 1.442695, %v6069_v56  ;;  %v12783_v56 = vld [vmem:[#allocation47_spill] sm:$0xff] }
0x15c6   : > { %v6076_v49 = vmul.f32 1.442695, %v6066_v63  ;;  %v2508_v19 = vpop.xlane.xlu1 %2507  ;;  %v12782_v63 = vld [vmem:[#allocation88_spill] sm:$0xff] }
0x15c7   : > { %v6054_v53 = vpop.xlane.xlu0 %6053 }
0x15c8   : > { %9702 = vpow2.f32 %v6076_v49  ;;  %v6068_v61 = vsub.f32 %v12071_v37, %v6054_v53 }
0x15c9   : > { %9704 = vpow2.f32 %v6078_v60 }
0x15ca   : > { %v12205_v59 = vpop.eup %9698  ;;  %v6080_v16 = vmul.f32 1.442695, %v6068_v61  ;;  %v3225_v4 = vpop.xlane.xlu1 %3224 }
0x15cb   : > { %v12207_v0 = vpop.eup %9700  ;;  %8394 = vmatprep.mubr.msk.f32.mxu0 %vm1085_vm2, %v12205_v59  ;;  %v6063_v1 = vpop.xlane.xlu0 %6062 }
0x15cc   : > { %9706 = vpow2.f32 %v6080_v16  ;;  %v6071_v57 = vsub.f32 %v12077_v54, %v6063_v1  ;;  %8395 = vmatmul.mubr.msk.f32.vlgmr.msra.gmra.mrb[96].mxu0 %vm1085_vm2, %v12207_v0  ;;  %v12784_v16 = vld [vmem:[#allocation46_spill] sm:$0xff] }
0x15cd   : > { %9708 = vpow2.f32 %v6082_v45  ;;  %v12785_v1 = vld [vmem:[#allocation18_spill] sm:$0xff] }
0x15ce   : > { %v1794_v37 = vpop.xlane.xlu1 %1793  ;;  %v6086_v24 = vmul.f32 1.442695, %v6071_v57 }
0x15cf   : > { %v6060_v13 = vpop.xlane.xlu0 %6059 }
0x15d0   : > { %v6070_v17 = vsub.f32 %v12079_v43, %v6060_v13  ;;  %9710 = vpow2.f32 %v6086_v24 }
0x15d2   : > { %v12215_v8 = vpop.eup %9702  ;;  %v6084_v50 = vmul.f32 1.442695, %v6070_v17  ;;  %v4656_v52 = vpop.xlane.xlu1 %4655 }
0x15d3   : > { %v12217_v32 = vpop.eup %9704  ;;  %8397 = vmatprep.mubr.msk.f32.mxu0 %vm1085_vm2, %v12215_v8  ;;  %v2505_v54 = vpop.xlane.xlu0 %2504 }
0x15d4   : > { %9712 = vpow2.f32 %v6084_v50  ;;  %8398 = vmatmul.mubr.msk.f32.gmra.mrb[98].mxu0 %vm1085_vm2, %v12217_v32  ;;  %v12786_v50 = vld [vmem:[#allocation19_spill] sm:$0xff] }
0x15d5   : > { %9714 = vrcp.f32 %v2505_v54  ;;  %v12787_v54 = vld [vmem:[#allocation63_spill] sm:$0xff] }
0x15d6   : > { %v12223_v44 = vpop.eup %9706  ;;  %v2511_v51 = vpop.xlane.xlu1 %2510  ;;  %9716 = vrcp.f32 %v2508_v19 }
0x15d7   : > { %v12225_v43 = vpop.eup %9708  ;;  %8400 = vmatprep.mubr.msk.f32.mxu0 %vm1085_vm2, %v12223_v44  ;;  %v3222_v35 = vpop.xlane.xlu0 %3221 }
0x15d8   : > { %9718 = vrcp.f32 %v3222_v35  ;;  %8401 = vmatmul.mubr.msk.f32.gmra.mrb[100].mxu0 %vm1085_vm2, %v12225_v43 }
0x15d9   : > { %9720 = vrcp.f32 %v3225_v4 }
0x15da   : > { %v5373_v25 = vpop.xlane.xlu1 %5372  ;;  %v12231_v10 = vpop.eup %9710 }
0x15db   : > { %v3939_v7 = vpop.xlane.xlu0 %3938 }
0x15dc   : > { %9722 = vrcp.f32 %v3939_v7 }
0x15dd   : > { %9724 = vrcp.f32 %v1794_v37 }
0x15de   : > { %v12233_v34 = vpop.eup %9712  ;;  %v3228_v28 = vpop.xlane.xlu1 %3227 }
0x15df   : > { %v9715_v18 = vpop.eup %9714  ;;  %8403 = vmatprep.mubr.msk.f32.mxu0 %vm1085_vm2, %v12233_v34  ;;  %v3942_v46 = vpop.xlane.xlu0 %3941 }
0x15e0   : > { %9726 = vrcp.f32 %v3942_v46  ;;  %8404 = vmatmul.mubr.msk.f32.gmra.mrb[102].mxu0 %vm1085_vm2, %v12231_v10  ;;  %v2696_v14 = vmul.f32 %v9715_v18, %v12777_v30  ;;  %v9717_v22 = vpop.eup %9716  ;;  %v12788_v18 = vld [vmem:[#allocation62_spill] sm:$0xff] }
0x15e1   : > { %9728 = vrcp.f32 %v4656_v52  ;;  %v2697_v2 = vmul.f32 %v9717_v22, %v12779_v48 }
0x15e2   : > { %v9719_v55 = vpop.eup %9718  ;;  %2712 = vrot.lane.b32.xlu1 %v2696_v14, %s10023_s22  ;;  %v3945_v20 = vpop.xlane.xlu1 %3944 }
0x15e3   : > { %v1797_v36 = vpop.xlane.xlu0 %1796  ;;  %v3413_v15 = vmul.f32 %v9719_v55, %v12778_v33  ;;  %v9721_v41 = vpop.eup %9720  ;;  %v12789_v33 = vld [vmem:[#allocation79_spill] sm:$0xff] }
0x15e4   : > { %9730 = vrcp.f32 %v1797_v36  ;;  %v3414_v23 = vmul.f32 %v9721_v41, %v12781_v29 }
0x15e5   : > { %3429 = vrot.lane.b32.xlu0 %v3413_v15, %s10022_s19  ;;  %9732 = vrcp.f32 %v2511_v51 }
0x15e6   : > { %v9723_v47 = vpop.eup %9722  ;;  %2714 = vrot.lane.b32.xlu1 %v2697_v2, %s10023_s22  ;;  %v1800_v3 = vpop.xlane.xlu1 %1799 }
0x15e7   : > { %v4659_v5 = vpop.xlane.xlu0 %4658  ;;  %v4130_v62 = vmul.f32 %v9723_v47, %v12780_v42  ;;  %v9725_v6 = vpop.eup %9724  ;;  %v12790_v47 = vld [vmem:[#allocation78_spill] sm:$0xff]  ;;  %v12791_v42 = vld [vmem:[#allocation91_spill] sm:$0xff] }
0x15e8   : > { %9734 = vrcp.f32 %v4659_v5  ;;  %v1981_v49 = vmul.f32 %v9725_v6, %v12783_v56  ;;  %v12792_v6 = vld [vmem:[#allocation81_spill] sm:$0xff] }
0x15e9   : > { %4146 = vrot.lane.b32.xlu0 %v4130_v62, %s10021_s21  ;;  %9736 = vrcp.f32 %v5373_v25  ;;  %v12794_v56 = vld [vmem:[#allocation49_spill] sm:$0xff] }
0x15ea   : > { %v9727_v21 = vpop.eup %9726  ;;  %3431 = vrot.lane.b32.xlu1 %v3414_v23, %s10022_s19  ;;  %v4662_v11 = vpop.xlane.xlu1 %4661 }
0x15eb   : > { %v2514_v12 = vpop.xlane.xlu0 %2513  ;;  %v4131_v60 = vmul.f32 %v9727_v21, %v12782_v63  ;;  %v9729_v19 = vpop.eup %9728 }
0x15ec   : > { %9738 = vrcp.f32 %v2514_v12  ;;  %v4847_v57 = vmul.f32 %v9729_v19, %v12785_v1  ;;  %v12793_v12 = vld [vmem:[#allocation90_spill] sm:$0xff]  ;;  %v12796_v1 = vld [vmem:[#allocation48_spill] sm:$0xff] }
0x15ed   : > { %4148 = vrot.lane.b32.xlu0 %v4131_v60, %s10021_s21  ;;  %9740 = vrcp.f32 %v3228_v28 }
0x15ee   : > { %v9731_v53 = vpop.eup %9730  ;;  %1999 = vrot.lane.b32.xlu1 %v1981_v49, %s10024_s17  ;;  %v2517_v61 = vpop.xlane.xlu1 %2516 }
0x15ef   : > { %v5376_v45 = vpop.xlane.xlu0 %5375  ;;  %v1982_v4 = vmul.f32 %v9731_v53, %v12784_v16  ;;  %v9733_v37 = vpop.eup %9732 }
0x15f0   : > { %9742 = vrcp.f32 %v5376_v45  ;;  %v2698_v51 = vmul.f32 %v9733_v37, %v12787_v54  ;;  %v12795_v45 = vld [vmem:[#allocation93_spill] sm:$0xff]  ;;  %v12798_v54 = vld [vmem:[#allocation51_spill] sm:$0xff] }
0x15f1   : > { %2001 = vrot.lane.b32.xlu0 %v1982_v4, %s10024_s17  ;;  %9744 = vrcp.f32 %v3945_v20 }
0x15f2   : > { %v9735_v24 = vpop.eup %9734  ;;  %4863 = vrot.lane.b32.xlu1 %v4847_v57, %s10020_s10  ;;  %v5379_v13 = vpop.xlane.xlu1 %5378 }
0x15f3   : > { %v3231_v17 = vpop.xlane.xlu0 %3230  ;;  %v4848_v52 = vmul.f32 %v9735_v24, %v12786_v50  ;;  %v9737_v35 = vpop.eup %9736  ;;  %v12797_v24 = vld [vmem:[#allocation97_spill] sm:$0xff] }
0x15f4   : > { %9746 = vrcp.f32 %v3231_v17  ;;  %v5564_v30 = vmul.f32 %v9737_v35, %v11997_v31 }
0x15f5   : > { %4865 = vrot.lane.b32.xlu0 %v4848_v52, %s10020_s10  ;;  %9748 = vrcp.f32 %v1800_v3 }
0x15f6   : > { %v9739_v25 = vpop.eup %9738  ;;  %2716 = vrot.lane.b32.xlu1 %v2698_v51, %s10023_s22  ;;  %v3234_v7 = vpop.xlane.xlu1 %3233 }
0x15f7   : > { %9750 = vrcp.f32 %v3234_v7  ;;  %v3948_v28 = vpop.xlane.xlu0 %3947  ;;  %v2699_v46 = vmul.f32 %v9739_v25, %v12788_v18  ;;  %v9741_v14 = vpop.eup %9740  ;;  %v12799_v25 = vld [vmem:[#allocation96_spill] sm:$0xff]  ;;  %v12800_v18 = vld [vmem:[#allocation65_spill] sm:$0xff] }
0x15f8   : > { %9752 = vrcp.f32 %v3948_v28  ;;  %v3415_v15 = vmul.f32 %v9741_v14, %v12789_v33 }
0x15f9   : > { %2718 = vrot.lane.b32.xlu0 %v2699_v46, %s10023_s22  ;;  %9754 = vrcp.f32 %v4662_v11 }
0x15fa   : > { %v9743_v22 = vpop.eup %9742  ;;  %5580 = vrot.lane.b32.xlu1 %v5564_v30, %s10019_s26  ;;  %v3951_v55 = vpop.xlane.xlu1 %3950 }
0x15fb   : > { %9756 = vrcp.f32 %v3951_v55  ;;  %v1803_v20 = vpop.xlane.xlu0 %1802  ;;  %v5565_v36 = vmul.f32 %v9743_v22, %v11995_v26  ;;  %v9745_v48 = vpop.eup %9744  ;;  %v12801_v22 = vld [vmem:[#allocation99_spill] sm:$0xff] }
0x15fc   : > { %9758 = vrcp.f32 %v1803_v20  ;;  %v4132_v62 = vmul.f32 %v9745_v48, %v12791_v42  ;;  %v12802_v48 = vld [vmem:[#allocation67_spill] sm:$0xff] }
0x15fd   : > { %5582 = vrot.lane.b32.xlu0 %v5565_v36, %s10019_s26  ;;  %9760 = vrcp.f32 %v2517_v61 }
0x15fe   : > { %v9747_v2 = vpop.eup %9746  ;;  %3433 = vrot.lane.b32.xlu1 %v3415_v15, %s10022_s19  ;;  %v1806_v31 = vpop.xlane.xlu1 %1805 }
0x15ff   : > { %9762 = vrcp.f32 %v1806_v31  ;;  %v4665_v41 = vpop.xlane.xlu0 %4664  ;;  %v3416_v3 = vmul.f32 %v9747_v2, %v12790_v47  ;;  %v9749_v5 = vpop.eup %9748 }
0x1600   : > { %9764 = vrcp.f32 %v4665_v41  ;;  %v1983_v49 = vmul.f32 %v9749_v5, %v12794_v56 }
0x1601   : > { %v9751_v26 = vpop.eup %9750  ;;  %3435 = vrot.lane.b32.xlu0 %v3416_v3, %s10022_s19  ;;  %9766 = vrcp.f32 %v5379_v13 }
0x1602   : > { %v9753_v29 = vpop.eup %9752  ;;  %4150 = vrot.lane.b32.xlu1 %v4132_v62, %s10021_s21  ;;  %v4668_v23 = vpop.xlane.xlu1 %4667  ;;  %v12274_v21 = vmul.f32 %v9751_v26, %v12792_v6  ;;  %v12803_v62 = vld [vmem:[#allocation83_spill] sm:$0xff] }
0x1603   : > { %9768 = vrcp.f32 %v4668_v23  ;;  %v12276_v11 = vpop.xlane.xlu0 %2519  ;;  %v4133_v63 = vmul.f32 %v9753_v29, %v12793_v12  ;;  %v9755_v60 = vpop.eup %9754  ;;  %v12804_v12 = vld [vmem:[#allocation95_spill] sm:$0xff] }
0x1604   : > { %v4849_v13 = vmul.f32 %v9755_v60, %v12797_v24 }
0x1605   : > { %v9757_v19 = vpop.eup %9756  ;;  %4152 = vrot.lane.b32.xlu0 %v4133_v63, %s10021_s21 }
0x1606   : > { %v9759_v53 = vpop.eup %9758  ;;  %2003 = vrot.lane.b32.xlu1 %v1983_v49, %s10024_s17  ;;  %v2523_v61 = vpop.xlane.xlu1 %2522  ;;  %v12283_v16 = vmul.f32 %v9757_v19, %v12795_v45  ;;  %v12805_v49 = vld [vmem:[#allocation94_spill] sm:$0xff] }
0x1607   : > { %9770 = vrcp.f32 %v2523_v61  ;;  %v12285_v4 = vpop.xlane.xlu0 %5381  ;;  %v1984_v57 = vmul.f32 %v9759_v53, %v12796_v1  ;;  %v9761_v37 = vpop.eup %9760  ;;  %v12806_v1 = vld [vmem:[#allocation100_spill] sm:$0xff] }
0x1608   : > { %v2700_v46 = vmul.f32 %v9761_v37, %v12800_v18 }
0x1609   : > { %v9763_v17 = vpop.eup %9762  ;;  %2005 = vrot.lane.b32.xlu0 %v1984_v57, %s10024_s17 }
0x160a   : > { %v9765_v50 = vpop.eup %9764  ;;  %4867 = vrot.lane.b32.xlu1 %v4849_v13, %s10020_s10  ;;  %v5385_v52 = vpop.xlane.xlu1 %5384  ;;  %v12292_v51 = vmul.f32 %v9763_v17, %v12798_v54 }
0x160b   : > { %9772 = vrcp.f32 %v5385_v52  ;;  %v12294_v35 = vpop.xlane.xlu0 %3236  ;;  %v4850_v7 = vmul.f32 %v9765_v50, %v12799_v25  ;;  %v9767_v28 = vpop.eup %9766  ;;  %v6091_v52 = vsel %vm1085_vm2, %v12207_v0, 0.0  ;;  %v12807_v25 = vld [vmem:[#allocation28_spill] sm:$0xff] }
0x160c   : > { %v5566_v36 = vmul.f32 %v9767_v28, %v12001_v9 }
0x160d   : > { %v9769_v30 = vpop.eup %9768  ;;  %4869 = vrot.lane.b32.xlu0 %v4850_v7, %s10020_s10 }
0x160e   : > { %2720 = vrot.lane.b32.xlu1 %v2700_v46, %s10023_s22  ;;  %v3240_v14 = vpop.xlane.xlu1 %3239  ;;  %v12301_v55 = vmul.f32 %v9769_v30, %v12801_v22  ;;  %v6097_v46 = vsel %vm1085_vm2, %v12217_v32, 0.0  ;;  %v12808_v30 = vld [vmem:[#allocation30_spill] sm:$0xff] }
0x160f   : > { %9774 = vrcp.f32 %v3240_v14  ;;  %v12303_v20 = vpop.xlane.xlu0 %3953 }
0x1611   : > { %v9771_v33 = vpop.eup %9770 }
0x1612   : > { %5584 = vrot.lane.b32.xlu1 %v5566_v36, %s10019_s26  ;;  %v3957_v15 = vpop.xlane.xlu1 %3956  ;;  %v12308_v2 = vmul.f32 %v9771_v33, %v12802_v48  ;;  %v6103_v36 = vsel %vm1085_vm2, %v12225_v43, 0.0  ;;  %v6088_v33 = vsel %vm1085_vm2, %v12205_v59, 0.0  ;;  %v12811_v59 = vld [vmem:[#allocation29_spill] sm:$0xff] }
0x1613   : > { %9776 = vrcp.f32 %v3957_v15  ;;  %v12310_v31 = vpop.xlane.xlu0 %1808  ;;  %v12809_v15 = vld [vmem:[#allocation32_spill] sm:$0xff] }
0x1615   : > { %v9773_v41 = vpop.eup %9772 }
0x1616   : > { %v3960_v47 = vpop.xlane.xlu1 %3959  ;;  %v12313_v3 = vmul.f32 %v9773_v41, %v12005_v58 }
0x1617   : > { %9778 = vrcp.f32 %v3960_v47  ;;  %v12315_v5 = vpop.xlane.xlu0 %4670  ;;  %v6106_v47 = vsel %vm1085_vm2, %v12233_v34, 0.0  ;;  %v6100_v34 = vsel %vm1085_vm2, %v12223_v44, 0.0 }
0x1619   : > { %v9775_v42 = vpop.eup %9774 }
0x161a   : > { %v4677_v9 = vpop.xlane.xlu1 %4676  ;;  %v12318_v26 = vmul.f32 %v9775_v42, %v12803_v62  ;;  %v6094_v42 = vsel %vm1085_vm2, %v12215_v8, 0.0  ;;  %v12810_v62 = vld [vmem:[#allocation34_spill] sm:$0xff]  ;;  %v12812_v8 = vld [vmem:[#allocation31_spill] sm:$0xff] }
0x161b   : > { %9780 = vrcp.f32 %v4677_v9  ;;  %v12320_v29 = vpop.xlane.xlu0 %2525 }
0x161d   : > { %v9777_v23 = vpop.eup %9776 }
0x161e   : > { %v5394_v6 = vpop.xlane.xlu1 %5393  ;;  %v12323_v63 = vmul.f32 %v9777_v23, %v12804_v12 }
0x161f   : > { %9782 = vrcp.f32 %v5394_v6  ;;  %v12325_v60 = vpop.xlane.xlu0 %5387 }
0x1621   : > { %v9779_v58 = vpop.eup %9778 }
0x1622   : > { %v1139_v56 = vpop.xlane.xlu1 %1138  ;;  %v12328_v19 = vmul.f32 %v9779_v58, %v12805_v49 }
0x1623   : > { %9784 = vrcp.f32 %v1139_v56  ;;  %v12330_v53 = vpop.xlane.xlu0 %3242 }
0x1625   : > { %v9781_v61 = vpop.eup %9780 }
0x1626   : > { %v1145_v45 = vpop.xlane.xlu1 %1144  ;;  %v12333_v57 = vmul.f32 %v9781_v61, %v12806_v1  ;;  %v6109_v61 = vsel %vm1085_vm2, %v12231_v10, 0.0  ;;  %v12813_v1 = vld [vmem:[#allocation33_spill] sm:$0xff] }
0x1627   : > { %9786 = vrcp.f32 %v1145_v45  ;;  %v12335_v37 = vpop.xlane.xlu0 %4673 }
0x1629   : > { %v9783_v24 = vpop.eup %9782 }
0x162a   : > { %v1151_v13 = vpop.xlane.xlu1 %1150  ;;  %v12338_v17 = vmul.f32 %v9783_v24, %v12007_v40 }
0x162b   : > { %9788 = vrcp.f32 %v1151_v13  ;;  %v12340_v50 = vpop.xlane.xlu0 %5390 }
0x162c   : > { %6092 = vadd.xlane.f32.xlu0 %v6091_v52 }
0x162d   : > { %v9785_v54 = vpop.eup %9784 }
0x162e   : > { %v1296_v7 = vmul.f32 %v9785_v54, %v12807_v25  ;;  %v1157_v28 = vpop.xlane.xlu1 %1156  ;;  %v12815_v54 = vld [vmem:[#allocation64_spill] sm:$0xff] }
0x162f   : > { %9790 = vrcp.f32 %v1157_v28  ;;  %v1136_v18 = vpop.xlane.xlu0 %1135 }
0x1630   : > { %1304 = vst.msk [vmem:[#allocation3 + $0x8] sm:$0xff] %vm713_vm0, %v1296_v7  ;;  %9792 = vrcp.f32 %v1136_v18  ;;  %6098 = vadd.xlane.f32.xlu0 %v6097_v46 }
0x1631   : > { %v9787_v40 = vpop.eup %9786 }
0x1632   : > { %v1298_v14 = vmul.f32 %v9787_v40, %v12808_v30  ;;  %v1998_v22 = vpop.permute.xlu1 %1997 }
0x1633   : > { %2021 = vst.msk [vmem:[#allocation3 + $0x8] sm:$0xff] %vm2019_vm3, %v1998_v22  ;;  %v1142_v0 = vpop.xlane.xlu0 %1141 }
0x1634   : > { %1306 = vst.msk [vmem:[#allocation3 + $0x18] sm:$0xff] %vm713_vm0, %v1298_v14  ;;  %9794 = vrcp.f32 %v1142_v0  ;;  %6104 = vadd.xlane.f32.xlu0 %v6103_v36 }
0x1635   : > { %v9789_v32 = vpop.eup %9788 }
0x1636   : > { %v1300_v48 = vmul.f32 %v9789_v32, %v12809_v15  ;;  %6089 = vadd.xlane.f32.xlu1 %v6088_v33 }
0x1637   : > { %v1148_v41 = vpop.xlane.xlu0 %1147 }
0x1638   : > { %1308 = vst.msk [vmem:[#allocation3 + $0x28] sm:$0xff] %vm713_vm0, %v1300_v48  ;;  %9796 = vrcp.f32 %v1148_v41  ;;  %6107 = vadd.xlane.f32.xlu0 %v6106_v47 }
0x1639   : > { %v9791_v43 = vpop.eup %9790 }
0x163a   : > { %v9793_v9 = vpop.eup %9792  ;;  %v1302_v23 = vmul.f32 %v9791_v43, %v12810_v62  ;;  %6095 = vadd.xlane.f32.xlu1 %v6094_v42  ;;  %v12822_v62 = vld [vmem:[#allocation101_spill] sm:$0xff] }
0x163b   : > { %v1295_v6 = vmul.f32 %v9793_v9, %v12811_v59  ;;  %v1154_v12 = vpop.xlane.xlu0 %1153 }
0x163c   : > { %1310 = vst.msk [vmem:[#allocation3 + $0x38] sm:$0xff] %vm713_vm0, %v1302_v23  ;;  %9798 = vrcp.f32 %v1154_v12 }
0x163d   : > { %1303 = vst.msk [vmem:[#allocation3] sm:$0xff] %vm713_vm0, %v1295_v6  ;;  %9800 = vrcp.f32 %v12276_v11  ;;  %v12814_v11 = vld [vmem:[#allocation35_spill] sm:$0xff] }
0x163e   : > { %v9795_v58 = vpop.eup %9794  ;;  %6101 = vadd.xlane.f32.xlu1 %v6100_v34  ;;  %9802 = vrcp.f32 %v12285_v4 }
0x163f   : > { %v1297_v56 = vmul.f32 %v9795_v58, %v12812_v8  ;;  %v1996_v49 = vpop.permute.xlu0 %1995  ;;  %9804 = vrcp.f32 %v12294_v35  ;;  %v6338_v58 = vld [vmem:[#allocation9] sm:$0xff]  ;;  %v6339_v8 = vld [vmem:[#allocation9 + $0x8] sm:$0xff] }
0x1640   : > { %2020 = vst.msk [vmem:[#allocation3] sm:$0xff] %vm2019_vm3, %v1996_v49  ;;  %9806 = vrcp.f32 %v12303_v20  ;;  %v12816_v20 = vld [vmem:[#allocation80_spill] sm:$0xff] }
0x1641   : > { %1305 = vst.msk [vmem:[#allocation3 + $0x10] sm:$0xff] %vm713_vm0, %v1297_v56  ;;  %9808 = vrcp.f32 %v12310_v31  ;;  %v9122_v56 = vpack.c.bf16 %v6339_v8, %v6338_v58  ;;  %v6341_v49 = vld [vmem:[#allocation9 + $0x18] sm:$0xff] }
0x1642   : > { %v9797_v45 = vpop.eup %9796  ;;  %6110 = vadd.xlane.f32.xlu1 %v6109_v61  ;;  %9810 = vrcp.f32 %v12315_v5  ;;  %v12817_v5 = vld [vmem:[#allocation92_spill] sm:$0xff] }
0x1643   : > { %v1299_v44 = vmul.f32 %v9797_v45, %v12813_v1  ;;  %9812 = vrcp.f32 %v12320_v29  ;;  %v6343_v45 = vld [vmem:[#allocation9 + $0x28] sm:$0xff]  ;;  %9123 = vmatprep.subr.bf16.mxu0 %v9122_v56 }
0x1644   : > { %9814 = vrcp.f32 %v12325_v60  ;;  %9125 = vmatpush3.bf16.msra.mxu0 %v9122_v56 }
0x1645   : > { %1307 = vst.msk [vmem:[#allocation3 + $0x20] sm:$0xff] %vm713_vm0, %v1299_v44  ;;  %9816 = vrcp.f32 %v12330_v53 }
0x1646   : > { %v9799_v24 = vpop.eup %9798  ;;  %9818 = vrcp.f32 %v12335_v37 }
0x1647   : > { %v1301_v13 = vmul.f32 %v9799_v24, %v12814_v11  ;;  %v9801_v52 = vpop.eup %9800  ;;  %9820 = vrcp.f32 %v12340_v50  ;;  %v6344_v24 = vld [vmem:[#allocation9 + $0x30] sm:$0xff]  ;;  %v6345_v11 = vld [vmem:[#allocation9 + $0x38] sm:$0xff] }
0x1648   : > { %v2701_v10 = vmul.f32 %v9801_v52, %v12815_v54  ;;  %v9803_v25 = vpop.eup %9802  ;;  %v9134_v54 = vpack.c.bf16 %v6345_v11, %v6344_v24 }
0x1649   : > { %1309 = vst.msk [vmem:[#allocation3 + $0x30] sm:$0xff] %vm713_vm0, %v1301_v13  ;;  %v5567_v4 = vmul.f32 %v9803_v25, %v11999_v38  ;;  %v9805_v7 = vpop.eup %9804 }
0x164a   : > { %v3418_v28 = vmul.f32 %v9805_v7, %v12816_v20  ;;  %v9807_v18 = vpop.eup %9806 }
0x164b   : > { %v9809_v46 = vpop.eup %9808 }
0x164c   : > { %v9811_v14 = vpop.eup %9810 }
0x164d   : > { %v9813_v36 = vpop.eup %9812 }
0x164e   : > { %2722 = vrot.lane.b32.xlu0 %v2701_v10, %s10023_s22  ;;  %v9815_v15 = vpop.eup %9814 }
0x164f   : > { %v9817_v41 = vpop.eup %9816 }
0x1650   : > { %v9819_v42 = vpop.eup %9818 }
0x1651   : > { %v9821_v23 = vpop.eup %9820 }
0x1652   : > { %5586 = vrot.lane.b32.xlu0 %v5567_v4, %s10019_s26 }
0x1653   : > { %3437 = vrot.lane.b32.xlu1 %v12274_v21, %s10022_s19  ;;  %v4135_v21 = vmul.f32 %v9807_v18, %v12817_v5  ;;  %v6346_v5 = vld [vmem:[#allocation9 + $0x40] sm:$0xff] }
0x1654   : > { %v2713_v35 = vpop.permute.xlu1 %2712 }
0x1655   : > { %2737 = vst.msk [vmem:[#allocation3] sm:$0xff] %vm2736_vm4, %v2713_v35 }
0x1656   : > { %3439 = vrot.lane.b32.xlu0 %v3418_v28, %s10022_s19 }
0x1657   : > { %4154 = vrot.lane.b32.xlu1 %v12283_v16, %s10021_s21  ;;  %v3430_v38 = vpop.permute.xlu0 %3429  ;;  %v12818_v16 = vld [vmem:[#allocation50_spill] sm:$0xff] }
0x1658   : > { %v2715_v31 = vpop.permute.xlu1 %2714  ;;  %3454 = vst.msk [vmem:[#allocation3] sm:$0xff] %vm3453_vm5, %v3430_v38  ;;  %v1986_v30 = vmul.f32 %v9809_v46, %v12818_v16  ;;  %v6349_v16 = vld [vmem:[#allocation9 + $0x58] sm:$0xff] }
0x1659   : > { %2738 = vst.msk [vmem:[#allocation3 + $0x8] sm:$0xff] %vm2736_vm4, %v2715_v31 }
0x165a   : > { %4156 = vrot.lane.b32.xlu0 %v4135_v21, %s10021_s21  ;;  %v6347_v21 = vld [vmem:[#allocation9 + $0x48] sm:$0xff] }
0x165b   : > { %2007 = vrot.lane.b32.xlu1 %v12292_v51, %s10024_s17  ;;  %v4147_v29 = vpop.permute.xlu0 %4146  ;;  %v12819_v51 = vld [vmem:[#allocation98_spill] sm:$0xff]  ;;  %v9138_v46 = vpack.c.bf16 %v6347_v21, %v6346_v5 }
0x165c   : > { %v3432_v40 = vpop.permute.xlu1 %3431  ;;  %4171 = vst.msk [vmem:[#allocation3] sm:$0xff] %vm4170_vm6, %v4147_v29  ;;  %v4852_v0 = vmul.f32 %v9811_v14, %v12819_v51  ;;  %v6351_v51 = vld [vmem:[#allocation9 + $0x68] sm:$0xff] }
0x165d   : > { %3455 = vst.msk [vmem:[#allocation3 + $0x8] sm:$0xff] %vm3453_vm5, %v3432_v40  ;;  %v6348_v40 = vld [vmem:[#allocation9 + $0x50] sm:$0xff] }
0x165e   : > { %2009 = vrot.lane.b32.xlu0 %v1986_v30, %s10024_s17  ;;  %v9142_v30 = vpack.c.bf16 %v6349_v16, %v6348_v40 }
0x165f   : > { %4871 = vrot.lane.b32.xlu1 %v12301_v55, %s10020_s10  ;;  %v4149_v60 = vpop.permute.xlu0 %4148  ;;  %v12820_v55 = vld [vmem:[#allocation66_spill] sm:$0xff] }
0x1660   : > { %v2000_v22 = vpop.permute.xlu1 %1999  ;;  %4172 = vst.msk [vmem:[#allocation3 + $0x8] sm:$0xff] %vm4170_vm6, %v4149_v60  ;;  %v2703_v33 = vmul.f32 %v9813_v36, %v12820_v55 }
0x1661   : > { %2022 = vst.msk [vmem:[#allocation3 + $0x10] sm:$0xff] %vm2019_vm3, %v2000_v22  ;;  %v6350_v22 = vld [vmem:[#allocation9 + $0x60] sm:$0xff] }
0x1662   : > { %4873 = vrot.lane.b32.xlu0 %v4852_v0, %s10020_s10  ;;  %v9146_v36 = vpack.c.bf16 %v6351_v51, %v6350_v22  ;;  %v6850_v22 = vld [vmem:[%s12566_s7] ss:$0 sm:$0xff] }
0x1663   : > { %2724 = vrot.lane.b32.xlu1 %v12308_v2, %s10023_s22  ;;  %v2002_v53 = vpop.permute.xlu0 %2001  ;;  %v5569_v2 = vmul.f32 %v9815_v15, %v12003_v27  ;;  %v6353_v15 = vld [vmem:[#allocation9 + $0x78] sm:$0xff] }
0x1664   : > { %v4864_v32 = vpop.permute.xlu1 %4863  ;;  %2023 = vst.msk [vmem:[#allocation3 + $0x18] sm:$0xff] %vm2019_vm3, %v2002_v53 }
0x1665   : > { %4888 = vst.msk [vmem:[#allocation3] sm:$0xff] %vm4887_vm7, %v4864_v32 }
0x1666   : > { %2726 = vrot.lane.b32.xlu0 %v2703_v33, %s10023_s22  ;;  %v6352_v33 = vld [vmem:[#allocation9 + $0x70] sm:$0xff] }
0x1667   : > { %5588 = vrot.lane.b32.xlu1 %v12313_v3, %s10019_s26  ;;  %v4866_v37 = vpop.permute.xlu0 %4865  ;;  %v12821_v3 = vld [vmem:[#allocation82_spill] sm:$0xff] }
0x1668   : > { %v2717_v48 = vpop.permute.xlu1 %2716  ;;  %4889 = vst.msk [vmem:[#allocation3 + $0x8] sm:$0xff] %vm4887_vm7, %v4866_v37  ;;  %v3420_v43 = vmul.f32 %v9817_v41, %v12821_v3 }
0x1669   : > { %2739 = vst.msk [vmem:[#allocation3 + $0x10] sm:$0xff] %vm2736_vm4, %v2717_v48  ;;  %v9150_v48 = vpack.c.bf16 %v6353_v15, %v6352_v33 }
0x166a   : > { %5590 = vrot.lane.b32.xlu0 %v5569_v2, %s10019_s26 }
0x166b   : > { %3441 = vrot.lane.b32.xlu1 %v12318_v26, %s10022_s19  ;;  %v2719_v47 = vpop.permute.xlu0 %2718  ;;  %v4853_v26 = vmul.f32 %v9819_v42, %v12822_v62 }
0x166c   : > { %v5581_v50 = vpop.permute.xlu1 %5580  ;;  %2740 = vst.msk [vmem:[#allocation3 + $0x18] sm:$0xff] %vm2736_vm4, %v2719_v47 }
0x166d   : > { %5605 = vst.msk [vmem:[#allocation3] sm:$0xff] %vm5604_vm8, %v5581_v50 }
0x166e   : > { %3443 = vrot.lane.b32.xlu0 %v3420_v43, %s10022_s19 }
0x166f   : > { %4158 = vrot.lane.b32.xlu1 %v12323_v63, %s10021_s21  ;;  %v5583_v27 = vpop.permute.xlu0 %5582  ;;  %v5570_v63 = vmul.f32 %v9821_v23, %v12009_v39  ;;  %v6342_v39 = vld [vmem:[#allocation9 + $0x20] sm:$0xff] }
0x1670   : > { %v3434_v9 = vpop.permute.xlu1 %3433  ;;  %5606 = vst.msk [vmem:[#allocation3 + $0x8] sm:$0xff] %vm5604_vm8, %v5583_v27 }
0x1671   : > { %3456 = vst.msk [vmem:[#allocation3 + $0x10] sm:$0xff] %vm3453_vm5, %v3434_v9 }
0x1672   : > { %4875 = vrot.lane.b32.xlu0 %v4853_v26, %s10020_s10 }
0x1673   : > { %4160 = vrot.lane.b32.xlu1 %v12328_v19, %s10021_s21  ;;  %v3436_v59 = vpop.permute.xlu0 %3435  ;;  %v6340_v19 = vld [vmem:[#allocation9 + $0x10] sm:$0xff] }
0x1674   : > { %v4151_v6 = vpop.permute.xlu1 %4150  ;;  %3457 = vst.msk [vmem:[#allocation3 + $0x18] sm:$0xff] %vm3453_vm5, %v3436_v59  ;;  %v9126_v61 = vpack.c.bf16 %v6341_v49, %v6340_v19 }
0x1675   : > { %4173 = vst.msk [vmem:[#allocation3 + $0x10] sm:$0xff] %vm4170_vm6, %v4151_v6 }
0x1676   : > { %5592 = vrot.lane.b32.xlu0 %v5570_v63, %s10019_s26  ;;  %9127 = vmatprep.subr.bf16.mxu0 %v9126_v61 }
0x1677   : > { %4877 = vrot.lane.b32.xlu1 %v12333_v57, %s10020_s10  ;;  %v4153_v12 = vpop.permute.xlu0 %4152  ;;  %v9130_v57 = vpack.c.bf16 %v6343_v45, %v6342_v39  ;;  %9129 = vmatpush3.bf16.msra.mxu0 %v9126_v61 }
0x1678   : > { %v2004_v34 = vpop.permute.xlu1 %2003  ;;  %4174 = vst.msk [vmem:[#allocation3 + $0x18] sm:$0xff] %vm4170_vm6, %v4153_v12 }
0x1679   : > { %2024 = vst.msk [vmem:[#allocation3 + $0x20] sm:$0xff] %vm2019_vm3, %v2004_v34  ;;  %9131 = vmatprep.subr.bf16.mxu0 %v9130_v57 }
0x167b   : > { %v2006_v1 = vpop.permute.xlu0 %2005  ;;  %9133 = vmatpush3.bf16.msra.mxu0 %v9130_v57 }
0x167c   : > { %v4868_v44 = vpop.permute.xlu1 %4867  ;;  %2025 = vst.msk [vmem:[#allocation3 + $0x28] sm:$0xff] %vm2019_vm3, %v2006_v1  ;;  %9135 = vmatprep.subr.bf16.mxu0 %v9134_v54 }
0x167d   : > { %4890 = vst.msk [vmem:[#allocation3 + $0x10] sm:$0xff] %vm4887_vm7, %v4868_v44 }
0x167f   : > { %v4870_v13 = vpop.permute.xlu0 %4869  ;;  %9137 = vmatpush3.bf16.msra.mxu0 %v9134_v54 }
0x1680   : > { %v2721_v52 = vpop.permute.xlu1 %2720  ;;  %4891 = vst.msk [vmem:[#allocation3 + $0x18] sm:$0xff] %vm4887_vm7, %v4870_v13  ;;  %9139 = vmatprep.subr.bf16.mxu0 %v9138_v46 }
0x1681   : > { %2741 = vst.msk [vmem:[#allocation3 + $0x20] sm:$0xff] %vm2736_vm4, %v2721_v52 }
0x1683   : > { %9141 = vmatpush3.bf16.msra.mxu0 %v9138_v46 }
0x1684   : > { %v5585_v10 = vpop.permute.xlu1 %5584  ;;  %9143 = vmatprep.subr.bf16.mxu0 %v9142_v30 }
0x1685   : > { %5607 = vst.msk [vmem:[#allocation3 + $0x10] sm:$0xff] %vm5604_vm8, %v5585_v10 }
0x1687   : > { %9145 = vmatpush3.bf16.msra.mxu0 %v9142_v30 }
0x1688   : > { %9147 = vmatprep.subr.bf16.mxu0 %v9146_v36 }
0x168b   : > { %9149 = vmatpush3.bf16.msra.mxu0 %v9146_v36 }
0x168c   : > { %9151 = vmatprep.subr.bf16.mxu0 %v9150_v48 }
0x168f   : > { %9153 = vmatpush3.bf16.msra.mxu0 %v9150_v48 }
0x169f   : > { %v8396_v25 = vpop.f32.mrb[96].mxu0 }
0x16a0   : > { %v6242_v4 = vpop.f32.mrb[97].mxu0 }
0x16a7   : > { %v8399_v7 = vpop.f32.mrb[98].mxu0 }
0x16a8   : > { %v12453_v35 = vpop.f32.mrb[99].mxu0 }
0x16ab   : > { %v8402_v20 = vpop.f32.mrb[100].mxu0 }
0x16ac   : > { %v12455_v28 = vpop.f32.mrb[101].mxu0 }
0x16b3   : > { %v12457_v18 = vpop.f32.mrb[102].mxu0 }
0x16b4   : > { %v6272_v38 = vpop.f32.mrb[103].mxu0 }
0x16b9   : > { %v6093_v31 = vpop.xlane.xlu0 %6092 }
0x16ba   : > { %9822 = vrcp.f32 %v6093_v31 }
0x16bd   : > { %v6099_v29 = vpop.xlane.xlu0 %6098 }
0x16be   : > { %9824 = vrcp.f32 %v6099_v29 }
0x16c1   : > { %v6105_v14 = vpop.xlane.xlu0 %6104 }
0x16c2   : > { %9826 = vrcp.f32 %v6105_v14 }
0x16c3   : > { %v6090_v60 = vpop.xlane.xlu1 %6089 }
0x16c4   : > { %v9823_v0 = vpop.eup %9822  ;;  %9828 = vrcp.f32 %v6090_v60 }
0x16c5   : > { %v6108_v53 = vpop.xlane.xlu0 %6107  ;;  %v6282_v32 = vmul.f32 %v9823_v0, %v8396_v25 }
0x16c6   : > { %9830 = vrcp.f32 %v6108_v53 }
0x16c7   : > { %v6096_v55 = vpop.xlane.xlu1 %6095  ;;  %6299 = vrot.lane.b32.xlu0 %v6282_v32, %s10018_s25 }
0x16c8   : > { %v9825_v37 = vpop.eup %9824  ;;  %9832 = vrcp.f32 %v6096_v55 }
0x16c9   : > { %v2723_v2 = vpop.permute.xlu0 %2722  ;;  %v6284_v41 = vmul.f32 %v9825_v37, %v8399_v7 }
0x16ca   : > { %2742 = vst.msk [vmem:[#allocation3 + $0x28] sm:$0xff] %vm2736_vm4, %v2723_v2 }
0x16cb   : > { %v6102_v47 = vpop.xlane.xlu1 %6101  ;;  %6303 = vrot.lane.b32.xlu0 %v6284_v41, %s10018_s25 }
0x16cc   : > { %v9827_v50 = vpop.eup %9826  ;;  %9834 = vrcp.f32 %v6102_v47 }
0x16cd   : > { %v5587_v3 = vpop.permute.xlu0 %5586  ;;  %v6286_v43 = vmul.f32 %v9827_v50, %v8402_v20 }
0x16ce   : > { %v9829_v42 = vpop.eup %9828  ;;  %5608 = vst.msk [vmem:[#allocation3 + $0x18] sm:$0xff] %vm5604_vm8, %v5587_v3 }
0x16cf   : > { %v6111_v27 = vpop.xlane.xlu1 %6110  ;;  %6307 = vrot.lane.b32.xlu0 %v6286_v43, %s10018_s25  ;;  %v6281_v9 = vmul.f32 %v9829_v42, %v6242_v4 }
0x16d0   : > { %v9831_v62 = vpop.eup %9830  ;;  %9836 = vrcp.f32 %v6111_v27 }
0x16d1   : > { %6297 = vrot.lane.b32.xlu1 %v6281_v9, %s10018_s25  ;;  %v3440_v26 = vpop.permute.xlu0 %3439  ;;  %v6287_v23 = vmul.f32 %v9831_v62, %v6272_v38 }
0x16d2   : > { %v9833_v59 = vpop.eup %9832  ;;  %3459 = vst.msk [vmem:[#allocation3 + $0x28] sm:$0xff] %vm3453_vm5, %v3440_v26 }
0x16d3   : > { %v3438_v6 = vpop.permute.xlu1 %3437  ;;  %6309 = vrot.lane.b32.xlu0 %v6287_v23, %s10018_s25  ;;  %v6283_v63 = vmul.f32 %v9833_v59, %v12453_v35 }
0x16d4   : > { %3458 = vst.msk [vmem:[#allocation3 + $0x20] sm:$0xff] %vm3453_vm5, %v3438_v6 }
0x16d5   : > { %6301 = vrot.lane.b32.xlu1 %v6283_v63, %s10018_s25  ;;  %v4157_v12 = vpop.permute.xlu0 %4156 }
0x16d6   : > { %v9835_v34 = vpop.eup %9834  ;;  %4176 = vst.msk [vmem:[#allocation3 + $0x28] sm:$0xff] %vm4170_vm6, %v4157_v12 }
0x16d7   : > { %v4155_v58 = vpop.permute.xlu1 %4154  ;;  %v6285_v8 = vmul.f32 %v9835_v34, %v12455_v28 }
0x16d8   : > { %4175 = vst.msk [vmem:[#allocation3 + $0x20] sm:$0xff] %vm4170_vm6, %v4155_v58 }
0x16d9   : > { %6305 = vrot.lane.b32.xlu1 %v6285_v8, %s10018_s25  ;;  %v2010_v19 = vpop.permute.xlu0 %2009 }
0x16da   : > { %2027 = vst.msk [vmem:[#allocation3 + $0x38] sm:$0xff] %vm2019_vm3, %v2010_v19  ;;  %v9837_v49 = vpop.eup %9836 }
0x16db   : > { %v2008_v56 = vpop.permute.xlu1 %2007  ;;  %v6288_v45 = vmul.f32 %v9837_v49, %v12457_v18 }
0x16dc   : > { %2026 = vst.msk [vmem:[#allocation3 + $0x30] sm:$0xff] %vm2019_vm3, %v2008_v56 }
0x16dd   : > { %5594 = vrot.lane.b32.xlu1 %v12338_v17, %s10019_s26  ;;  %v4874_v61 = vpop.permute.xlu0 %4873 }
0x16de   : > { %4893 = vst.msk [vmem:[#allocation3 + $0x28] sm:$0xff] %vm4887_vm7, %v4874_v61 }
0x16df   : > { %v4872_v39 = vpop.permute.xlu1 %4871 }
0x16e0   : > { %4892 = vst.msk [vmem:[#allocation3 + $0x20] sm:$0xff] %vm4887_vm7, %v4872_v39 }
0x16e1   : > { %6311 = vrot.lane.b32.xlu1 %v6288_v45, %s10018_s25  ;;  %v2727_v1 = vpop.permute.xlu0 %2726  ;;  %s340_s25 = sand.u32 1, %s10000_s28  }
0x16e2   : > { %2744 = vst.msk [vmem:[#allocation3 + $0x38] sm:$0xff] %vm2736_vm4, %v2727_v1  ;;  %s6591_s26 = sshll.u32 %s340_s25, 6  ;;  %s12518_s18 = scalar_lea.sflag [#allocation6], %s340_s25 }
0x16e3   : > { %v2725_v44 = vpop.permute.xlu1 %2724  ;;  %s342_s19 = scalar_lea.vmem [#allocation10], %s6591_s26 }
0x16e4   : > { %2743 = vst.msk [vmem:[#allocation3 + $0x30] sm:$0xff] %vm2736_vm4, %v2725_v44  ;;  %s6488_s22 = sshll.u32 %s342_s19, 4  ;;  %s12509_s22 = int_to_ptr.vmem [resolvable:$true] %s6488_s22 }
0x16e5   : > { %v5591_v57 = vpop.permute.xlu0 %5590  ;;  %s9938_s9 = scalar_lea.vmem %s12509_s22, 1024  ;;  %p9945_p4 = scmp.lt.s32.totalorder %s12509_s22, %s9943_s11 }
0x16e6   : > { %5610 = vst.msk [vmem:[#allocation3 + $0x28] sm:$0xff] %vm5604_vm8, %v5591_v57  ;;  %p9939_p13 = scmp.ne.s32.totalorder %s12509_s22, %s9938_s9  ;;  %p9946_p7 = scmp.lt.s32.totalorder %s9944_s14, %s9938_s9 }
0x16e7   : > { %v5589_v17 = vpop.permute.xlu1 %5588 }
0x16e8   : > { %5609 = vst.msk [vmem:[#allocation3 + $0x20] sm:$0xff] %vm5604_vm8, %v5589_v17  ;;  %p9940_p2 = pnand %p9939_p13, %p12823_p1  ;;  %p9947_p8 = por %p9946_p7, %p9945_p4 }
0x16e9   : > { %v3444_v24 = vpop.permute.xlu0 %3443 }
0x16ea   : > { %3461 = vst.msk [vmem:[#allocation3 + $0x38] sm:$0xff] %vm3453_vm5, %v3444_v24  ;;  %p9941_p3 = pneg %p9940_p2 }
0x16eb   : > { %v3442_v11 = vpop.permute.xlu1 %3441 }
0x16ec   : > { %3460 = vst.msk [vmem:[#allocation3 + $0x30] sm:$0xff] %vm3453_vm5, %v3442_v11  ;;  %p9948_p11 = pnand %p9947_p8, %p9941_p3 }
0x16ed   : > { %v4876_v13 = vpop.permute.xlu0 %4875 }
0x16ef   : > { %v4159_v52 = vpop.permute.xlu1 %4158 }
0x16f0   : > { %4177 = vst.msk [vmem:[#allocation3 + $0x30] sm:$0xff] %vm4170_vm6, %v4159_v52 }
0x16f1   : > { %4894 = vst.msk [vmem:[#allocation3 + $0x30] sm:$0xff] %vm4887_vm7, %v4876_v13  ;;  %v5593_v54 = vpop.permute.xlu0 %5592 }
0x16f2   : > { %5611 = vst.msk [vmem:[#allocation3 + $0x30] sm:$0xff] %vm5604_vm8, %v5593_v54 }
0x16f3   : > { %v4161_v10 = vpop.permute.xlu1 %4160 }
0x16f4   : > { %4178 = vst.msk [vmem:[#allocation3 + $0x38] sm:$0xff] %vm4170_vm6, %v4161_v10 }
0x16f7   : > { %v4878_v25 = vpop.permute.xlu1 %4877 }
0x16f8   : > { %4895 = vst.msk [vmem:[#allocation3 + $0x38] sm:$0xff] %vm4887_vm7, %v4878_v25 }
0x1739   : > { %v6300_v4 = vpop.permute.xlu0 %6299 }
0x173a   : > { %6323 = vst.msk [vmem:[#allocation3 + $0x8] sm:$0xff] %vm6321_vm9, %v6300_v4 }
0x173d   : > { %v6304_v7 = vpop.permute.xlu0 %6303 }
0x173e   : > { %6325 = vst.msk [vmem:[#allocation3 + $0x18] sm:$0xff] %vm6321_vm9, %v6304_v7 }
0x1741   : > { %v6308_v35 = vpop.permute.xlu0 %6307  ;;  %v6331_v5 = vld [vmem:[#allocation3 + $0x8] sm:$0xff] }
0x1742   : > { %6327 = vst.msk [vmem:[#allocation3 + $0x28] sm:$0xff] %vm6321_vm9, %v6308_v35 }
0x1743   : > { %v6298_v20 = vpop.permute.xlu1 %6297 }
0x1744   : > { %6322 = vst.msk [vmem:[#allocation3] sm:$0xff] %vm6321_vm9, %v6298_v20 }
0x1745   : > { %v6310_v28 = vpop.permute.xlu0 %6309  ;;  %v6333_v29 = vld [vmem:[#allocation3 + $0x18] sm:$0xff] }
0x1746   : > { %6328 = vst.msk [vmem:[#allocation3 + $0x30] sm:$0xff] %vm6321_vm9, %v6310_v28 }
0x1747   : > { %v6302_v18 = vpop.permute.xlu1 %6301 }
0x1748   : > { %6324 = vst.msk [vmem:[#allocation3 + $0x10] sm:$0xff] %vm6321_vm9, %v6302_v18 }
0x1749   : > { %v6335_v30 = vld [vmem:[#allocation3 + $0x28] sm:$0xff] }
0x174b   : > { %v6306_v38 = vpop.permute.xlu1 %6305  ;;  %v6330_v31 = vld [vmem:[#allocation3] sm:$0xff] }
0x174c   : > { %6326 = vst.msk [vmem:[#allocation3 + $0x20] sm:$0xff] %vm6321_vm9, %v6306_v38  ;;  %8438 = vmatprep.mubr.f32.mxu0 %v6330_v31 }
0x174d   : > { %8439 = vmatmul.mubr.f32.vlgmr.msra.gmra.mrb[104].mxu0 %v6331_v5  ;;  %v6336_v14 = vld [vmem:[#allocation3 + $0x30] sm:$0xff] }
0x174f   : > { %v5595_v21 = vpop.permute.xlu1 %5594  ;;  %v6332_v46 = vld [vmem:[#allocation3 + $0x10] sm:$0xff] }
0x1750   : > { %5612 = vst.msk [vmem:[#allocation3 + $0x38] sm:$0xff] %vm5604_vm8, %v5595_v21  ;;  %8441 = vmatprep.mubr.f32.mxu0 %v6332_v46 }
0x1751   : > { %8442 = vmatmul.mubr.f32.gmra.mrb[106].mxu0 %v6333_v29 }
0x1753   : > { %v6312_v40 = vpop.permute.xlu1 %6311  ;;  %v6334_v16 = vld [vmem:[#allocation3 + $0x20] sm:$0xff] }
0x1754   : > { %6329 = vst.msk [vmem:[#allocation3 + $0x38] sm:$0xff] %vm6321_vm9, %v6312_v40  ;;  %8444 = vmatprep.mubr.f32.mxu0 %v6334_v16 }
0x1755   : > { %8445 = vmatmul.mubr.f32.gmra.mrb[108].mxu0 %v6335_v30 }
0x1756   : > { %8447 = vmatprep.mubr.f32.mxu0 %v6336_v14 }
0x175b   : > { %v6337_v60 = vld [vmem:[#allocation3 + $0x38] sm:$0xff] }
0x175c   : > { %8448 = vmatmul.mubr.f32.gmra.mrb[110].mxu0 %v6337_v60 }
0x1820   : > { %v8440_v51 = vpop.f32.mrb[104].mxu0 }
0x1821   : > { %v6433_v0 = vadd.f32 %v8440_v51, %v6850_v22  ;;  %v6427_v36 = vpop.f32.mrb[105].mxu0 }
0x1822   : > { %v6428_v53 = vadd.f32 %v6850_v22, %v6427_v36 }
0x1823   : > { %6467 = vst [vmem:[%s342_s19 + $0x8] sm:$0xff] %v6433_v0 }
0x1824   : > { %6466 = vst [vmem:[%s342_s19] sm:$0xff] %v6428_v53  ;;  %v8443_v32 = vpop.f32.mrb[106].mxu0 }
0x1825   : > { %v6443_v55 = vadd.f32 %v8443_v32, %v6850_v22  ;;  %v6437_v33 = vpop.f32.mrb[107].mxu0 }
0x1826   : > { %v6438_v15 = vadd.f32 %v6850_v22, %v6437_v33 }
0x1827   : > { %6469 = vst [vmem:[%s342_s19 + $0x18] sm:$0xff] %v6443_v55 }
0x1828   : > { %6468 = vst [vmem:[%s342_s19 + $0x10] sm:$0xff] %v6438_v15  ;;  %v8446_v37 = vpop.f32.mrb[108].mxu0 }
0x1829   : > { %v6453_v48 = vadd.f32 %v8446_v37, %v6850_v22  ;;  %v6447_v2 = vpop.f32.mrb[109].mxu0 }
0x182a   : > { %v6448_v41 = vadd.f32 %v6850_v22, %v6447_v2 }
0x182b   : > { %6471 = vst [vmem:[%s342_s19 + $0x28] sm:$0xff] %v6453_v48 }
0x182c   : > { %6470 = vst [vmem:[%s342_s19 + $0x20] sm:$0xff] %v6448_v41 }
0x182f   : > { %v8449_v47 = vpop.f32.mrb[110].mxu0 }
0x1830   : > { %v6463_v50 = vadd.f32 %v8449_v47, %v6850_v22  ;;  %v6457_v3 = vpop.f32.mrb[111].mxu0 }
0x1831   : > { %v6458_v43 = vadd.f32 %v6850_v22, %v6457_v3 }
0x1832   : > { %6473 = vst [vmem:[%s342_s19 + $0x38] sm:$0xff] %v6463_v50 }
0x1833   : > { %6472 = vst [vmem:[%s342_s19 + $0x30] sm:$0xff] %v6458_v43 }
0x1834   : > { %9951 = shalt.err (!%p9948_p11)
}
0x1835   : > { %s9952_s3 = scalar_lea.hbm %s12514_s13, 1024  ;;  %s9956_s25 = scalar_lea.hbm %s12567_s8, 2048 }
0x1836   : > { %p9953_p5 = scmp.ne.s32.totalorder %s12514_s13, %s9952_s3  ;;  %p9957_p9 = scmp.lt.u32.totalorder %s12514_s13, %s12567_s8 }
0x1837   : > { %p9958_p10 = scmp.lt.u32.totalorder %s9956_s25, %s9952_s3  ;;  %p9960_p13 = scmp.lt.u32.totalorder %s9952_s3, %s12514_s13 }
0x1838   : > { %p9954_p0 = pnand %p9953_p5, %p12823_p1 }
0x1839   : > { %p9959_p12 = por %p9958_p10, %p9957_p9 }
0x183a   : > { %p9955_p6 = pneg %p9954_p0 }
0x183b   : > { %p9961_p2 = por %p9960_p13, %p9959_p12 }
0x183d   : > { %p9962_p3 = pnand %p9961_p2, %p9955_p6 }
0x183f   : > { %9965 = shalt.err (!%p9962_p3)
}
0x1840   : > { %s10026_s21 = smov 128   ;;  %s10027_s19 = smov 8  }
0x1841   : > { %9230 = dma.vmem_to_hbm [thread:$0]  (%p12823_p1), %s12509_s22, 1024, %s12514_s13, %s12518_s18, %s10026_s21, %s10026_s21, %s10027_s19  }
0x1842 PF: > { %p9252_p4 = scmp.ge.s32.totalorder %s10008_s30, 2  ;;  %s6503_s20 = sand.u32 1, %s9996_s27  }
0x1843   : > { %p12824_p7 = scmp.ne.s32.totalorder %s12627_s16, 0  ;;  %s6504_s12 = scalar_lea.sflag [#allocation6], %s6503_s20 }
0x1845   : > { %p9243_p8 = pnand %p9252_p4, %p12824_p7 }
0x1847   : > { %9991 = dma.done.wait (!%p9243_p8), %s6504_s12, 1024  }
0x1848   : > { %9993 = vsyncadd (!%p9243_p8), %s6504_s12, 4294966272  ;;  %s12825_s30 = sld [smem:[#allocation15_spill]]  ;;  %s12826_s29 = sld [smem:[#allocation14_spill]] }
0x1849   : > { %s12827_s9 = sld [smem:[#allocation16_spill]]  ;;  %s12828_s27 = smov %s10000_s28 }
0x184e   : > { %p20_p11 = scmp.ge.s32.totalorder %s12825_s30, 4   ;;  %s12829_s28 = smov %s12826_s29 }
0x184f   : > { %s12830_s29 = smov %s12827_s9 }
0x1850   :  { %22 = sbr.rel (!%p20_p11) target bundleno = 7 (0x7), region = 100 }
0x1857   :  { %6509 = vsyncpa [#allocation5], 1 }
0x1858   :  { %6511 = vsyncpa [#allocation5 + $0x1], 1 }
0x1859   :  { %6512 = vsyncpa [#allocation8], 1 }
0x185a   :  { %6513 = vsyncpa [#allocation6], 1 }
0x185b   :  { %6515 = vsyncpa [#allocation6 + $0x1], 1 }

</bundles_post_ra>
